<compile_context>
chip_gen: v6e
topology: v6e:2x2x1
jax: 0.10.0
libtpu: 0.0.40
codegen_flags: <defaults>
</compile_context>

<pallas_src>
import functools

import jax
import jax.numpy as jnp
from jax import lax
from jax.experimental import pallas as pl
from jax.experimental.pallas import tpu as pltpu


def _round_up(x, m):
    return (x + m - 1) // m * m


def _unroll_factor(n, cap=8):
    """Largest factor in {cap,4,2,1} that divides n (keeps fori unroll safe)."""
    for f in (cap, 4, 2):
        if f <= n and n % f == 0:
            return f
    return 1


def lstm_fc_kernel(*refs, layer_dim, hp, seq_len, batch_pad, chunk_steps, unroll):
    """Stacked LSTM + final Linear, weights and activations resident in VMEM.

    Shapes (Bp = padded batch, hp = padded hidden, Fp = padded features,
    tc = chunk_steps):
      x_ref   : (T*Bp, Fp)             time-major padded input
      w_ih0   : (Fp, 4hp)              layer-0 input weights (gate order i,f,o,g)
      w_ihr   : (L-1, hp, 4hp)         input weights of layers >= 1 (only L > 1)
      w_hh    : (L, hp, 4hp)           recurrent weights
      b       : (L, 1, 4hp)            b_ih + b_hh
      fcw/fcb : (hp, Np) / (1, Np)
      seq_ref : (T*Bp, hp)   scratch   layer outputs feeding the next layer (L > 1)
      gx_ref  : (tc*Bp, 4hp) scratch   hoisted input projection for one time chunk
    """
    if layer_dim > 1:
        (x_ref, w_ih0_ref, w_ihr_ref, w_hh_ref, b_ref, fcw_ref, fcb_ref,
         out_ref, seq_ref, gx_ref) = refs
    else:
        (x_ref, w_ih0_ref, w_hh_ref, b_ref, fcw_ref, fcb_ref,
         out_ref, gx_ref) = refs
        w_ihr_ref = None
        seq_ref = None

    T = seq_len
    Bp = batch_pad
    tc = chunk_steps

    h_last = jnp.zeros((Bp, hp), jnp.float32)
    for l in range(layer_dim):                       # layer_dim is static
        w_hh = w_hh_ref[l]                           # (hp, 4hp)
        bias = b_ref[l]                              # (1, 4hp)
        if l == 0:
            w_in = w_ih0_ref[...]                    # (Fp, 4hp)
        else:
            w_in = w_ihr_ref[l - 1]                  # (hp, 4hp)
        store_seq = (l + 1 < layer_dim)              # last layer: no seq store

        # TODO(synk): hold W_hh in the MXU across the step loop via
        # pltpu.matmul_push_rhs / matmul_acc_lhs / matmul_pop (chip-specific
        # gate-block -> mxu_index mapping) to shorten the serial per-step latency.

        h = jnp.zeros((Bp, hp), jnp.float32)
        c = jnp.zeros((Bp, hp), jnp.float32)

        for c0 in range(0, T, tc):                   # static time chunks
            cl = min(tc, T - c0)
            row0 = c0 * Bp
            rows = cl * Bp

            # Hoisted input projection for this chunk: one MXU-filling matmul
            # + bias, off the sequential critical path.
            if l == 0:
                xin = x_ref[pl.ds(row0, rows), :]
            else:
                xin = seq_ref[pl.ds(row0, rows), :]
            gx_ref[pl.ds(0, rows), :] = (
                jnp.dot(xin, w_in, preferred_element_type=jnp.float32)
                + bias).astype(gx_ref.dtype)

            def step(gx_slice, seq_slice, h, c,
                     w_hh=w_hh, store_seq=store_seq):
                # gx load issued before the recurrent matmul (hides under MXU);
                # the seq store follows the gate math.
                gates_x = gx_ref[gx_slice, :]
                gates = gates_x + jnp.dot(h.astype(w_hh.dtype), w_hh,
                                          preferred_element_type=jnp.float32)
                # Lane-aligned gate blocks [i | f | o | g], each hp wide:
                # one sigmoid covers i/f/o, one tanh covers g.
                sio = jax.nn.sigmoid(gates[:, 0:3 * hp])
                i_g = sio[:, 0 * hp:1 * hp]
                f_g = sio[:, 1 * hp:2 * hp]
                o_g = sio[:, 2 * hp:3 * hp]
                g_g = jnp.tanh(gates[:, 3 * hp:4 * hp])
                c_new = f_g * c + i_g * g_g
                h_new = o_g * jnp.tanh(c_new)
                if store_seq:
                    seq_ref[seq_slice, :] = h_new.astype(seq_ref.dtype)
                return h_new, c_new

            if unroll:
                # Fully unrolled: static slices, full LLO scheduler visibility.
                for t in range(cl):
                    h, c = step(pl.ds(t * Bp, Bp),
                                pl.ds(row0 + t * Bp, Bp), h, c)
            else:
                def fori_body(t, carry, row0=row0):
                    hh, cc = carry
                    g0 = pl.multiple_of(t * Bp, Bp)
                    s0 = pl.multiple_of(row0 + t * Bp, Bp)
                    return step(pl.ds(g0, Bp), pl.ds(s0, Bp), hh, cc)
                # Partial unroll: overlap step t's EUP tail with step t+1's
                # loads / MXU push without instruction-memory blowup.
                h, c = lax.fori_loop(0, cl, fori_body, (h, c),
                                     unroll=_unroll_factor(cl))
        h_last = h

    # Final Linear on the last timestep of the last layer.
    out_ref[...] = (jnp.dot(h_last.astype(fcw_ref.dtype), fcw_ref[...],
                            preferred_element_type=jnp.float32)
                    + fcb_ref[...])


def _pack_gate_cols(mat_t, H, hp):
    """mat_t: (rows, 4H), columns in PyTorch gate order i,f,g,o.
    Returns (rows, 4*hp) with gate order i,f,o,g, each gate padded to hp lanes."""
    gi = mat_t[:, 0 * H:1 * H]
    gf = mat_t[:, 1 * H:2 * H]
    gg = mat_t[:, 2 * H:3 * H]
    go = mat_t[:, 3 * H:4 * H]
    pad = hp - H
    blocks = [gi, gf, go, gg]                        # i, f, o, g
    return jnp.concatenate(
        [jnp.pad(b, ((0, 0), (0, pad))) for b in blocks], axis=1)


def init_lstm_params(key, hidden_dim, layer_dim, n_future, features):
    """Deterministic init mirroring the nn.LSTM / nn.Linear parameter shapes."""
    H = hidden_dim
    k = 1.0 / jnp.sqrt(jnp.float32(H))
    layers = []
    for l in range(layer_dim):
        in_dim = features if l == 0 else H
        key, k1, k2, k3, k4 = jax.random.split(key, 5)
        w_ih = jax.random.uniform(k1, (4 * H, in_dim), jnp.float32, -k, k)
        w_hh = jax.random.uniform(k2, (4 * H, H), jnp.float32, -k, k)
        b_ih = jax.random.uniform(k3, (4 * H,), jnp.float32, -k, k)
        b_hh = jax.random.uniform(k4, (4 * H,), jnp.float32, -k, k)
        layers.append((w_ih, w_hh, b_ih, b_hh))
    key, k5, k6 = jax.random.split(key, 3)
    fc_w = jax.random.uniform(k5, (n_future, H), jnp.float32, -k, k)
    fc_b = jax.random.uniform(k6, (n_future,), jnp.float32, -k, k)
    return {"layers": layers, "fc_w": fc_w, "fc_b": fc_b}


def lstm_forward(src, params, *, hidden_dim, layer_dim, n_future,
                 compute_dtype=jnp.float32):
    """LSTM(batch_first) stack + Linear on the last timestep, as a Pallas kernel.

    compute_dtype controls the storage / MXU-operand dtype of x, weights and the
    seq/gx scratch (use jnp.bfloat16 on v6e/v7x to halve VMEM residency and
    double MXU rate; accumulation and gate math remain float32). Default f32.
    """
    B, T, F = src.shape
    H = hidden_dim
    Hp = _round_up(H, 128)            # lane-aligned hidden (per-gate block)
    Fp = _round_up(F, 128)            # lane-aligned features
    Bp = _round_up(B, 8)              # sublane-aligned batch
    Np = _round_up(n_future, 128)     # lane-dense output
    cdt = jnp.dtype(compute_dtype)

    # Time-major, batch/feature padded, flattened input: (T*Bp, Fp).
    x = jnp.transpose(src.astype(jnp.float32), (1, 0, 2))       # (T, B, F)
    x = jnp.pad(x, ((0, 0), (0, Bp - B), (0, Fp - F)))
    x = x.reshape(T * Bp, Fp).astype(cdt)

    w_ih0 = None
    w_ihr, w_hh_s, b_s = [], [], []
    for l, (w_ih, w_hh, b_ih, b_hh) in enumerate(params["layers"]):
        in_dim = w_ih.shape[1]
        w_ih_p = _pack_gate_cols(w_ih.T.astype(jnp.float32), H, Hp)   # (in, 4Hp)
        w_hh_p = _pack_gate_cols(w_hh.T.astype(jnp.float32), H, Hp)   # (H, 4Hp)
        b_p = _pack_gate_cols((b_ih + b_hh).astype(jnp.float32)[None, :], H, Hp)
        if l == 0:
            w_ih0 = jnp.pad(w_ih_p, ((0, Fp - in_dim), (0, 0)))       # (Fp, 4Hp)
        else:
            w_ihr.append(jnp.pad(w_ih_p, ((0, Hp - in_dim), (0, 0)))) # (Hp, 4Hp)
        w_hh_s.append(jnp.pad(w_hh_p, ((0, Hp - H), (0, 0))))         # (Hp, 4Hp)
        b_s.append(b_p)                                               # (1, 4Hp)
    w_ih0 = w_ih0.astype(cdt)
    w_hh_s = jnp.stack(w_hh_s).astype(cdt)          # (L, Hp, 4Hp)
    b_s = jnp.stack(b_s).astype(cdt)                # (L, 1, 4Hp)
    if layer_dim > 1:
        w_ihr = jnp.stack(w_ihr).astype(cdt)        # (L-1, Hp, 4Hp)

    fc_w = jnp.pad(params["fc_w"].T.astype(jnp.float32),
                   ((0, Hp - H), (0, Np - n_future))).astype(cdt)     # (Hp, Np)
    fc_b = jnp.pad(params["fc_b"].astype(jnp.float32)[None, :],
                   ((0, 0), (0, Np - n_future))).astype(cdt)          # (1, Np)

    inputs = [x, w_ih0]
    if layer_dim > 1:
        inputs.append(w_ihr)            # no dummy zero stack when layer_dim == 1
    inputs += [w_hh_s, b_s, fc_w, fc_b]

    # --- Generation-aware VMEM budgeting -----------------------------------
    try:
        vmem_cap = int(getattr(pltpu.get_tpu_info(), "vmem_capacity_bytes",
                               64 * 2 ** 20))
    except Exception:                                 # non-TPU / interpret mode
        vmem_cap = 64 * 2 ** 20
    budget = max(vmem_cap - 8 * 2 ** 20, 16 * 2 ** 20)   # ~8 MiB headroom

    isz = cdt.itemsize
    fixed = sum(int(a.size) * a.dtype.itemsize for a in inputs)
    fixed += Bp * Np * 4                                  # f32 output
    if layer_dim > 1:
        fixed += T * Bp * Hp * isz                        # seq scratch
    per_step_gx = Bp * 4 * Hp * isz                       # gx bytes per timestep
    avail = budget / 1.5 - fixed                          # 1.5x residency margin
    tc = int(min(T, max(1, int(avail // per_step_gx))))   # gx time-chunk length
    vmem_limit = int(min(budget,
                         max(int(1.5 * (fixed + tc * per_step_gx)),
                             16 * 2 ** 20)))

    unroll = T <= 16      # full Python unroll only for short sequences
    kernel = functools.partial(
        lstm_fc_kernel, layer_dim=layer_dim, hp=Hp, seq_len=T,
        batch_pad=Bp, chunk_steps=tc, unroll=unroll)

    scratch = []
    if layer_dim > 1:
        scratch.append(pltpu.VMEM((T * Bp, Hp), cdt))        # seq (layer -> layer)
    scratch.append(pltpu.VMEM((tc * Bp, 4 * Hp), cdt))       # gates_x chunk

    # TODO(synk): for hidden_dim/layer_dim too large for full VMEM residency,
    # stream per-layer weight stacks from HBM (memory_space=pl.ANY +
    # make_async_copy double-buffering) instead of keeping every layer resident.
    # TODO(synk): on v7x, add a 'parallel' batch-block grid axis when B >= 16
    # so the recurrence is split across both TensorCores.
    out = pl.pallas_call(
        kernel,
        out_shape=jax.ShapeDtypeStruct((Bp, Np), jnp.float32),
        in_specs=[pl.BlockSpec(memory_space=pltpu.MemorySpace.VMEM)] * len(inputs),
        out_specs=pl.BlockSpec(memory_space=pltpu.MemorySpace.VMEM),
        scratch_shapes=scratch,
        compiler_params=pltpu.CompilerParams(vmem_limit_bytes=vmem_limit),
    )(*inputs)
    return out[:B, :n_future]


def lstm_ref(src, params, *, hidden_dim, layer_dim, n_future):
    """Pure-JAX reference mirroring torch.nn.LSTM(batch_first) + Linear."""
    B, T, _ = src.shape
    H = hidden_dim
    seq = src.astype(jnp.float32)
    for (w_ih, w_hh, b_ih, b_hh) in params["layers"]:
        h = jnp.zeros((B, H), jnp.float32)
        c = jnp.zeros((B, H), jnp.float32)
        outs = []
        for t in range(T):
            gates = seq[:, t, :] @ w_ih.T + h @ w_hh.T + b_ih + b_hh
            i = jax.nn.sigmoid(gates[:, 0 * H:1 * H])
            f = jax.nn.sigmoid(gates[:, 1 * H:2 * H])
            g = jnp.tanh(gates[:, 2 * H:3 * H])
            o = jax.nn.sigmoid(gates[:, 3 * H:4 * H])
            c = f * c + i * g
            h = o * jnp.tanh(c)
            outs.append(h)
        seq = jnp.stack(outs, axis=1)
    return seq[:, -1, :] @ params["fc_w"].T + params["fc_b"]


if __name__ == "__main__":
    # Small shapes consistent with the module's forward:
    # src: (batch, n_past, features); output: (batch, n_future)
    batch, n_past, features = 2, 8, 4
    hidden_dim, layer_dim, n_future = 32, 2, 4

    key = jax.random.PRNGKey(0)
    key, pkey, xkey = jax.random.split(key, 3)
    params = init_lstm_params(pkey, hidden_dim, layer_dim, n_future, features)
    src = jax.random.normal(xkey, (batch, n_past, features), jnp.float32)

    out = lstm_forward(src, params, hidden_dim=hidden_dim,
                       layer_dim=layer_dim, n_future=n_future)
    out = jax.block_until_ready(out)

    ref = lstm_ref(src, params, hidden_dim=hidden_dim,
                   layer_dim=layer_dim, n_future=n_future)
    assert out.shape == (batch, n_future)
    assert jnp.allclose(out, ref, atol=1e-4, rtol=1e-4), (out, ref)
    print("KERNEL_OK")
</pallas_src>

<mosaic_0001>
module attributes {stable_mosaic.version = 11 : i64} {
  func.func @lstm_fc_kernel(%arg0: memref<64x128xf32, #tpu.memory_space<vmem>>, %arg1: memref<128x512xf32, #tpu.memory_space<vmem>>, %arg2: memref<1x128x512xf32, #tpu.memory_space<vmem>>, %arg3: memref<2x128x512xf32, #tpu.memory_space<vmem>>, %arg4: memref<2x1x512xf32, #tpu.memory_space<vmem>>, %arg5: memref<128x128xf32, #tpu.memory_space<vmem>>, %arg6: memref<1x128xf32, #tpu.memory_space<vmem>>, %arg7: memref<8x128xf32, #tpu.memory_space<vmem>>, %arg8: memref<64x128xf32, #tpu.memory_space<vmem>>, %arg9: memref<64x512xf32, #tpu.memory_space<vmem>>) attributes {dimension_semantics = [], scalar_prefetch = 0 : i64, scratch_operands = 2 : i64, tpu.core_type = #tpu.core_type<tc>} {
    %c0 = arith.constant 0 : index
    %c0_0 = arith.constant 0 : index
    %c0_1 = arith.constant 0 : index
    %0 = vector.load %arg3[%c0, %c0_0, %c0_1] : memref<2x128x512xf32, #tpu.memory_space<vmem>>, vector<1x128x512xf32>
    %1 = vector.shape_cast %0 : vector<1x128x512xf32> to vector<128x512xf32>
    %c0_2 = arith.constant 0 : index
    %c0_3 = arith.constant 0 : index
    %c0_4 = arith.constant 0 : index
    %2 = vector.load %arg4[%c0_2, %c0_3, %c0_4] : memref<2x1x512xf32, #tpu.memory_space<vmem>>, vector<1x1x512xf32>
    %3 = vector.shape_cast %2 : vector<1x1x512xf32> to vector<1x512xf32>
    %c0_5 = arith.constant 0 : index
    %c0_6 = arith.constant 0 : index
    %4 = vector.load %arg1[%c0_5, %c0_6] : memref<128x512xf32, #tpu.memory_space<vmem>>, vector<128x512xf32>
    %cst = arith.constant 0.000000e+00 : f32
    %5 = vector.broadcast %cst : f32 to vector<8x128xf32>
    %cst_7 = arith.constant 0.000000e+00 : f32
    %6 = vector.broadcast %cst_7 : f32 to vector<8x128xf32>
    %c0_8 = arith.constant 0 : index
    %c0_9 = arith.constant 0 : index
    %7 = vector.load %arg0[%c0_8, %c0_9] : memref<64x128xf32, #tpu.memory_space<vmem>>, vector<64x128xf32>
    %cst_10 = arith.constant dense<0.000000e+00> : vector<64x512xf32>
    %8 = tpu.matmul %7, %4, %cst_10 {dimension_numbers = #tpu.dot_dimension_numbers<[1], [0], [0], [1], [0, 0, 1, 1], [], []>} : vector<64x128xf32>, vector<128x512xf32>, vector<64x512xf32> -> vector<64x512xf32>
    %9 = vector.broadcast %3 : vector<1x512xf32> to vector<64x512xf32>
    %10 = arith.addf %8, %9 : vector<64x512xf32>
    %c0_11 = arith.constant 0 : index
    %c0_12 = arith.constant 0 : index
    %11 = vector.load %arg9[%c0_11, %c0_12] : memref<64x512xf32, #tpu.memory_space<vmem>>, vector<64x512xf32>
    tpu.vector_store %arg9[%c0_11, %c0_12], %10 {strides = array<i32>} : memref<64x512xf32, #tpu.memory_space<vmem>>, vector<64x512xf32>,
    %c0_13 = arith.constant 0 : index
    %c0_14 = arith.constant 0 : index
    %12 = vector.load %arg9[%c0_13, %c0_14] : memref<64x512xf32, #tpu.memory_space<vmem>>, vector<8x512xf32>
    %cst_15 = arith.constant dense<0.000000e+00> : vector<8x512xf32>
    %13 = tpu.matmul %5, %1, %cst_15 {dimension_numbers = #tpu.dot_dimension_numbers<[1], [0], [0], [1], [0, 0, 1, 1], [], []>} : vector<8x128xf32>, vector<128x512xf32>, vector<8x512xf32> -> vector<8x512xf32>
    %14 = arith.addf %12, %13 : vector<8x512xf32>
    %15 = vector.extract_strided_slice %14 {offsets = [0, 0], sizes = [8, 384], strides = [1, 1]} : vector<8x512xf32> to vector<8x384xf32>
    %16 = arith.negf %15 : vector<8x384xf32>
    %17 = math.exp %16 : vector<8x384xf32>
    %cst_16 = arith.constant 1.000000e+00 : f32
    %18 = vector.broadcast %cst_16 : f32 to vector<8x384xf32>
    %19 = arith.addf %18, %17 : vector<8x384xf32>
    %20 = arith.divf %18, %19 : vector<8x384xf32>
    %21 = vector.extract_strided_slice %20 {offsets = [0, 0], sizes = [8, 128], strides = [1, 1]} : vector<8x384xf32> to vector<8x128xf32>
    %22 = vector.extract_strided_slice %20 {offsets = [0, 128], sizes = [8, 128], strides = [1, 1]} : vector<8x384xf32> to vector<8x128xf32>
    %23 = vector.extract_strided_slice %20 {offsets = [0, 256], sizes = [8, 128], strides = [1, 1]} : vector<8x384xf32> to vector<8x128xf32>
    %24 = vector.extract_strided_slice %14 {offsets = [0, 384], sizes = [8, 128], strides = [1, 1]} : vector<8x512xf32> to vector<8x128xf32>
    %25 = math.tanh %24 : vector<8x128xf32>
    %26 = arith.mulf %22, %6 : vector<8x128xf32>
    %27 = arith.mulf %21, %25 : vector<8x128xf32>
    %28 = arith.addf %26, %27 : vector<8x128xf32>
    %29 = math.tanh %28 : vector<8x128xf32>
    %30 = arith.mulf %23, %29 : vector<8x128xf32>
    %c0_17 = arith.constant 0 : index
    %c0_18 = arith.constant 0 : index
    %31 = vector.load %arg8[%c0_17, %c0_18] : memref<64x128xf32, #tpu.memory_space<vmem>>, vector<8x128xf32>
    tpu.vector_store %arg8[%c0_17, %c0_18], %30 {strides = array<i32>} : memref<64x128xf32, #tpu.memory_space<vmem>>, vector<8x128xf32>,
    %c8 = arith.constant 8 : index
    %c0_19 = arith.constant 0 : index
    %32 = vector.load %arg9[%c8, %c0_19] : memref<64x512xf32, #tpu.memory_space<vmem>>, vector<8x512xf32>
    %cst_20 = arith.constant dense<0.000000e+00> : vector<8x512xf32>
    %33 = tpu.matmul %30, %1, %cst_20 {dimension_numbers = #tpu.dot_dimension_numbers<[1], [0], [0], [1], [0, 0, 1, 1], [], []>} : vector<8x128xf32>, vector<128x512xf32>, vector<8x512xf32> -> vector<8x512xf32>
    %34 = arith.addf %32, %33 : vector<8x512xf32>
    %35 = vector.extract_strided_slice %34 {offsets = [0, 0], sizes = [8, 384], strides = [1, 1]} : vector<8x512xf32> to vector<8x384xf32>
    %36 = arith.negf %35 : vector<8x384xf32>
    %37 = math.exp %36 : vector<8x384xf32>
    %cst_21 = arith.constant 1.000000e+00 : f32
    %38 = vector.broadcast %cst_21 : f32 to vector<8x384xf32>
    %39 = arith.addf %38, %37 : vector<8x384xf32>
    %40 = arith.divf %38, %39 : vector<8x384xf32>
    %41 = vector.extract_strided_slice %40 {offsets = [0, 0], sizes = [8, 128], strides = [1, 1]} : vector<8x384xf32> to vector<8x128xf32>
    %42 = vector.extract_strided_slice %40 {offsets = [0, 128], sizes = [8, 128], strides = [1, 1]} : vector<8x384xf32> to vector<8x128xf32>
    %43 = vector.extract_strided_slice %40 {offsets = [0, 256], sizes = [8, 128], strides = [1, 1]} : vector<8x384xf32> to vector<8x128xf32>
    %44 = vector.extract_strided_slice %34 {offsets = [0, 384], sizes = [8, 128], strides = [1, 1]} : vector<8x512xf32> to vector<8x128xf32>
    %45 = math.tanh %44 : vector<8x128xf32>
    %46 = arith.mulf %42, %28 : vector<8x128xf32>
    %47 = arith.mulf %41, %45 : vector<8x128xf32>
    %48 = arith.addf %46, %47 : vector<8x128xf32>
    %49 = math.tanh %48 : vector<8x128xf32>
    %50 = arith.mulf %43, %49 : vector<8x128xf32>
    %c8_22 = arith.constant 8 : index
    %c0_23 = arith.constant 0 : index
    %51 = vector.load %arg8[%c8_22, %c0_23] : memref<64x128xf32, #tpu.memory_space<vmem>>, vector<8x128xf32>
    tpu.vector_store %arg8[%c8_22, %c0_23], %50 {strides = array<i32>} : memref<64x128xf32, #tpu.memory_space<vmem>>, vector<8x128xf32>,
    %c16 = arith.constant 16 : index
    %c0_24 = arith.constant 0 : index
    %52 = vector.load %arg9[%c16, %c0_24] : memref<64x512xf32, #tpu.memory_space<vmem>>, vector<8x512xf32>
    %cst_25 = arith.constant dense<0.000000e+00> : vector<8x512xf32>
    %53 = tpu.matmul %50, %1, %cst_25 {dimension_numbers = #tpu.dot_dimension_numbers<[1], [0], [0], [1], [0, 0, 1, 1], [], []>} : vector<8x128xf32>, vector<128x512xf32>, vector<8x512xf32> -> vector<8x512xf32>
    %54 = arith.addf %52, %53 : vector<8x512xf32>
    %55 = vector.extract_strided_slice %54 {offsets = [0, 0], sizes = [8, 384], strides = [1, 1]} : vector<8x512xf32> to vector<8x384xf32>
    %56 = arith.negf %55 : vector<8x384xf32>
    %57 = math.exp %56 : vector<8x384xf32>
    %cst_26 = arith.constant 1.000000e+00 : f32
    %58 = vector.broadcast %cst_26 : f32 to vector<8x384xf32>
    %59 = arith.addf %58, %57 : vector<8x384xf32>
    %60 = arith.divf %58, %59 : vector<8x384xf32>
    %61 = vector.extract_strided_slice %60 {offsets = [0, 0], sizes = [8, 128], strides = [1, 1]} : vector<8x384xf32> to vector<8x128xf32>
    %62 = vector.extract_strided_slice %60 {offsets = [0, 128], sizes = [8, 128], strides = [1, 1]} : vector<8x384xf32> to vector<8x128xf32>
    %63 = vector.extract_strided_slice %60 {offsets = [0, 256], sizes = [8, 128], strides = [1, 1]} : vector<8x384xf32> to vector<8x128xf32>
    %64 = vector.extract_strided_slice %54 {offsets = [0, 384], sizes = [8, 128], strides = [1, 1]} : vector<8x512xf32> to vector<8x128xf32>
    %65 = math.tanh %64 : vector<8x128xf32>
    %66 = arith.mulf %62, %48 : vector<8x128xf32>
    %67 = arith.mulf %61, %65 : vector<8x128xf32>
    %68 = arith.addf %66, %67 : vector<8x128xf32>
    %69 = math.tanh %68 : vector<8x128xf32>
    %70 = arith.mulf %63, %69 : vector<8x128xf32>
    %c16_27 = arith.constant 16 : index
    %c0_28 = arith.constant 0 : index
    %71 = vector.load %arg8[%c16_27, %c0_28] : memref<64x128xf32, #tpu.memory_space<vmem>>, vector<8x128xf32>
    tpu.vector_store %arg8[%c16_27, %c0_28], %70 {strides = array<i32>} : memref<64x128xf32, #tpu.memory_space<vmem>>, vector<8x128xf32>,
    %c24 = arith.constant 24 : index
    %c0_29 = arith.constant 0 : index
    %72 = vector.load %arg9[%c24, %c0_29] : memref<64x512xf32, #tpu.memory_space<vmem>>, vector<8x512xf32>
    %cst_30 = arith.constant dense<0.000000e+00> : vector<8x512xf32>
    %73 = tpu.matmul %70, %1, %cst_30 {dimension_numbers = #tpu.dot_dimension_numbers<[1], [0], [0], [1], [0, 0, 1, 1], [], []>} : vector<8x128xf32>, vector<128x512xf32>, vector<8x512xf32> -> vector<8x512xf32>
    %74 = arith.addf %72, %73 : vector<8x512xf32>
    %75 = vector.extract_strided_slice %74 {offsets = [0, 0], sizes = [8, 384], strides = [1, 1]} : vector<8x512xf32> to vector<8x384xf32>
    %76 = arith.negf %75 : vector<8x384xf32>
    %77 = math.exp %76 : vector<8x384xf32>
    %cst_31 = arith.constant 1.000000e+00 : f32
    %78 = vector.broadcast %cst_31 : f32 to vector<8x384xf32>
    %79 = arith.addf %78, %77 : vector<8x384xf32>
    %80 = arith.divf %78, %79 : vector<8x384xf32>
    %81 = vector.extract_strided_slice %80 {offsets = [0, 0], sizes = [8, 128], strides = [1, 1]} : vector<8x384xf32> to vector<8x128xf32>
    %82 = vector.extract_strided_slice %80 {offsets = [0, 128], sizes = [8, 128], strides = [1, 1]} : vector<8x384xf32> to vector<8x128xf32>
    %83 = vector.extract_strided_slice %80 {offsets = [0, 256], sizes = [8, 128], strides = [1, 1]} : vector<8x384xf32> to vector<8x128xf32>
    %84 = vector.extract_strided_slice %74 {offsets = [0, 384], sizes = [8, 128], strides = [1, 1]} : vector<8x512xf32> to vector<8x128xf32>
    %85 = math.tanh %84 : vector<8x128xf32>
    %86 = arith.mulf %82, %68 : vector<8x128xf32>
    %87 = arith.mulf %81, %85 : vector<8x128xf32>
    %88 = arith.addf %86, %87 : vector<8x128xf32>
    %89 = math.tanh %88 : vector<8x128xf32>
    %90 = arith.mulf %83, %89 : vector<8x128xf32>
    %c24_32 = arith.constant 24 : index
    %c0_33 = arith.constant 0 : index
    %91 = vector.load %arg8[%c24_32, %c0_33] : memref<64x128xf32, #tpu.memory_space<vmem>>, vector<8x128xf32>
    tpu.vector_store %arg8[%c24_32, %c0_33], %90 {strides = array<i32>} : memref<64x128xf32, #tpu.memory_space<vmem>>, vector<8x128xf32>,
    %c32 = arith.constant 32 : index
    %c0_34 = arith.constant 0 : index
    %92 = vector.load %arg9[%c32, %c0_34] : memref<64x512xf32, #tpu.memory_space<vmem>>, vector<8x512xf32>
    %cst_35 = arith.constant dense<0.000000e+00> : vector<8x512xf32>
    %93 = tpu.matmul %90, %1, %cst_35 {dimension_numbers = #tpu.dot_dimension_numbers<[1], [0], [0], [1], [0, 0, 1, 1], [], []>} : vector<8x128xf32>, vector<128x512xf32>, vector<8x512xf32> -> vector<8x512xf32>
    %94 = arith.addf %92, %93 : vector<8x512xf32>
    %95 = vector.extract_strided_slice %94 {offsets = [0, 0], sizes = [8, 384], strides = [1, 1]} : vector<8x512xf32> to vector<8x384xf32>
    %96 = arith.negf %95 : vector<8x384xf32>
    %97 = math.exp %96 : vector<8x384xf32>
    %cst_36 = arith.constant 1.000000e+00 : f32
    %98 = vector.broadcast %cst_36 : f32 to vector<8x384xf32>
    %99 = arith.addf %98, %97 : vector<8x384xf32>
    %100 = arith.divf %98, %99 : vector<8x384xf32>
    %101 = vector.extract_strided_slice %100 {offsets = [0, 0], sizes = [8, 128], strides = [1, 1]} : vector<8x384xf32> to vector<8x128xf32>
    %102 = vector.extract_strided_slice %100 {offsets = [0, 128], sizes = [8, 128], strides = [1, 1]} : vector<8x384xf32> to vector<8x128xf32>
    %103 = vector.extract_strided_slice %100 {offsets = [0, 256], sizes = [8, 128], strides = [1, 1]} : vector<8x384xf32> to vector<8x128xf32>
    %104 = vector.extract_strided_slice %94 {offsets = [0, 384], sizes = [8, 128], strides = [1, 1]} : vector<8x512xf32> to vector<8x128xf32>
    %105 = math.tanh %104 : vector<8x128xf32>
    %106 = arith.mulf %102, %88 : vector<8x128xf32>
    %107 = arith.mulf %101, %105 : vector<8x128xf32>
    %108 = arith.addf %106, %107 : vector<8x128xf32>
    %109 = math.tanh %108 : vector<8x128xf32>
    %110 = arith.mulf %103, %109 : vector<8x128xf32>
    %c32_37 = arith.constant 32 : index
    %c0_38 = arith.constant 0 : index
    %111 = vector.load %arg8[%c32_37, %c0_38] : memref<64x128xf32, #tpu.memory_space<vmem>>, vector<8x128xf32>
    tpu.vector_store %arg8[%c32_37, %c0_38], %110 {strides = array<i32>} : memref<64x128xf32, #tpu.memory_space<vmem>>, vector<8x128xf32>,
    %c40 = arith.constant 40 : index
    %c0_39 = arith.constant 0 : index
    %112 = vector.load %arg9[%c40, %c0_39] : memref<64x512xf32, #tpu.memory_space<vmem>>, vector<8x512xf32>
    %cst_40 = arith.constant dense<0.000000e+00> : vector<8x512xf32>
    %113 = tpu.matmul %110, %1, %cst_40 {dimension_numbers = #tpu.dot_dimension_numbers<[1], [0], [0], [1], [0, 0, 1, 1], [], []>} : vector<8x128xf32>, vector<128x512xf32>, vector<8x512xf32> -> vector<8x512xf32>
    %114 = arith.addf %112, %113 : vector<8x512xf32>
    %115 = vector.extract_strided_slice %114 {offsets = [0, 0], sizes = [8, 384], strides = [1, 1]} : vector<8x512xf32> to vector<8x384xf32>
    %116 = arith.negf %115 : vector<8x384xf32>
    %117 = math.exp %116 : vector<8x384xf32>
    %cst_41 = arith.constant 1.000000e+00 : f32
    %118 = vector.broadcast %cst_41 : f32 to vector<8x384xf32>
    %119 = arith.addf %118, %117 : vector<8x384xf32>
    %120 = arith.divf %118, %119 : vector<8x384xf32>
    %121 = vector.extract_strided_slice %120 {offsets = [0, 0], sizes = [8, 128], strides = [1, 1]} : vector<8x384xf32> to vector<8x128xf32>
    %122 = vector.extract_strided_slice %120 {offsets = [0, 128], sizes = [8, 128], strides = [1, 1]} : vector<8x384xf32> to vector<8x128xf32>
    %123 = vector.extract_strided_slice %120 {offsets = [0, 256], sizes = [8, 128], strides = [1, 1]} : vector<8x384xf32> to vector<8x128xf32>
    %124 = vector.extract_strided_slice %114 {offsets = [0, 384], sizes = [8, 128], strides = [1, 1]} : vector<8x512xf32> to vector<8x128xf32>
    %125 = math.tanh %124 : vector<8x128xf32>
    %126 = arith.mulf %122, %108 : vector<8x128xf32>
    %127 = arith.mulf %121, %125 : vector<8x128xf32>
    %128 = arith.addf %126, %127 : vector<8x128xf32>
    %129 = math.tanh %128 : vector<8x128xf32>
    %130 = arith.mulf %123, %129 : vector<8x128xf32>
    %c40_42 = arith.constant 40 : index
    %c0_43 = arith.constant 0 : index
    %131 = vector.load %arg8[%c40_42, %c0_43] : memref<64x128xf32, #tpu.memory_space<vmem>>, vector<8x128xf32>
    tpu.vector_store %arg8[%c40_42, %c0_43], %130 {strides = array<i32>} : memref<64x128xf32, #tpu.memory_space<vmem>>, vector<8x128xf32>,
    %c48 = arith.constant 48 : index
    %c0_44 = arith.constant 0 : index
    %132 = vector.load %arg9[%c48, %c0_44] : memref<64x512xf32, #tpu.memory_space<vmem>>, vector<8x512xf32>
    %cst_45 = arith.constant dense<0.000000e+00> : vector<8x512xf32>
    %133 = tpu.matmul %130, %1, %cst_45 {dimension_numbers = #tpu.dot_dimension_numbers<[1], [0], [0], [1], [0, 0, 1, 1], [], []>} : vector<8x128xf32>, vector<128x512xf32>, vector<8x512xf32> -> vector<8x512xf32>
    %134 = arith.addf %132, %133 : vector<8x512xf32>
    %135 = vector.extract_strided_slice %134 {offsets = [0, 0], sizes = [8, 384], strides = [1, 1]} : vector<8x512xf32> to vector<8x384xf32>
    %136 = arith.negf %135 : vector<8x384xf32>
    %137 = math.exp %136 : vector<8x384xf32>
    %cst_46 = arith.constant 1.000000e+00 : f32
    %138 = vector.broadcast %cst_46 : f32 to vector<8x384xf32>
    %139 = arith.addf %138, %137 : vector<8x384xf32>
    %140 = arith.divf %138, %139 : vector<8x384xf32>
    %141 = vector.extract_strided_slice %140 {offsets = [0, 0], sizes = [8, 128], strides = [1, 1]} : vector<8x384xf32> to vector<8x128xf32>
    %142 = vector.extract_strided_slice %140 {offsets = [0, 128], sizes = [8, 128], strides = [1, 1]} : vector<8x384xf32> to vector<8x128xf32>
    %143 = vector.extract_strided_slice %140 {offsets = [0, 256], sizes = [8, 128], strides = [1, 1]} : vector<8x384xf32> to vector<8x128xf32>
    %144 = vector.extract_strided_slice %134 {offsets = [0, 384], sizes = [8, 128], strides = [1, 1]} : vector<8x512xf32> to vector<8x128xf32>
    %145 = math.tanh %144 : vector<8x128xf32>
    %146 = arith.mulf %142, %128 : vector<8x128xf32>
    %147 = arith.mulf %141, %145 : vector<8x128xf32>
    %148 = arith.addf %146, %147 : vector<8x128xf32>
    %149 = math.tanh %148 : vector<8x128xf32>
    %150 = arith.mulf %143, %149 : vector<8x128xf32>
    %c48_47 = arith.constant 48 : index
    %c0_48 = arith.constant 0 : index
    %151 = vector.load %arg8[%c48_47, %c0_48] : memref<64x128xf32, #tpu.memory_space<vmem>>, vector<8x128xf32>
    tpu.vector_store %arg8[%c48_47, %c0_48], %150 {strides = array<i32>} : memref<64x128xf32, #tpu.memory_space<vmem>>, vector<8x128xf32>,
    %c56 = arith.constant 56 : index
    %c0_49 = arith.constant 0 : index
    %152 = vector.load %arg9[%c56, %c0_49] : memref<64x512xf32, #tpu.memory_space<vmem>>, vector<8x512xf32>
    %cst_50 = arith.constant dense<0.000000e+00> : vector<8x512xf32>
    %153 = tpu.matmul %150, %1, %cst_50 {dimension_numbers = #tpu.dot_dimension_numbers<[1], [0], [0], [1], [0, 0, 1, 1], [], []>} : vector<8x128xf32>, vector<128x512xf32>, vector<8x512xf32> -> vector<8x512xf32>
    %154 = arith.addf %152, %153 : vector<8x512xf32>
    %155 = vector.extract_strided_slice %154 {offsets = [0, 0], sizes = [8, 384], strides = [1, 1]} : vector<8x512xf32> to vector<8x384xf32>
    %156 = arith.negf %155 : vector<8x384xf32>
    %157 = math.exp %156 : vector<8x384xf32>
    %cst_51 = arith.constant 1.000000e+00 : f32
    %158 = vector.broadcast %cst_51 : f32 to vector<8x384xf32>
    %159 = arith.addf %158, %157 : vector<8x384xf32>
    %160 = arith.divf %158, %159 : vector<8x384xf32>
    %161 = vector.extract_strided_slice %160 {offsets = [0, 0], sizes = [8, 128], strides = [1, 1]} : vector<8x384xf32> to vector<8x128xf32>
    %162 = vector.extract_strided_slice %160 {offsets = [0, 128], sizes = [8, 128], strides = [1, 1]} : vector<8x384xf32> to vector<8x128xf32>
    %163 = vector.extract_strided_slice %160 {offsets = [0, 256], sizes = [8, 128], strides = [1, 1]} : vector<8x384xf32> to vector<8x128xf32>
    %164 = vector.extract_strided_slice %154 {offsets = [0, 384], sizes = [8, 128], strides = [1, 1]} : vector<8x512xf32> to vector<8x128xf32>
    %165 = math.tanh %164 : vector<8x128xf32>
    %166 = arith.mulf %162, %148 : vector<8x128xf32>
    %167 = arith.mulf %161, %165 : vector<8x128xf32>
    %168 = arith.addf %166, %167 : vector<8x128xf32>
    %169 = math.tanh %168 : vector<8x128xf32>
    %170 = arith.mulf %163, %169 : vector<8x128xf32>
    %c56_52 = arith.constant 56 : index
    %c0_53 = arith.constant 0 : index
    %171 = vector.load %arg8[%c56_52, %c0_53] : memref<64x128xf32, #tpu.memory_space<vmem>>, vector<8x128xf32>
    tpu.vector_store %arg8[%c56_52, %c0_53], %170 {strides = array<i32>} : memref<64x128xf32, #tpu.memory_space<vmem>>, vector<8x128xf32>,
    %c1 = arith.constant 1 : index
    %c0_54 = arith.constant 0 : index
    %c0_55 = arith.constant 0 : index
    %172 = vector.load %arg3[%c1, %c0_54, %c0_55] : memref<2x128x512xf32, #tpu.memory_space<vmem>>, vector<1x128x512xf32>
    %173 = vector.shape_cast %172 : vector<1x128x512xf32> to vector<128x512xf32>
    %c1_56 = arith.constant 1 : index
    %c0_57 = arith.constant 0 : index
    %c0_58 = arith.constant 0 : index
    %174 = vector.load %arg4[%c1_56, %c0_57, %c0_58] : memref<2x1x512xf32, #tpu.memory_space<vmem>>, vector<1x1x512xf32>
    %175 = vector.shape_cast %174 : vector<1x1x512xf32> to vector<1x512xf32>
    %c0_59 = arith.constant 0 : index
    %c0_60 = arith.constant 0 : index
    %c0_61 = arith.constant 0 : index
    %176 = vector.load %arg2[%c0_59, %c0_60, %c0_61] : memref<1x128x512xf32, #tpu.memory_space<vmem>>, vector<1x128x512xf32>
    %177 = vector.shape_cast %176 : vector<1x128x512xf32> to vector<128x512xf32>
    %cst_62 = arith.constant 0.000000e+00 : f32
    %178 = vector.broadcast %cst_62 : f32 to vector<8x128xf32>
    %cst_63 = arith.constant 0.000000e+00 : f32
    %179 = vector.broadcast %cst_63 : f32 to vector<8x128xf32>
    %c0_64 = arith.constant 0 : index
    %c0_65 = arith.constant 0 : index
    %180 = vector.load %arg8[%c0_64, %c0_65] : memref<64x128xf32, #tpu.memory_space<vmem>>, vector<64x128xf32>
    %cst_66 = arith.constant dense<0.000000e+00> : vector<64x512xf32>
    %181 = tpu.matmul %180, %177, %cst_66 {dimension_numbers = #tpu.dot_dimension_numbers<[1], [0], [0], [1], [0, 0, 1, 1], [], []>} : vector<64x128xf32>, vector<128x512xf32>, vector<64x512xf32> -> vector<64x512xf32>
    %182 = vector.broadcast %175 : vector<1x512xf32> to vector<64x512xf32>
    %183 = arith.addf %181, %182 : vector<64x512xf32>
    %c0_67 = arith.constant 0 : index
    %c0_68 = arith.constant 0 : index
    %184 = vector.load %arg9[%c0_67, %c0_68] : memref<64x512xf32, #tpu.memory_space<vmem>>, vector<64x512xf32>
    tpu.vector_store %arg9[%c0_67, %c0_68], %183 {strides = array<i32>} : memref<64x512xf32, #tpu.memory_space<vmem>>, vector<64x512xf32>,
    %c0_69 = arith.constant 0 : index
    %c0_70 = arith.constant 0 : index
    %185 = vector.load %arg9[%c0_69, %c0_70] : memref<64x512xf32, #tpu.memory_space<vmem>>, vector<8x512xf32>
    %cst_71 = arith.constant dense<0.000000e+00> : vector<8x512xf32>
    %186 = tpu.matmul %178, %173, %cst_71 {dimension_numbers = #tpu.dot_dimension_numbers<[1], [0], [0], [1], [0, 0, 1, 1], [], []>} : vector<8x128xf32>, vector<128x512xf32>, vector<8x512xf32> -> vector<8x512xf32>
    %187 = arith.addf %185, %186 : vector<8x512xf32>
    %188 = vector.extract_strided_slice %187 {offsets = [0, 0], sizes = [8, 384], strides = [1, 1]} : vector<8x512xf32> to vector<8x384xf32>
    %189 = arith.negf %188 : vector<8x384xf32>
    %190 = math.exp %189 : vector<8x384xf32>
    %cst_72 = arith.constant 1.000000e+00 : f32
    %191 = vector.broadcast %cst_72 : f32 to vector<8x384xf32>
    %192 = arith.addf %191, %190 : vector<8x384xf32>
    %193 = arith.divf %191, %192 : vector<8x384xf32>
    %194 = vector.extract_strided_slice %193 {offsets = [0, 0], sizes = [8, 128], strides = [1, 1]} : vector<8x384xf32> to vector<8x128xf32>
    %195 = vector.extract_strided_slice %193 {offsets = [0, 128], sizes = [8, 128], strides = [1, 1]} : vector<8x384xf32> to vector<8x128xf32>
    %196 = vector.extract_strided_slice %193 {offsets = [0, 256], sizes = [8, 128], strides = [1, 1]} : vector<8x384xf32> to vector<8x128xf32>
    %197 = vector.extract_strided_slice %187 {offsets = [0, 384], sizes = [8, 128], strides = [1, 1]} : vector<8x512xf32> to vector<8x128xf32>
    %198 = math.tanh %197 : vector<8x128xf32>
    %199 = arith.mulf %195, %179 : vector<8x128xf32>
    %200 = arith.mulf %194, %198 : vector<8x128xf32>
    %201 = arith.addf %199, %200 : vector<8x128xf32>
    %202 = math.tanh %201 : vector<8x128xf32>
    %203 = arith.mulf %196, %202 : vector<8x128xf32>
    %c8_73 = arith.constant 8 : index
    %c0_74 = arith.constant 0 : index
    %204 = vector.load %arg9[%c8_73, %c0_74] : memref<64x512xf32, #tpu.memory_space<vmem>>, vector<8x512xf32>
    %cst_75 = arith.constant dense<0.000000e+00> : vector<8x512xf32>
    %205 = tpu.matmul %203, %173, %cst_75 {dimension_numbers = #tpu.dot_dimension_numbers<[1], [0], [0], [1], [0, 0, 1, 1], [], []>} : vector<8x128xf32>, vector<128x512xf32>, vector<8x512xf32> -> vector<8x512xf32>
    %206 = arith.addf %204, %205 : vector<8x512xf32>
    %207 = vector.extract_strided_slice %206 {offsets = [0, 0], sizes = [8, 384], strides = [1, 1]} : vector<8x512xf32> to vector<8x384xf32>
    %208 = arith.negf %207 : vector<8x384xf32>
    %209 = math.exp %208 : vector<8x384xf32>
    %cst_76 = arith.constant 1.000000e+00 : f32
    %210 = vector.broadcast %cst_76 : f32 to vector<8x384xf32>
    %211 = arith.addf %210, %209 : vector<8x384xf32>
    %212 = arith.divf %210, %211 : vector<8x384xf32>
    %213 = vector.extract_strided_slice %212 {offsets = [0, 0], sizes = [8, 128], strides = [1, 1]} : vector<8x384xf32> to vector<8x128xf32>
    %214 = vector.extract_strided_slice %212 {offsets = [0, 128], sizes = [8, 128], strides = [1, 1]} : vector<8x384xf32> to vector<8x128xf32>
    %215 = vector.extract_strided_slice %212 {offsets = [0, 256], sizes = [8, 128], strides = [1, 1]} : vector<8x384xf32> to vector<8x128xf32>
    %216 = vector.extract_strided_slice %206 {offsets = [0, 384], sizes = [8, 128], strides = [1, 1]} : vector<8x512xf32> to vector<8x128xf32>
    %217 = math.tanh %216 : vector<8x128xf32>
    %218 = arith.mulf %214, %201 : vector<8x128xf32>
    %219 = arith.mulf %213, %217 : vector<8x128xf32>
    %220 = arith.addf %218, %219 : vector<8x128xf32>
    %221 = math.tanh %220 : vector<8x128xf32>
    %222 = arith.mulf %215, %221 : vector<8x128xf32>
    %c16_77 = arith.constant 16 : index
    %c0_78 = arith.constant 0 : index
    %223 = vector.load %arg9[%c16_77, %c0_78] : memref<64x512xf32, #tpu.memory_space<vmem>>, vector<8x512xf32>
    %cst_79 = arith.constant dense<0.000000e+00> : vector<8x512xf32>
    %224 = tpu.matmul %222, %173, %cst_79 {dimension_numbers = #tpu.dot_dimension_numbers<[1], [0], [0], [1], [0, 0, 1, 1], [], []>} : vector<8x128xf32>, vector<128x512xf32>, vector<8x512xf32> -> vector<8x512xf32>
    %225 = arith.addf %223, %224 : vector<8x512xf32>
    %226 = vector.extract_strided_slice %225 {offsets = [0, 0], sizes = [8, 384], strides = [1, 1]} : vector<8x512xf32> to vector<8x384xf32>
    %227 = arith.negf %226 : vector<8x384xf32>
    %228 = math.exp %227 : vector<8x384xf32>
    %cst_80 = arith.constant 1.000000e+00 : f32
    %229 = vector.broadcast %cst_80 : f32 to vector<8x384xf32>
    %230 = arith.addf %229, %228 : vector<8x384xf32>
    %231 = arith.divf %229, %230 : vector<8x384xf32>
    %232 = vector.extract_strided_slice %231 {offsets = [0, 0], sizes = [8, 128], strides = [1, 1]} : vector<8x384xf32> to vector<8x128xf32>
    %233 = vector.extract_strided_slice %231 {offsets = [0, 128], sizes = [8, 128], strides = [1, 1]} : vector<8x384xf32> to vector<8x128xf32>
    %234 = vector.extract_strided_slice %231 {offsets = [0, 256], sizes = [8, 128], strides = [1, 1]} : vector<8x384xf32> to vector<8x128xf32>
    %235 = vector.extract_strided_slice %225 {offsets = [0, 384], sizes = [8, 128], strides = [1, 1]} : vector<8x512xf32> to vector<8x128xf32>
    %236 = math.tanh %235 : vector<8x128xf32>
    %237 = arith.mulf %233, %220 : vector<8x128xf32>
    %238 = arith.mulf %232, %236 : vector<8x128xf32>
    %239 = arith.addf %237, %238 : vector<8x128xf32>
    %240 = math.tanh %239 : vector<8x128xf32>
    %241 = arith.mulf %234, %240 : vector<8x128xf32>
    %c24_81 = arith.constant 24 : index
    %c0_82 = arith.constant 0 : index
    %242 = vector.load %arg9[%c24_81, %c0_82] : memref<64x512xf32, #tpu.memory_space<vmem>>, vector<8x512xf32>
    %cst_83 = arith.constant dense<0.000000e+00> : vector<8x512xf32>
    %243 = tpu.matmul %241, %173, %cst_83 {dimension_numbers = #tpu.dot_dimension_numbers<[1], [0], [0], [1], [0, 0, 1, 1], [], []>} : vector<8x128xf32>, vector<128x512xf32>, vector<8x512xf32> -> vector<8x512xf32>
    %244 = arith.addf %242, %243 : vector<8x512xf32>
    %245 = vector.extract_strided_slice %244 {offsets = [0, 0], sizes = [8, 384], strides = [1, 1]} : vector<8x512xf32> to vector<8x384xf32>
    %246 = arith.negf %245 : vector<8x384xf32>
    %247 = math.exp %246 : vector<8x384xf32>
    %cst_84 = arith.constant 1.000000e+00 : f32
    %248 = vector.broadcast %cst_84 : f32 to vector<8x384xf32>
    %249 = arith.addf %248, %247 : vector<8x384xf32>
    %250 = arith.divf %248, %249 : vector<8x384xf32>
    %251 = vector.extract_strided_slice %250 {offsets = [0, 0], sizes = [8, 128], strides = [1, 1]} : vector<8x384xf32> to vector<8x128xf32>
    %252 = vector.extract_strided_slice %250 {offsets = [0, 128], sizes = [8, 128], strides = [1, 1]} : vector<8x384xf32> to vector<8x128xf32>
    %253 = vector.extract_strided_slice %250 {offsets = [0, 256], sizes = [8, 128], strides = [1, 1]} : vector<8x384xf32> to vector<8x128xf32>
    %254 = vector.extract_strided_slice %244 {offsets = [0, 384], sizes = [8, 128], strides = [1, 1]} : vector<8x512xf32> to vector<8x128xf32>
    %255 = math.tanh %254 : vector<8x128xf32>
    %256 = arith.mulf %252, %239 : vector<8x128xf32>
    %257 = arith.mulf %251, %255 : vector<8x128xf32>
    %258 = arith.addf %256, %257 : vector<8x128xf32>
    %259 = math.tanh %258 : vector<8x128xf32>
    %260 = arith.mulf %253, %259 : vector<8x128xf32>
    %c32_85 = arith.constant 32 : index
    %c0_86 = arith.constant 0 : index
    %261 = vector.load %arg9[%c32_85, %c0_86] : memref<64x512xf32, #tpu.memory_space<vmem>>, vector<8x512xf32>
    %cst_87 = arith.constant dense<0.000000e+00> : vector<8x512xf32>
    %262 = tpu.matmul %260, %173, %cst_87 {dimension_numbers = #tpu.dot_dimension_numbers<[1], [0], [0], [1], [0, 0, 1, 1], [], []>} : vector<8x128xf32>, vector<128x512xf32>, vector<8x512xf32> -> vector<8x512xf32>
    %263 = arith.addf %261, %262 : vector<8x512xf32>
    %264 = vector.extract_strided_slice %263 {offsets = [0, 0], sizes = [8, 384], strides = [1, 1]} : vector<8x512xf32> to vector<8x384xf32>
    %265 = arith.negf %264 : vector<8x384xf32>
    %266 = math.exp %265 : vector<8x384xf32>
    %cst_88 = arith.constant 1.000000e+00 : f32
    %267 = vector.broadcast %cst_88 : f32 to vector<8x384xf32>
    %268 = arith.addf %267, %266 : vector<8x384xf32>
    %269 = arith.divf %267, %268 : vector<8x384xf32>
    %270 = vector.extract_strided_slice %269 {offsets = [0, 0], sizes = [8, 128], strides = [1, 1]} : vector<8x384xf32> to vector<8x128xf32>
    %271 = vector.extract_strided_slice %269 {offsets = [0, 128], sizes = [8, 128], strides = [1, 1]} : vector<8x384xf32> to vector<8x128xf32>
    %272 = vector.extract_strided_slice %269 {offsets = [0, 256], sizes = [8, 128], strides = [1, 1]} : vector<8x384xf32> to vector<8x128xf32>
    %273 = vector.extract_strided_slice %263 {offsets = [0, 384], sizes = [8, 128], strides = [1, 1]} : vector<8x512xf32> to vector<8x128xf32>
    %274 = math.tanh %273 : vector<8x128xf32>
    %275 = arith.mulf %271, %258 : vector<8x128xf32>
    %276 = arith.mulf %270, %274 : vector<8x128xf32>
    %277 = arith.addf %275, %276 : vector<8x128xf32>
    %278 = math.tanh %277 : vector<8x128xf32>
    %279 = arith.mulf %272, %278 : vector<8x128xf32>
    %c40_89 = arith.constant 40 : index
    %c0_90 = arith.constant 0 : index
    %280 = vector.load %arg9[%c40_89, %c0_90] : memref<64x512xf32, #tpu.memory_space<vmem>>, vector<8x512xf32>
    %cst_91 = arith.constant dense<0.000000e+00> : vector<8x512xf32>
    %281 = tpu.matmul %279, %173, %cst_91 {dimension_numbers = #tpu.dot_dimension_numbers<[1], [0], [0], [1], [0, 0, 1, 1], [], []>} : vector<8x128xf32>, vector<128x512xf32>, vector<8x512xf32> -> vector<8x512xf32>
    %282 = arith.addf %280, %281 : vector<8x512xf32>
    %283 = vector.extract_strided_slice %282 {offsets = [0, 0], sizes = [8, 384], strides = [1, 1]} : vector<8x512xf32> to vector<8x384xf32>
    %284 = arith.negf %283 : vector<8x384xf32>
    %285 = math.exp %284 : vector<8x384xf32>
    %cst_92 = arith.constant 1.000000e+00 : f32
    %286 = vector.broadcast %cst_92 : f32 to vector<8x384xf32>
    %287 = arith.addf %286, %285 : vector<8x384xf32>
    %288 = arith.divf %286, %287 : vector<8x384xf32>
    %289 = vector.extract_strided_slice %288 {offsets = [0, 0], sizes = [8, 128], strides = [1, 1]} : vector<8x384xf32> to vector<8x128xf32>
    %290 = vector.extract_strided_slice %288 {offsets = [0, 128], sizes = [8, 128], strides = [1, 1]} : vector<8x384xf32> to vector<8x128xf32>
    %291 = vector.extract_strided_slice %288 {offsets = [0, 256], sizes = [8, 128], strides = [1, 1]} : vector<8x384xf32> to vector<8x128xf32>
    %292 = vector.extract_strided_slice %282 {offsets = [0, 384], sizes = [8, 128], strides = [1, 1]} : vector<8x512xf32> to vector<8x128xf32>
    %293 = math.tanh %292 : vector<8x128xf32>
    %294 = arith.mulf %290, %277 : vector<8x128xf32>
    %295 = arith.mulf %289, %293 : vector<8x128xf32>
    %296 = arith.addf %294, %295 : vector<8x128xf32>
    %297 = math.tanh %296 : vector<8x128xf32>
    %298 = arith.mulf %291, %297 : vector<8x128xf32>
    %c48_93 = arith.constant 48 : index
    %c0_94 = arith.constant 0 : index
    %299 = vector.load %arg9[%c48_93, %c0_94] : memref<64x512xf32, #tpu.memory_space<vmem>>, vector<8x512xf32>
    %cst_95 = arith.constant dense<0.000000e+00> : vector<8x512xf32>
    %300 = tpu.matmul %298, %173, %cst_95 {dimension_numbers = #tpu.dot_dimension_numbers<[1], [0], [0], [1], [0, 0, 1, 1], [], []>} : vector<8x128xf32>, vector<128x512xf32>, vector<8x512xf32> -> vector<8x512xf32>
    %301 = arith.addf %299, %300 : vector<8x512xf32>
    %302 = vector.extract_strided_slice %301 {offsets = [0, 0], sizes = [8, 384], strides = [1, 1]} : vector<8x512xf32> to vector<8x384xf32>
    %303 = arith.negf %302 : vector<8x384xf32>
    %304 = math.exp %303 : vector<8x384xf32>
    %cst_96 = arith.constant 1.000000e+00 : f32
    %305 = vector.broadcast %cst_96 : f32 to vector<8x384xf32>
    %306 = arith.addf %305, %304 : vector<8x384xf32>
    %307 = arith.divf %305, %306 : vector<8x384xf32>
    %308 = vector.extract_strided_slice %307 {offsets = [0, 0], sizes = [8, 128], strides = [1, 1]} : vector<8x384xf32> to vector<8x128xf32>
    %309 = vector.extract_strided_slice %307 {offsets = [0, 128], sizes = [8, 128], strides = [1, 1]} : vector<8x384xf32> to vector<8x128xf32>
    %310 = vector.extract_strided_slice %307 {offsets = [0, 256], sizes = [8, 128], strides = [1, 1]} : vector<8x384xf32> to vector<8x128xf32>
    %311 = vector.extract_strided_slice %301 {offsets = [0, 384], sizes = [8, 128], strides = [1, 1]} : vector<8x512xf32> to vector<8x128xf32>
    %312 = math.tanh %311 : vector<8x128xf32>
    %313 = arith.mulf %309, %296 : vector<8x128xf32>
    %314 = arith.mulf %308, %312 : vector<8x128xf32>
    %315 = arith.addf %313, %314 : vector<8x128xf32>
    %316 = math.tanh %315 : vector<8x128xf32>
    %317 = arith.mulf %310, %316 : vector<8x128xf32>
    %c56_97 = arith.constant 56 : index
    %c0_98 = arith.constant 0 : index
    %318 = vector.load %arg9[%c56_97, %c0_98] : memref<64x512xf32, #tpu.memory_space<vmem>>, vector<8x512xf32>
    %cst_99 = arith.constant dense<0.000000e+00> : vector<8x512xf32>
    %319 = tpu.matmul %317, %173, %cst_99 {dimension_numbers = #tpu.dot_dimension_numbers<[1], [0], [0], [1], [0, 0, 1, 1], [], []>} : vector<8x128xf32>, vector<128x512xf32>, vector<8x512xf32> -> vector<8x512xf32>
    %320 = arith.addf %318, %319 : vector<8x512xf32>
    %321 = vector.extract_strided_slice %320 {offsets = [0, 0], sizes = [8, 384], strides = [1, 1]} : vector<8x512xf32> to vector<8x384xf32>
    %322 = arith.negf %321 : vector<8x384xf32>
    %323 = math.exp %322 : vector<8x384xf32>
    %cst_100 = arith.constant 1.000000e+00 : f32
    %324 = vector.broadcast %cst_100 : f32 to vector<8x384xf32>
    %325 = arith.addf %324, %323 : vector<8x384xf32>
    %326 = arith.divf %324, %325 : vector<8x384xf32>
    %327 = vector.extract_strided_slice %326 {offsets = [0, 0], sizes = [8, 128], strides = [1, 1]} : vector<8x384xf32> to vector<8x128xf32>
    %328 = vector.extract_strided_slice %326 {offsets = [0, 128], sizes = [8, 128], strides = [1, 1]} : vector<8x384xf32> to vector<8x128xf32>
    %329 = vector.extract_strided_slice %326 {offsets = [0, 256], sizes = [8, 128], strides = [1, 1]} : vector<8x384xf32> to vector<8x128xf32>
    %330 = vector.extract_strided_slice %320 {offsets = [0, 384], sizes = [8, 128], strides = [1, 1]} : vector<8x512xf32> to vector<8x128xf32>
    %331 = math.tanh %330 : vector<8x128xf32>
    %332 = arith.mulf %328, %315 : vector<8x128xf32>
    %333 = arith.mulf %327, %331 : vector<8x128xf32>
    %334 = arith.addf %332, %333 : vector<8x128xf32>
    %335 = math.tanh %334 : vector<8x128xf32>
    %336 = arith.mulf %329, %335 : vector<8x128xf32>
    %c0_101 = arith.constant 0 : index
    %c0_102 = arith.constant 0 : index
    %337 = vector.load %arg5[%c0_101, %c0_102] : memref<128x128xf32, #tpu.memory_space<vmem>>, vector<128x128xf32>
    %cst_103 = arith.constant dense<0.000000e+00> : vector<8x128xf32>
    %338 = tpu.matmul %336, %337, %cst_103 {dimension_numbers = #tpu.dot_dimension_numbers<[1], [0], [0], [1], [0, 0, 1, 1], [], []>} : vector<8x128xf32>, vector<128x128xf32>, vector<8x128xf32> -> vector<8x128xf32>
    %c0_104 = arith.constant 0 : index
    %c0_105 = arith.constant 0 : index
    %339 = vector.load %arg6[%c0_104, %c0_105] : memref<1x128xf32, #tpu.memory_space<vmem>>, vector<1x128xf32>
    %340 = vector.broadcast %339 : vector<1x128xf32> to vector<8x128xf32>
    %341 = arith.addf %338, %340 : vector<8x128xf32>
    %c0_106 = arith.constant 0 : index
    %c0_107 = arith.constant 0 : index
    %342 = vector.load %arg7[%c0_106, %c0_107] : memref<8x128xf32, #tpu.memory_space<vmem>>, vector<8x128xf32>
    tpu.vector_store %arg7[%c0_106, %c0_107], %341 {strides = array<i32>} : memref<8x128xf32, #tpu.memory_space<vmem>>, vector<8x128xf32>,
    return
  }
}

</mosaic_0001>

<bundles_post_ra>
// kernel: tpu_custom_call.1
= control target key start
LH: loop header
LB: loop body
LE: loop exit
PB: predicated region body
PF: predicated region fallthrough
CT: control target
= control target key end

     0   :  { %12 = vsyncpa [#allocation5], 0  ;;  %s6572_s0 = inlined_call_operand.hbm [shape: f32[64,128], index: 0, kind: input, shape index: {}]   ;;  %s6573_s1 = inlined_call_operand.hbm [shape: f32[128,512], index: 1, kind: input, shape index: {}]   ;;  %s6574_s2 = inlined_call_operand.hbm [shape: f32[1,128,512], index: 2, kind: input, shape index: {}]   ;;  %s6575_s3 = inlined_call_operand.hbm [shape: f32[2,128,512], index: 3, kind: input, shape index: {}]   ;;  %s6576_s4 = inlined_call_operand.hbm [shape: f32[2,1,512], index: 4, kind: input, shape index: {}]   ;;  %s6577_s5 = inlined_call_operand.hbm [shape: f32[128,128], index: 5, kind: input, shape index: {}]   ;;  %s6578_s6 = inlined_call_operand.vmem [shape: f32[1,128], index: 6, kind: input, shape index: {}]   ;;  %s6579_s7 = inlined_call_operand.hbm [shape: f32[8,128], index: 7, kind: output, shape index: {}]  }
   0x1   :  { %13 = vsyncpa [#allocation8], 0 }
   0x2   :  { %14 = vsyncpa [#allocation11], 0 }
   0x3   :  { %15 = vsyncpa [#allocation14], 0 }
   0x4   :  { %16 = vsyncpa [#allocation6], 0  ;;  %s4497_s24 = smov [#allocation7]  }
   0x5   :  { %s34_s25 = sshll.u32 %s4497_s24, 4  ;;  %s35_s25 = int_to_ptr.vmem [resolvable:$true] %s34_s25 }
   0x6   :  { %s4355_s26 = scalar_lea.vmem %s35_s25, 8192  ;;  %p4360_p1 = scmp.lt.s32.totalorder %s35_s25, %s35_s25 }
   0x7   :  { %p4356_p0 = scmp.ne.s32.totalorder %s35_s25, %s4355_s26  ;;  %p4361_p2 = scmp.lt.s32.totalorder %s4355_s26, %s4355_s26 }
   0x9   :  { %p4362_p3 = por %p4361_p2, %p4360_p1 }
   0xb   :  { %p4363_p4 = pnand %p4362_p3, %p4356_p0 }
   0xd   :  { %4366 = shalt.err (!%p4363_p4)
}
   0xe   :  { %s4498_s27 = smov 512   ;;  %s4499_s28 = smov 32  }
   0xf   :  { %40 = dma.hbm_to_vmem [thread:$0]  %s6573_s1, 8192, %s35_s25, [#allocation8], %s4498_s27, %s4498_s27, %s4499_s28  }
  0x10   :  { %s4500_s8 = smov [#allocation10]   ;;  %s4501_s10 = smov [#allocation4]  }
  0x11   :  { %s58_s9 = sshll.u32 %s4500_s8, 4  ;;  %s22_s11 = sshll.u32 %s4501_s10, 4  ;;  %s59_s9 = int_to_ptr.vmem [resolvable:$true] %s58_s9  ;;  %s23_s11 = int_to_ptr.vmem [resolvable:$true] %s22_s11 }
  0x12   :  { %s4375_s12 = scalar_lea.vmem %s59_s9, 16384  ;;  %p4380_p6 = scmp.lt.s32.totalorder %s59_s9, %s59_s9 }
  0x13   :  { %p4376_p5 = scmp.ne.s32.totalorder %s59_s9, %s4375_s12  ;;  %p4381_p7 = scmp.lt.s32.totalorder %s4375_s12, %s4375_s12 }
  0x15   :  { %p4382_p8 = por %p4381_p7, %p4380_p6 }
  0x17   :  { %p4383_p9 = pnand %p4382_p8, %p4376_p5 }
  0x19   :  { %4386 = shalt.err (!%p4383_p9)
}
  0x1a   :  { %64 = dma.hbm_to_vmem [thread:$0]  %s6575_s3, 16384, %s59_s9, [#allocation11], %s4498_s27, %s4498_s27, %s4499_s28  }
  0x1b   :  { %s4395_s1 = scalar_lea.vmem %s23_s11, 1024  ;;  %p4400_p11 = scmp.lt.s32.totalorder %s23_s11, %s23_s11 }
  0x1c   :  { %p4396_p10 = scmp.ne.s32.totalorder %s23_s11, %s4395_s1  ;;  %p4401_p12 = scmp.lt.s32.totalorder %s4395_s1, %s4395_s1 }
  0x1e   :  { %p4402_p13 = por %p4401_p12, %p4400_p11 }
  0x20   :  { %p4403_p0 = pnand %p4402_p13, %p4396_p10 }
  0x22   :  { %4406 = shalt.err (!%p4403_p0)
}
  0x23   :  { %s4502_s15 = smov 128   ;;  %s4503_s16 = smov 8  }
  0x24   :  { %28 = dma.hbm_to_vmem [thread:$0]  %s6572_s0, 1024, %s23_s11, [#allocation5], %s4502_s15, %s4502_s15, %s4503_s16  }
  0x25   :  { %s4504_s19 = smov [#allocation9]   ;;  %s4505_s3 = smov [#allocation12]  }
  0x26   :  { %s46_s20 = sshll.u32 %s4504_s19, 4  ;;  %s70_s21 = sshll.u32 %s4505_s3, 4  ;;  %s47_s20 = int_to_ptr.vmem [resolvable:$true] %s46_s20  ;;  %s71_s21 = int_to_ptr.vmem [resolvable:$true] %s70_s21 }
  0x27   :  { %s4415_s22 = scalar_lea.vmem %s47_s20, 8192  ;;  %p4420_p2 = scmp.lt.s32.totalorder %s47_s20, %s47_s20 }
  0x28   :  { %p4416_p1 = scmp.ne.s32.totalorder %s47_s20, %s4415_s22  ;;  %p4421_p3 = scmp.lt.s32.totalorder %s4415_s22, %s4415_s22 }
  0x2a   :  { %p4422_p4 = por %p4421_p3, %p4420_p2 }
  0x2c   :  { %p4423_p5 = pnand %p4422_p4, %p4416_p1 }
  0x2e   :  { %4426 = shalt.err (!%p4423_p5)
}
  0x2f   :  { %52 = dma.hbm_to_vmem [thread:$0]  %s6574_s2, 8192, %s47_s20, [#allocation8], %s4498_s27, %s4498_s27, %s4499_s28  }
  0x30   :  { %s4435_s0 = scalar_lea.vmem %s71_s21, 128  ;;  %p4440_p7 = scmp.lt.s32.totalorder %s71_s21, %s71_s21 }
  0x31   :  { %p4436_p6 = scmp.ne.s32.totalorder %s71_s21, %s4435_s0  ;;  %p4441_p8 = scmp.lt.s32.totalorder %s4435_s0, %s4435_s0 }
  0x33   :  { %p4442_p9 = por %p4441_p8, %p4440_p7 }
  0x35   :  { %p4443_p10 = pnand %p4442_p9, %p4436_p6 }
  0x37   :  { %4446 = shalt.err (!%p4443_p10)
}
  0x38   :  { %s4506_s25 = smov 64   ;;  %s4507_s26 = smov 4  }
  0x39   :  { %76 = dma.hbm_to_vmem [thread:$0]  %s6576_s4, 128, %s71_s21, [#allocation11], %s4506_s25, %s4506_s25, %s4507_s26  }
  0x3a   :  { %s4508_s8 = smov [#allocation13]  }
  0x3b   :  { %s82_s9 = sshll.u32 %s4508_s8, 4  ;;  %s83_s9 = int_to_ptr.vmem [resolvable:$true] %s82_s9 }
  0x3c   :  { %s4455_s10 = scalar_lea.vmem %s83_s9, 2048  ;;  %p4460_p12 = scmp.lt.s32.totalorder %s83_s9, %s83_s9 }
  0x3d   :  { %p4456_p11 = scmp.ne.s32.totalorder %s83_s9, %s4455_s10  ;;  %p4461_p13 = scmp.lt.s32.totalorder %s4455_s10, %s4455_s10 }
  0x3f   :  { %p4462_p0 = por %p4461_p13, %p4460_p12 }
  0x41   :  { %p4463_p1 = pnand %p4462_p0, %p4456_p11 }
  0x43   :  { %4466 = shalt.err (!%p4463_p1)
}
  0x44   :  { %88 = dma.hbm_to_vmem [thread:$0]  %s6577_s5, 2048, %s83_s9, [#allocation14], %s4502_s15, %s4502_s15, %s4503_s16  }
  0x45   :  { %4487 = dma.done.wait [#allocation5], 1024  }
  0x46   :  { %4488 = vsyncadd [#allocation5], 4294966272 }
  0x47   :  { %4489 = dma.done.wait [#allocation8], 16384  }
  0x48   :  { %4490 = vsyncadd [#allocation8], 4294950912 }
  0x49   :  { %4491 = dma.done.wait [#allocation11], 16512  }
  0x4a   :  { %4492 = vsyncadd [#allocation11], 4294950784 }
  0x4b   :  { %4493 = dma.done.wait [#allocation14], 2048  }
  0x4c   :  { %4494 = vsyncadd [#allocation14], 4294965248  ;;  %v6580_v0 = vmov 0.0   ;;  %v235_v1 = vld [vmem:[#allocation7 + $0x1e8] sm:$0xff]  ;;  %v237_v2 = vld [vmem:[#allocation7 + $0x1f8] sm:$0xff]  ;;  %vm4510_vm0 = vmmov 0  }
  0x4d   :  { %331 = vmatprep.mubr.f32.mxu0 %v6580_v0  ;;  %444 = vmatprep.mubr.f32.mxu1 %v6580_v0  ;;  %v234_v3 = vld [vmem:[#allocation7 + $0x1e0] sm:$0xff]  ;;  %v236_v4 = vld [vmem:[#allocation7 + $0x1f0] sm:$0xff]  ;;  %v231_v5 = vld [vmem:[#allocation7 + $0x1c8] sm:$0xff]  ;;  %s4511_s28 = smov [#allocation15]  }
  0x4e   :  { %267 = vmatprep.subr.mxu0 %v235_v1  ;;  %380 = vmatprep.subr.mxu1 %v237_v2  ;;  %v233_v6 = vld [vmem:[#allocation7 + $0x1d8] sm:$0xff]  ;;  %v230_v7 = vld [vmem:[#allocation7 + $0x1c0] sm:$0xff]  ;;  %v232_v8 = vld [vmem:[#allocation7 + $0x1d0] sm:$0xff]  ;;  %s3835_s11 = sshll.u32 %s4511_s28, 4  ;;  %s3836_s11 = int_to_ptr.vmem [resolvable:$true] %s3835_s11 }
  0x4f   :  { %268 = vmatpush1.msra.mxu0 %v234_v3  ;;  %381 = vmatpush1.msra.mxu1 %v236_v4  ;;  %v227_v9 = vld [vmem:[#allocation7 + $0x1a8] sm:$0xff]  ;;  %v229_v10 = vld [vmem:[#allocation7 + $0x1b8] sm:$0xff]  ;;  %v226_v11 = vld [vmem:[#allocation7 + $0x1a0] sm:$0xff]  ;;  %s4467_s12 = scalar_lea.vmem %s3836_s11, 128  ;;  %p4472_p3 = scmp.lt.s32.totalorder %s3836_s11, %s3836_s11 }
  0x50   :  { %269 = vmatprep.subr.mxu0 %v231_v5  ;;  %382 = vmatprep.subr.mxu1 %v233_v6  ;;  %v228_v12 = vld [vmem:[#allocation7 + $0x1b0] sm:$0xff]  ;;  %v223_v13 = vld [vmem:[#allocation7 + $0x188] sm:$0xff]  ;;  %v225_v14 = vld [vmem:[#allocation7 + $0x198] sm:$0xff]  ;;  %p4468_p2 = scmp.ne.s32.totalorder %s3836_s11, %s4467_s12  ;;  %p4473_p4 = scmp.lt.s32.totalorder %s4467_s12, %s4467_s12 }
  0x51   :  { %270 = vmatpush1.msra.mxu0 %v230_v7  ;;  %383 = vmatpush1.msra.mxu1 %v232_v8  ;;  %v222_v15 = vld [vmem:[#allocation7 + $0x180] sm:$0xff]  ;;  %v224_v16 = vld [vmem:[#allocation7 + $0x190] sm:$0xff]  ;;  %v219_v17 = vld [vmem:[#allocation7 + $0x168] sm:$0xff] }
  0x52   :  { %271 = vmatprep.subr.mxu0 %v227_v9  ;;  %384 = vmatprep.subr.mxu1 %v229_v10  ;;  %v221_v18 = vld [vmem:[#allocation7 + $0x178] sm:$0xff]  ;;  %v218_v19 = vld [vmem:[#allocation7 + $0x160] sm:$0xff]  ;;  %v220_v20 = vld [vmem:[#allocation7 + $0x170] sm:$0xff]  ;;  %p4474_p5 = por %p4473_p4, %p4472_p3 }
  0x53   :  { %272 = vmatpush1.msra.mxu0 %v226_v11  ;;  %385 = vmatpush1.msra.mxu1 %v228_v12  ;;  %v215_v21 = vld [vmem:[#allocation7 + $0x148] sm:$0xff]  ;;  %v217_v22 = vld [vmem:[#allocation7 + $0x158] sm:$0xff]  ;;  %v214_v23 = vld [vmem:[#allocation7 + $0x140] sm:$0xff] }
  0x54   :  { %273 = vmatprep.subr.mxu0 %v223_v13  ;;  %386 = vmatprep.subr.mxu1 %v225_v14  ;;  %v216_v24 = vld [vmem:[#allocation7 + $0x150] sm:$0xff]  ;;  %v211_v25 = vld [vmem:[#allocation7 + $0x128] sm:$0xff]  ;;  %v213_v26 = vld [vmem:[#allocation7 + $0x138] sm:$0xff]  ;;  %p4475_p6 = pnand %p4474_p5, %p4468_p2 }
  0x55   :  { %274 = vmatpush1.msra.mxu0 %v222_v15  ;;  %387 = vmatpush1.msra.mxu1 %v224_v16  ;;  %v210_v27 = vld [vmem:[#allocation7 + $0x120] sm:$0xff]  ;;  %v212_v28 = vld [vmem:[#allocation7 + $0x130] sm:$0xff]  ;;  %v207_v29 = vld [vmem:[#allocation7 + $0x108] sm:$0xff] }
  0x56   :  { %275 = vmatprep.subr.mxu0 %v219_v17  ;;  %388 = vmatprep.subr.mxu1 %v221_v18  ;;  %v209_v30 = vld [vmem:[#allocation7 + $0x118] sm:$0xff]  ;;  %v206_v31 = vld [vmem:[#allocation7 + $0x100] sm:$0xff]  ;;  %v208_v32 = vld [vmem:[#allocation7 + $0x110] sm:$0xff] }
  0x57   :  { %276 = vmatpush1.msra.mxu0 %v218_v19  ;;  %389 = vmatpush1.msra.mxu1 %v220_v20  ;;  %v203_v33 = vld [vmem:[#allocation7 + $0xe8] sm:$0xff]  ;;  %v205_v34 = vld [vmem:[#allocation7 + $0xf8] sm:$0xff]  ;;  %v202_v35 = vld [vmem:[#allocation7 + $0xe0] sm:$0xff] }
  0x58   :  { %277 = vmatprep.subr.mxu0 %v215_v21  ;;  %390 = vmatprep.subr.mxu1 %v217_v22  ;;  %v204_v36 = vld [vmem:[#allocation7 + $0xf0] sm:$0xff]  ;;  %v199_v37 = vld [vmem:[#allocation7 + $0xc8] sm:$0xff]  ;;  %v201_v38 = vld [vmem:[#allocation7 + $0xd8] sm:$0xff] }
  0x59   :  { %278 = vmatpush1.msra.mxu0 %v214_v23  ;;  %391 = vmatpush1.msra.mxu1 %v216_v24  ;;  %v198_v39 = vld [vmem:[#allocation7 + $0xc0] sm:$0xff]  ;;  %v200_v40 = vld [vmem:[#allocation7 + $0xd0] sm:$0xff]  ;;  %v195_v41 = vld [vmem:[#allocation7 + $0xa8] sm:$0xff] }
  0x5a   :  { %279 = vmatprep.subr.mxu0 %v211_v25  ;;  %392 = vmatprep.subr.mxu1 %v213_v26  ;;  %v197_v42 = vld [vmem:[#allocation7 + $0xb8] sm:$0xff]  ;;  %v194_v43 = vld [vmem:[#allocation7 + $0xa0] sm:$0xff]  ;;  %v196_v44 = vld [vmem:[#allocation7 + $0xb0] sm:$0xff] }
  0x5b   :  { %280 = vmatpush1.msra.mxu0 %v210_v27  ;;  %393 = vmatpush1.msra.mxu1 %v212_v28  ;;  %v191_v45 = vld [vmem:[#allocation7 + $0x88] sm:$0xff]  ;;  %v193_v46 = vld [vmem:[#allocation7 + $0x98] sm:$0xff]  ;;  %v190_v47 = vld [vmem:[#allocation7 + $0x80] sm:$0xff] }
  0x5c   :  { %281 = vmatprep.subr.mxu0 %v207_v29  ;;  %394 = vmatprep.subr.mxu1 %v209_v30  ;;  %v192_v48 = vld [vmem:[#allocation7 + $0x90] sm:$0xff]  ;;  %v187_v49 = vld [vmem:[#allocation7 + $0x68] sm:$0xff]  ;;  %v189_v50 = vld [vmem:[#allocation7 + $0x78] sm:$0xff] }
  0x5d   :  { %282 = vmatpush1.msra.mxu0 %v206_v31  ;;  %395 = vmatpush1.msra.mxu1 %v208_v32  ;;  %v186_v51 = vld [vmem:[#allocation7 + $0x60] sm:$0xff]  ;;  %v188_v52 = vld [vmem:[#allocation7 + $0x70] sm:$0xff]  ;;  %v183_v53 = vld [vmem:[#allocation7 + $0x48] sm:$0xff] }
  0x5e   :  { %283 = vmatprep.subr.mxu0 %v203_v33  ;;  %396 = vmatprep.subr.mxu1 %v205_v34  ;;  %v185_v54 = vld [vmem:[#allocation7 + $0x58] sm:$0xff]  ;;  %v182_v55 = vld [vmem:[#allocation7 + $0x40] sm:$0xff]  ;;  %v184_v56 = vld [vmem:[#allocation7 + $0x50] sm:$0xff] }
  0x5f   :  { %284 = vmatpush1.msra.mxu0 %v202_v35  ;;  %397 = vmatpush1.msra.mxu1 %v204_v36  ;;  %v179_v57 = vld [vmem:[#allocation7 + $0x28] sm:$0xff]  ;;  %v181_v58 = vld [vmem:[#allocation7 + $0x38] sm:$0xff]  ;;  %v178_v59 = vld [vmem:[#allocation7 + $0x20] sm:$0xff] }
  0x60   :  { %285 = vmatprep.subr.mxu0 %v199_v37  ;;  %398 = vmatprep.subr.mxu1 %v201_v38  ;;  %v180_v60 = vld [vmem:[#allocation7 + $0x30] sm:$0xff]  ;;  %v175_v61 = vld [vmem:[#allocation7 + $0x8] sm:$0xff]  ;;  %v177_v62 = vld [vmem:[#allocation7 + $0x18] sm:$0xff] }
  0x61   :  { %286 = vmatpush1.msra.mxu0 %v198_v39  ;;  %399 = vmatpush1.msra.mxu1 %v200_v40  ;;  %v174_v63 = vld [vmem:[#allocation7] sm:$0xff]  ;;  %v176_v1 = vld [vmem:[#allocation7 + $0x10] sm:$0xff]  ;;  %v4587_v3 = vld [vmem:[#allocation10 + $0x1e8] sm:$0xff] }
  0x62   :  { %287 = vmatprep.subr.mxu0 %v195_v41  ;;  %400 = vmatprep.subr.mxu1 %v197_v42  ;;  %v238_v2 = vld [vmem:[#allocation4] sm:$0xff]  ;;  %6786 = vst [vmem:[#allocation21_spill] sm:$0xff] %v4587_v3  ;;  %v4589_v4 = vld [vmem:[#allocation10 + $0x1f8] sm:$0xff]  ;;  %v4593_v6 = vld [vmem:[#allocation10 + $0x1f0] sm:$0xff] }
  0x63   :  { %288 = vmatpush1.msra.mxu0 %v194_v43  ;;  %401 = vmatpush1.msra.mxu1 %v196_v44  ;;  %6787 = vst [vmem:[#allocation22_spill] sm:$0xff] %v4589_v4  ;;  %v4591_v5 = vld [vmem:[#allocation10 + $0x1e0] sm:$0xff]  ;;  %v4595_v7 = vld [vmem:[#allocation10 + $0x1c8] sm:$0xff]  ;;  %v4597_v8 = vld [vmem:[#allocation10 + $0x1d8] sm:$0xff] }
  0x64   :  { %289 = vmatprep.subr.mxu0 %v191_v45  ;;  %402 = vmatprep.subr.mxu1 %v193_v46  ;;  %v4603_v9 = vld [vmem:[#allocation10 + $0x1c0] sm:$0xff]  ;;  %v4605_v10 = vld [vmem:[#allocation10 + $0x1d0] sm:$0xff]  ;;  %v239_v11 = vld [vmem:[#allocation4 + $0x8] sm:$0xff] }
  0x65   :  { %290 = vmatpush1.msra.mxu0 %v190_v47  ;;  %403 = vmatpush1.msra.mxu1 %v192_v48  ;;  %v4611_v12 = vld [vmem:[#allocation10 + $0x1a8] sm:$0xff]  ;;  %v4613_v13 = vld [vmem:[#allocation10 + $0x1b8] sm:$0xff]  ;;  %v4617_v14 = vld [vmem:[#allocation10 + $0x1a0] sm:$0xff] }
  0x66   :  { %291 = vmatprep.subr.mxu0 %v187_v49  ;;  %404 = vmatprep.subr.mxu1 %v189_v50  ;;  %v4619_v15 = vld [vmem:[#allocation10 + $0x1b0] sm:$0xff]  ;;  %v4621_v16 = vld [vmem:[#allocation10 + $0x188] sm:$0xff]  ;;  %v4623_v17 = vld [vmem:[#allocation10 + $0x198] sm:$0xff] }
  0x67   :  { %292 = vmatpush1.msra.mxu0 %v186_v51  ;;  %405 = vmatpush1.msra.mxu1 %v188_v52  ;;  %v4629_v18 = vld [vmem:[#allocation10 + $0x180] sm:$0xff]  ;;  %v4631_v19 = vld [vmem:[#allocation10 + $0x190] sm:$0xff]  ;;  %v4637_v21 = vld [vmem:[#allocation10 + $0x168] sm:$0xff] }
  0x68   :  { %293 = vmatprep.subr.mxu0 %v183_v53  ;;  %406 = vmatprep.subr.mxu1 %v185_v54  ;;  %v240_v20 = vld [vmem:[#allocation4 + $0x10] sm:$0xff]  ;;  %v4639_v22 = vld [vmem:[#allocation10 + $0x178] sm:$0xff]  ;;  %v4643_v23 = vld [vmem:[#allocation10 + $0x160] sm:$0xff] }
  0x69   :  { %294 = vmatpush1.msra.mxu0 %v182_v55  ;;  %407 = vmatpush1.msra.mxu1 %v184_v56  ;;  %v4645_v24 = vld [vmem:[#allocation10 + $0x170] sm:$0xff]  ;;  %v4647_v25 = vld [vmem:[#allocation10 + $0x148] sm:$0xff]  ;;  %v4649_v26 = vld [vmem:[#allocation10 + $0x158] sm:$0xff] }
  0x6a   :  { %295 = vmatprep.subr.mxu0 %v179_v57  ;;  %408 = vmatprep.subr.mxu1 %v181_v58  ;;  %v4655_v27 = vld [vmem:[#allocation10 + $0x140] sm:$0xff]  ;;  %v4657_v28 = vld [vmem:[#allocation10 + $0x150] sm:$0xff]  ;;  %v241_v29 = vld [vmem:[#allocation4 + $0x18] sm:$0xff] }
  0x6b   :  { %296 = vmatpush1.msra.mxu0 %v178_v59  ;;  %409 = vmatpush1.msra.mxu1 %v180_v60  ;;  %v4663_v30 = vld [vmem:[#allocation10 + $0x128] sm:$0xff]  ;;  %v4665_v31 = vld [vmem:[#allocation10 + $0x138] sm:$0xff]  ;;  %v4669_v32 = vld [vmem:[#allocation10 + $0x120] sm:$0xff] }
  0x6c   :  { %297 = vmatprep.subr.mxu0 %v175_v61  ;;  %410 = vmatprep.subr.mxu1 %v177_v62  ;;  %v4671_v33 = vld [vmem:[#allocation10 + $0x130] sm:$0xff]  ;;  %v4673_v34 = vld [vmem:[#allocation10 + $0x108] sm:$0xff]  ;;  %v4675_v35 = vld [vmem:[#allocation10 + $0x118] sm:$0xff] }
  0x6d   :  { %298 = vmatpush1.msra.mxu0 %v174_v63  ;;  %411 = vmatpush1.msra.mxu1 %v176_v1  ;;  %v4681_v36 = vld [vmem:[#allocation10 + $0x100] sm:$0xff]  ;;  %v4683_v37 = vld [vmem:[#allocation10 + $0x110] sm:$0xff]  ;;  %v4689_v39 = vld [vmem:[#allocation10 + $0xe8] sm:$0xff] }
  0x6e   :  { %332 = vmatmul.mubr.f32.vlgmr.msra.gmra.mxu0 %v238_v2  ;;  %445 = vmatmul.mubr.f32.vlgmr.msra.gmra.mxu1 %v238_v2  ;;  %v242_v38 = vld [vmem:[#allocation4 + $0x20] sm:$0xff]  ;;  %v4691_v40 = vld [vmem:[#allocation10 + $0xf8] sm:$0xff]  ;;  %v4697_v42 = vld [vmem:[#allocation10 + $0xf0] sm:$0xff] }
  0x6f   :  { %529 = vmatprep.subr.mxu0 %v4587_v3  ;;  %600 = vmatprep.subr.mxu1 %v4589_v4  ;;  %v4695_v41 = vld [vmem:[#allocation10 + $0xe0] sm:$0xff]  ;;  %v4699_v43 = vld [vmem:[#allocation10 + $0xc8] sm:$0xff]  ;;  %v4701_v44 = vld [vmem:[#allocation10 + $0xd8] sm:$0xff] }
  0x70   :  { %530 = vmatpush1.msra.mxu0 %v4591_v5  ;;  %601 = vmatpush1.msra.mxu1 %v4593_v6  ;;  %v4707_v45 = vld [vmem:[#allocation10 + $0xc0] sm:$0xff]  ;;  %v4709_v46 = vld [vmem:[#allocation10 + $0xd0] sm:$0xff]  ;;  %v243_v47 = vld [vmem:[#allocation4 + $0x28] sm:$0xff] }
  0x71   :  { %531 = vmatprep.subr.mxu0 %v4595_v7  ;;  %602 = vmatprep.subr.mxu1 %v4597_v8  ;;  %v4715_v48 = vld [vmem:[#allocation10 + $0xa8] sm:$0xff]  ;;  %v4717_v49 = vld [vmem:[#allocation10 + $0xb8] sm:$0xff]  ;;  %v4721_v50 = vld [vmem:[#allocation10 + $0xa0] sm:$0xff] }
  0x72   :  { %337 = vmatprep.mubr.f32.mxu0 %v6580_v0  ;;  %450 = vmatprep.mubr.f32.mxu1 %v6580_v0  ;;  %v4723_v51 = vld [vmem:[#allocation10 + $0xb0] sm:$0xff]  ;;  %v4725_v52 = vld [vmem:[#allocation10 + $0x88] sm:$0xff]  ;;  %v4727_v53 = vld [vmem:[#allocation10 + $0x98] sm:$0xff] }
  0x73   :  { %532 = vmatpush1.msra.mxu0 %v4603_v9  ;;  %603 = vmatpush1.msra.mxu1 %v4605_v10  ;;  %6788 = vst [vmem:[#allocation23_spill] sm:$0xff] %v4723_v51  ;;  %6789 = vst [vmem:[#allocation24_spill] sm:$0xff] %v4725_v52  ;;  %v4733_v54 = vld [vmem:[#allocation10 + $0x80] sm:$0xff]  ;;  %v4735_v55 = vld [vmem:[#allocation10 + $0x90] sm:$0xff] }
  0x74   :  { %338 = vmatmul.mubr.f32.gmra.mxu0 %v239_v11  ;;  %451 = vmatmul.mubr.f32.gmra.mxu1 %v239_v11  ;;  %6790 = vst [vmem:[#allocation25_spill] sm:$0xff] %v4727_v53  ;;  %6791 = vst [vmem:[#allocation26_spill] sm:$0xff] %v4733_v54  ;;  %v244_v56 = vld [vmem:[#allocation4 + $0x30] sm:$0xff]  ;;  %v4741_v57 = vld [vmem:[#allocation10 + $0x68] sm:$0xff] }
  0x75   :  { %533 = vmatprep.subr.mxu0 %v4611_v12  ;;  %604 = vmatprep.subr.mxu1 %v4613_v13  ;;  %6792 = vst [vmem:[#allocation27_spill] sm:$0xff] %v4735_v55  ;;  %6793 = vst [vmem:[#allocation28_spill] sm:$0xff] %v4741_v57  ;;  %v4743_v58 = vld [vmem:[#allocation10 + $0x78] sm:$0xff]  ;;  %v4747_v59 = vld [vmem:[#allocation10 + $0x60] sm:$0xff] }
  0x76   :  { %534 = vmatpush1.msra.mxu0 %v4617_v14  ;;  %605 = vmatpush1.msra.mxu1 %v4619_v15  ;;  %6794 = vst [vmem:[#allocation29_spill] sm:$0xff] %v4743_v58  ;;  %6795 = vst [vmem:[#allocation30_spill] sm:$0xff] %v4747_v59  ;;  %v4749_v60 = vld [vmem:[#allocation10 + $0x70] sm:$0xff]  ;;  %v4751_v61 = vld [vmem:[#allocation10 + $0x48] sm:$0xff] }
  0x77   :  { %535 = vmatprep.subr.mxu0 %v4621_v16  ;;  %606 = vmatprep.subr.mxu1 %v4623_v17  ;;  %6796 = vst [vmem:[#allocation31_spill] sm:$0xff] %v4749_v60  ;;  %6797 = vst [vmem:[#allocation32_spill] sm:$0xff] %v4751_v61  ;;  %v4753_v62 = vld [vmem:[#allocation10 + $0x58] sm:$0xff]  ;;  %v4759_v63 = vld [vmem:[#allocation10 + $0x40] sm:$0xff] }
  0x78   :  { %343 = vmatprep.mubr.f32.mxu0 %v6580_v0  ;;  %456 = vmatprep.mubr.f32.mxu1 %v6580_v0  ;;  %6798 = vst [vmem:[#allocation33_spill] sm:$0xff] %v4753_v62  ;;  %6799 = vst [vmem:[#allocation34_spill] sm:$0xff] %v4759_v63  ;;  %v4761_v1 = vld [vmem:[#allocation10 + $0x50] sm:$0xff]  ;;  %v245_v2 = vld [vmem:[#allocation4 + $0x38] sm:$0xff] }
  0x79   :  { %536 = vmatpush1.msra.mxu0 %v4629_v18  ;;  %607 = vmatpush1.msra.mxu1 %v4631_v19  ;;  %6800 = vst [vmem:[#allocation35_spill] sm:$0xff] %v4761_v1  ;;  %v4767_v11 = vld [vmem:[#allocation10 + $0x28] sm:$0xff] }
  0x7a   :  { %344 = vmatmul.mubr.f32.gmra.mxu0 %v240_v20  ;;  %457 = vmatmul.mubr.f32.gmra.mxu1 %v240_v20  ;;  %6801 = vst [vmem:[#allocation36_spill] sm:$0xff] %v4767_v11  ;;  %v4769_v20 = vld [vmem:[#allocation10 + $0x38] sm:$0xff] }
  0x7b   :  { %537 = vmatprep.subr.mxu0 %v4637_v21  ;;  %608 = vmatprep.subr.mxu1 %v4639_v22  ;;  %6802 = vst [vmem:[#allocation37_spill] sm:$0xff] %v4769_v20 }
  0x7c   :  { %538 = vmatpush1.msra.mxu0 %v4643_v23  ;;  %609 = vmatpush1.msra.mxu1 %v4645_v24 }
  0x7d   :  { %539 = vmatprep.subr.mxu0 %v4647_v25  ;;  %610 = vmatprep.subr.mxu1 %v4649_v26 }
  0x7e   :  { %349 = vmatprep.mubr.f32.mxu0 %v6580_v0  ;;  %462 = vmatprep.mubr.f32.mxu1 %v6580_v0 }
  0x7f   :  { %540 = vmatpush1.msra.mxu0 %v4655_v27  ;;  %611 = vmatpush1.msra.mxu1 %v4657_v28 }
  0x80   :  { %350 = vmatmul.mubr.f32.gmra.mxu0 %v241_v29  ;;  %463 = vmatmul.mubr.f32.gmra.mxu1 %v241_v29  ;;  %v4773_v29 = vld [vmem:[#allocation10 + $0x20] sm:$0xff] }
  0x81   :  { %541 = vmatprep.subr.mxu0 %v4663_v30  ;;  %612 = vmatprep.subr.mxu1 %v4665_v31  ;;  %6803 = vst [vmem:[#allocation38_spill] sm:$0xff] %v4773_v29 }
  0x82   :  { %542 = vmatpush1.msra.mxu0 %v4669_v32  ;;  %613 = vmatpush1.msra.mxu1 %v4671_v33 }
  0x83   :  { %543 = vmatprep.subr.mxu0 %v4673_v34  ;;  %614 = vmatprep.subr.mxu1 %v4675_v35 }
  0x84   :  { %355 = vmatprep.mubr.f32.mxu0 %v6580_v0  ;;  %468 = vmatprep.mubr.f32.mxu1 %v6580_v0 }
  0x85   :  { %544 = vmatpush1.msra.mxu0 %v4681_v36  ;;  %615 = vmatpush1.msra.mxu1 %v4683_v37 }
  0x86   :  { %356 = vmatmul.mubr.f32.gmra.mxu0 %v242_v38  ;;  %469 = vmatmul.mubr.f32.gmra.mxu1 %v242_v38  ;;  %v4775_v38 = vld [vmem:[#allocation10 + $0x30] sm:$0xff] }
  0x87   :  { %545 = vmatprep.subr.mxu0 %v4689_v39  ;;  %616 = vmatprep.subr.mxu1 %v4691_v40  ;;  %6804 = vst [vmem:[#allocation39_spill] sm:$0xff] %v4775_v38 }
  0x88   :  { %546 = vmatpush1.msra.mxu0 %v4695_v41  ;;  %617 = vmatpush1.msra.mxu1 %v4697_v42 }
  0x89   :  { %547 = vmatprep.subr.mxu0 %v4699_v43  ;;  %618 = vmatprep.subr.mxu1 %v4701_v44 }
  0x8a   :  { %361 = vmatprep.mubr.f32.mxu0 %v6580_v0  ;;  %474 = vmatprep.mubr.f32.mxu1 %v6580_v0 }
  0x8b   :  { %548 = vmatpush1.msra.mxu0 %v4707_v45  ;;  %619 = vmatpush1.msra.mxu1 %v4709_v46 }
  0x8c   :  { %362 = vmatmul.mubr.f32.gmra.mxu0 %v243_v47  ;;  %475 = vmatmul.mubr.f32.gmra.mxu1 %v243_v47  ;;  %v4777_v47 = vld [vmem:[#allocation10 + $0x8] sm:$0xff] }
  0x8d   :  { %549 = vmatprep.subr.mxu0 %v4715_v48  ;;  %620 = vmatprep.subr.mxu1 %v4717_v49  ;;  %6805 = vst [vmem:[#allocation40_spill] sm:$0xff] %v4777_v47 }
  0x8e   :  { %550 = vmatpush1.msra.mxu0 %v4721_v50  ;;  %621 = vmatpush1.msra.mxu1 %v4723_v51 }
  0x8f   :  { %551 = vmatprep.subr.mxu0 %v4725_v52  ;;  %622 = vmatprep.subr.mxu1 %v4727_v53 }
  0x90   :  { %367 = vmatprep.mubr.f32.mxu0 %v6580_v0  ;;  %480 = vmatprep.mubr.f32.mxu1 %v6580_v0 }
  0x91   :  { %552 = vmatpush1.msra.mxu0 %v4733_v54  ;;  %623 = vmatpush1.msra.mxu1 %v4735_v55 }
  0x92   :  { %368 = vmatmul.mubr.f32.gmra.mxu0 %v244_v56  ;;  %481 = vmatmul.mubr.f32.gmra.mxu1 %v244_v56  ;;  %v4779_v56 = vld [vmem:[#allocation10 + $0x18] sm:$0xff] }
  0x93   :  { %553 = vmatprep.subr.mxu0 %v4741_v57  ;;  %624 = vmatprep.subr.mxu1 %v4743_v58  ;;  %6806 = vst [vmem:[#allocation41_spill] sm:$0xff] %v4779_v56 }
  0x94   :  { %554 = vmatpush1.msra.mxu0 %v4747_v59  ;;  %625 = vmatpush1.msra.mxu1 %v4749_v60 }
  0x95   :  { %555 = vmatprep.subr.mxu0 %v4751_v61  ;;  %626 = vmatprep.subr.mxu1 %v4753_v62 }
  0x96   :  { %373 = vmatprep.mubr.f32.mxu0 %v6580_v0  ;;  %486 = vmatprep.mubr.f32.mxu1 %v6580_v0  ;;  %v4783_v0 = vld [vmem:[#allocation10] sm:$0xff] }
  0x97   :  { %556 = vmatpush1.msra.mxu0 %v4759_v63  ;;  %627 = vmatpush1.msra.mxu1 %v4761_v1  ;;  %6807 = vst [vmem:[#allocation42_spill] sm:$0xff] %v4783_v0  ;;  %v4787_v1 = vld [vmem:[#allocation10 + $0x10] sm:$0xff] }
  0x98   :  { %374 = vmatmul.mubr.f32.gmra.mxu0 %v245_v2  ;;  %487 = vmatmul.mubr.f32.gmra.mxu1 %v245_v2  ;;  %6808 = vst [vmem:[#allocation43_spill] sm:$0xff] %v4787_v1  ;;  %v6809_v2 = vmov 0.0  }
  0x99   :  { %557 = vmatprep.subr.mxu0 %v4767_v11  ;;  %628 = vmatprep.subr.mxu1 %v4769_v20 }
  0x9a   :  { %558 = vmatpush1.msra.mxu0 %v4773_v29  ;;  %629 = vmatpush1.msra.mxu1 %v4775_v38 }
  0x9b   :  { %559 = vmatprep.subr.mxu0 %v4777_v47  ;;  %630 = vmatprep.subr.mxu1 %v4779_v56 }
  0x9c   :  { %560 = vmatpush1.msra.mxu0 %v4783_v0  ;;  %593 = vmatprep.mubr.f32.mxu0 %v6809_v2 }
  0x9d   :  { %631 = vmatpush1.msra.mxu1 %v4787_v1  ;;  %664 = vmatprep.mubr.f32.mxu1 %v6809_v2 }
  0x9e   :  { %594 = vmatmul.mubr.f32.vlgmr.msra.gmra.mxu0 %v6809_v2  ;;  %665 = vmatmul.mubr.f32.vlgmr.msra.gmra.mxu1 %v6809_v2 }
  0x9f   :  { %704 = vmatprep.subr.mxu0 %v4587_v3  ;;  %775 = vmatprep.subr.mxu1 %v4589_v4 }
  0xa0   :  { %705 = vmatpush1.msra.mxu0 %v4591_v5  ;;  %776 = vmatpush1.msra.mxu1 %v4593_v6 }
  0xa1   :  { %706 = vmatprep.subr.mxu0 %v4595_v7  ;;  %777 = vmatprep.subr.mxu1 %v4597_v8 }
  0xa2   :  { %707 = vmatpush1.msra.mxu0 %v4603_v9  ;;  %778 = vmatpush1.msra.mxu1 %v4605_v10 }
  0xa3   :  { %708 = vmatprep.subr.mxu0 %v4611_v12  ;;  %779 = vmatprep.subr.mxu1 %v4613_v13 }
  0xa4   :  { %709 = vmatpush1.msra.mxu0 %v4617_v14  ;;  %780 = vmatpush1.msra.mxu1 %v4619_v15 }
  0xa5   :  { %710 = vmatprep.subr.mxu0 %v4621_v16  ;;  %781 = vmatprep.subr.mxu1 %v4623_v17 }
  0xa6   :  { %711 = vmatpush1.msra.mxu0 %v4629_v18  ;;  %782 = vmatpush1.msra.mxu1 %v4631_v19 }
  0xa7   :  { %712 = vmatprep.subr.mxu0 %v4637_v21  ;;  %783 = vmatprep.subr.mxu1 %v4639_v22 }
  0xa8   :  { %713 = vmatpush1.msra.mxu0 %v4643_v23  ;;  %784 = vmatpush1.msra.mxu1 %v4645_v24 }
  0xa9   :  { %714 = vmatprep.subr.mxu0 %v4647_v25  ;;  %785 = vmatprep.subr.mxu1 %v4649_v26 }
  0xaa   :  { %715 = vmatpush1.msra.mxu0 %v4655_v27  ;;  %786 = vmatpush1.msra.mxu1 %v4657_v28 }
  0xab   :  { %716 = vmatprep.subr.mxu0 %v4663_v30  ;;  %787 = vmatprep.subr.mxu1 %v4665_v31 }
  0xac   :  { %717 = vmatpush1.msra.mxu0 %v4669_v32  ;;  %788 = vmatpush1.msra.mxu1 %v4671_v33 }
  0xad   :  { %718 = vmatprep.subr.mxu0 %v4673_v34  ;;  %789 = vmatprep.subr.mxu1 %v4675_v35 }
  0xae   :  { %719 = vmatpush1.msra.mxu0 %v4681_v36  ;;  %790 = vmatpush1.msra.mxu1 %v4683_v37 }
  0xaf   :  { %720 = vmatprep.subr.mxu0 %v4689_v39  ;;  %791 = vmatprep.subr.mxu1 %v4691_v40 }
  0xb0   :  { %721 = vmatpush1.msra.mxu0 %v4695_v41  ;;  %792 = vmatpush1.msra.mxu1 %v4697_v42 }
  0xb1   :  { %722 = vmatprep.subr.mxu0 %v4699_v43  ;;  %793 = vmatprep.subr.mxu1 %v4701_v44 }
  0xb2   :  { %723 = vmatpush1.msra.mxu0 %v4707_v45  ;;  %794 = vmatpush1.msra.mxu1 %v4709_v46 }
  0xb3   :  { %724 = vmatprep.subr.mxu0 %v4715_v48  ;;  %795 = vmatprep.subr.mxu1 %v4717_v49 }
  0xb4   :  { %725 = vmatpush1.msra.mxu0 %v4721_v50  ;;  %796 = vmatpush1.msra.mxu1 %v4723_v51 }
  0xb5   :  { %726 = vmatprep.subr.mxu0 %v4725_v52  ;;  %797 = vmatprep.subr.mxu1 %v4727_v53  ;;  %v6810_v52 = vld [vmem:[#allocation35_spill] sm:$0xff] }
  0xb6   :  { %727 = vmatpush1.msra.mxu0 %v4733_v54  ;;  %798 = vmatpush1.msra.mxu1 %v4735_v55 }
  0xb7   :  { %728 = vmatprep.subr.mxu0 %v4741_v57  ;;  %799 = vmatprep.subr.mxu1 %v4743_v58 }
  0xb8   :  { %729 = vmatpush1.msra.mxu0 %v4747_v59  ;;  %800 = vmatpush1.msra.mxu1 %v4749_v60 }
  0xb9   :  { %730 = vmatprep.subr.mxu0 %v4751_v61  ;;  %801 = vmatprep.subr.mxu1 %v4753_v62 }
  0xba   :  { %731 = vmatpush1.msra.mxu0 %v4759_v63  ;;  %802 = vmatpush1.msra.mxu1 %v6810_v52 }
  0xbb   :  { %732 = vmatprep.subr.mxu0 %v4767_v11  ;;  %803 = vmatprep.subr.mxu1 %v4769_v20  ;;  %v247_v20 = vlaneseq  ;;  %v173_v11 = vld [vmem:[#allocation12] sm:$0xf] }
  0xbc   :  { %733 = vmatpush1.msra.mxu0 %v4773_v29  ;;  %804 = vmatpush1.msra.mxu1 %v4775_v38 }
  0xbd   :  { %734 = vmatprep.subr.mxu0 %v4777_v47  ;;  %805 = vmatprep.subr.mxu1 %v4779_v56  ;;  %v4865_v29 = vshrl.u32 %v247_v20, 7 }
  0xbe   :  { %735 = vmatpush1.msra.mxu0 %v4783_v0  ;;  %768 = vmatprep.mubr.f32.mxu0 %v6809_v2 }
  0xbf   :  { %806 = vmatpush1.msra.mxu1 %v4787_v1  ;;  %839 = vmatprep.mubr.f32.mxu1 %v6809_v2  ;;  %6811 = vst [vmem:[#allocation44_spill] sm:$0xff] %v4865_v29  ;;  %v6619_v56 = vsub.s32 0, %v4865_v29  ;;  %v6622_v0 = vsub.s32 2, %v4865_v29 }
  0xc0   :  { %879 = vmatprep.subr.mxu0 %v4587_v3  ;;  %950 = vmatprep.subr.mxu1 %v4589_v4  ;;  %v6629_v3 = vsub.s32 1, %v4865_v29  ;;  %v6630_v4 = vsub.s32 3, %v4865_v29 }
  0xc1   :  { %v250_v20 = vrot.slane %v173_v11, %v6619_v56  ;;  %v4883_v2 = vrot.slane %v173_v11, %v6622_v0 }
  0xc2   :  { %v254_v61 = vrot.slane %v173_v11, %v6629_v3  ;;  %v4889_v60 = vrot.slane %v173_v11, %v6630_v4 }
 0x12e   :  { %v4867_v38 = vpop.f32.mrf.mxu0  ;;  %v4869_v47 = vpop.f32.mrf.mxu1 }
 0x130   :  { %v4873_v52 = vpop.f32.mrf.mxu0  ;;  %v4875_v1 = vpop.f32.mrf.mxu1 }
 0x134   :  { %v339_v63 = vpop.f32.mrf.mxu0  ;;  %v452_v62 = vpop.f32.mrf.mxu1 }
 0x135   :  { %v4891_v59 = vadd.f32 %v339_v63, %v250_v20  ;;  %v4894_v58 = vadd.f32 %v452_v62, %v4883_v2 }
 0x136   :  { %v341_v57 = vpop.f32.mrf.mxu0  ;;  %v454_v56 = vpop.f32.mrf.mxu1 }
 0x137   :  { %6812 = vst [vmem:[#allocation45_spill] sm:$0xff] %v4894_v58  ;;  %v4896_v55 = vadd.f32 %v341_v57, %v254_v61  ;;  %v4899_v0 = vadd.f32 %v454_v56, %v4889_v60 }
 0x139   :  { %6813 = vst [vmem:[#allocation46_spill] sm:$0xff] %v4896_v55  ;;  %6814 = vst [vmem:[#allocation47_spill] sm:$0xff] %v4899_v0 }
 0x13a   :  { %v345_v54 = vpop.f32.mrf.mxu0  ;;  %v458_v53 = vpop.f32.mrf.mxu1 }
 0x13b   :  { %v4901_v51 = vadd.f32 %v345_v54, %v250_v20  ;;  %v4904_v3 = vadd.f32 %v458_v53, %v4883_v2 }
 0x13c   :  { %v347_v11 = vpop.f32.mrf.mxu0  ;;  %v460_v63 = vpop.f32.mrf.mxu1 }
 0x13d   :  { %6815 = vst [vmem:[#allocation48_spill] sm:$0xff] %v4901_v51  ;;  %6816 = vst [vmem:[#allocation49_spill] sm:$0xff] %v4904_v3  ;;  %v4906_v4 = vadd.f32 %v347_v11, %v254_v61  ;;  %v4909_v62 = vadd.f32 %v460_v63, %v4889_v60 }
 0x13f   :  { %6817 = vst [vmem:[#allocation50_spill] sm:$0xff] %v4906_v4  ;;  %6818 = vst [vmem:[#allocation51_spill] sm:$0xff] %v4909_v62 }
 0x140   :  { %v351_v29 = vpop.f32.mrf.mxu0  ;;  %v464_v57 = vpop.f32.mrf.mxu1 }
 0x141   :  { %v4911_v58 = vadd.f32 %v351_v29, %v250_v20  ;;  %v4914_v56 = vadd.f32 %v464_v57, %v4883_v2 }
 0x142   :  { %v353_v0 = vpop.f32.mrf.mxu0  ;;  %v466_v54 = vpop.f32.mrf.mxu1 }
 0x143   :  { %6819 = vst [vmem:[#allocation52_spill] sm:$0xff] %v4911_v58  ;;  %6820 = vst [vmem:[#allocation53_spill] sm:$0xff] %v4914_v56  ;;  %v4916_v51 = vadd.f32 %v353_v0, %v254_v61  ;;  %v4919_v53 = vadd.f32 %v466_v54, %v4889_v60 }
 0x145   :  { %6821 = vst [vmem:[#allocation54_spill] sm:$0xff] %v4916_v51  ;;  %6822 = vst [vmem:[#allocation55_spill] sm:$0xff] %v4919_v53 }
 0x146   :  { %v357_v3 = vpop.f32.mrf.mxu0  ;;  %v470_v11 = vpop.f32.mrf.mxu1 }
 0x147   :  { %v4921_v4 = vadd.f32 %v357_v3, %v250_v20  ;;  %v4924_v63 = vadd.f32 %v470_v11, %v4883_v2 }
 0x148   :  { %v359_v62 = vpop.f32.mrf.mxu0  ;;  %v472_v29 = vpop.f32.mrf.mxu1 }
 0x149   :  { %6823 = vst [vmem:[#allocation56_spill] sm:$0xff] %v4921_v4  ;;  %6824 = vst [vmem:[#allocation57_spill] sm:$0xff] %v4924_v63  ;;  %v4926_v58 = vadd.f32 %v359_v62, %v254_v61  ;;  %v4929_v57 = vadd.f32 %v472_v29, %v4889_v60 }
 0x14b   :  { %6825 = vst [vmem:[#allocation58_spill] sm:$0xff] %v4926_v58  ;;  %6826 = vst [vmem:[#allocation59_spill] sm:$0xff] %v4929_v57 }
 0x14c   :  { %v363_v56 = vpop.f32.mrf.mxu0  ;;  %v476_v0 = vpop.f32.mrf.mxu1 }
 0x14d   :  { %v4931_v51 = vadd.f32 %v363_v56, %v250_v20  ;;  %v4934_v54 = vadd.f32 %v476_v0, %v4883_v2 }
 0x14e   :  { %v365_v53 = vpop.f32.mrf.mxu0  ;;  %v478_v3 = vpop.f32.mrf.mxu1 }
 0x14f   :  { %6827 = vst [vmem:[#allocation60_spill] sm:$0xff] %v4931_v51  ;;  %6828 = vst [vmem:[#allocation61_spill] sm:$0xff] %v4934_v54  ;;  %v4936_v4 = vadd.f32 %v365_v53, %v254_v61  ;;  %v4939_v11 = vadd.f32 %v478_v3, %v4889_v60 }
 0x151   :  { %6829 = vst [vmem:[#allocation62_spill] sm:$0xff] %v4936_v4  ;;  %6830 = vst [vmem:[#allocation63_spill] sm:$0xff] %v4939_v11 }
 0x152   :  { %v369_v63 = vpop.f32.mrf.mxu0  ;;  %v482_v62 = vpop.f32.mrf.mxu1 }
 0x153   :  { %v4941_v58 = vadd.f32 %v369_v63, %v250_v20  ;;  %v4944_v29 = vadd.f32 %v482_v62, %v4883_v2 }
 0x154   :  { %v371_v57 = vpop.f32.mrf.mxu0  ;;  %v484_v56 = vpop.f32.mrf.mxu1 }
 0x155   :  { %6831 = vst [vmem:[#allocation64_spill] sm:$0xff] %v4941_v58  ;;  %6832 = vst [vmem:[#allocation65_spill] sm:$0xff] %v4944_v29  ;;  %v4946_v51 = vadd.f32 %v371_v57, %v254_v61  ;;  %v4949_v0 = vadd.f32 %v484_v56, %v4889_v60  ;;  %v334_v57 = vadd.f32 %v4867_v38, %v250_v20 }
 0x156   :  { %v336_v56 = vadd.f32 %v4873_v52, %v254_v61 }
 0x157   :  { %6833 = vst [vmem:[#allocation66_spill] sm:$0xff] %v4946_v51  ;;  %6834 = vst [vmem:[#allocation67_spill] sm:$0xff] %v4949_v0 }
 0x158   :  { %v375_v54 = vpop.f32.mrf.mxu0  ;;  %v488_v53 = vpop.f32.mrf.mxu1 }
 0x159   :  { %v4951_v4 = vadd.f32 %v375_v54, %v250_v20  ;;  %v4954_v3 = vadd.f32 %v488_v53, %v4883_v2 }
 0x15a   :  { %v377_v11 = vpop.f32.mrf.mxu0  ;;  %v490_v63 = vpop.f32.mrf.mxu1 }
 0x15b   :  { %6835 = vst [vmem:[#allocation68_spill] sm:$0xff] %v4951_v4  ;;  %6836 = vst [vmem:[#allocation69_spill] sm:$0xff] %v4954_v3  ;;  %v4956_v58 = vadd.f32 %v377_v11, %v254_v61  ;;  %v4959_v62 = vadd.f32 %v490_v63, %v4889_v60  ;;  %v447_v11 = vadd.f32 %v4869_v47, %v4883_v2 }
 0x15c   :  { %v449_v63 = vadd.f32 %v4875_v1, %v4889_v60 }
 0x15d   :  { %6837 = vst [vmem:[#allocation70_spill] sm:$0xff] %v4956_v58  ;;  %6838 = vst [vmem:[#allocation71_spill] sm:$0xff] %v4959_v62 }
 0x15e   :  { %v595_v29 = vpop.f32.mrf.mxu0  ;;  %v666_v53 = vpop.f32.mrf.mxu1 }
 0x15f   :  { %v671_v0 = vadd.f32 %v595_v29, %v334_v57  ;;  %v673_v3 = vadd.f32 %v666_v53, %v447_v11  ;;  %v6843_v53 = vld [vmem:[#allocation26_spill] sm:$0xff]  ;;  %v6844_v11 = vld [vmem:[#allocation27_spill] sm:$0xff] }
 0x160   :  { %v597_v51 = vpop.f32.mrf.mxu0  ;;  %v668_v58 = vpop.f32.mrf.mxu1 }
 0x161   :  { %v3847_v55 = vmul.f32 -1.442695, %v671_v0  ;;  %v672_v54 = vadd.f32 %v597_v51, %v336_v56  ;;  %v3849_v38 = vmul.f32 -1.442695, %v673_v3  ;;  %v674_v62 = vadd.f32 %v668_v58, %v449_v63  ;;  %v6840_v3 = vld [vmem:[#allocation23_spill] sm:$0xff]  ;;  %v6845_v63 = vld [vmem:[#allocation28_spill] sm:$0xff] }
 0x163   :  { %3963 = vpow2.f32 %v3847_v55  ;;  %v3848_v4 = vmul.f32 -1.442695, %v672_v54  ;;  %v6842_v54 = vld [vmem:[#allocation25_spill] sm:$0xff] }
 0x165   :  { %3965 = vpow2.f32 %v3848_v4 }
 0x166   :  { %3967 = vpow2.f32 %v3849_v38  ;;  %v6846_v38 = vld [vmem:[#allocation29_spill] sm:$0xff] }
 0x170   :  { %v3964_v20 = vpop.eup %3963 }
 0x171   :  { %v684_v52 = vadd.f32 1.0, %v3964_v20  ;;  %v6847_v20 = vld [vmem:[#allocation30_spill] sm:$0xff] }
 0x172   :  { %v3966_v61 = vpop.eup %3965 }
 0x173   :  { %3969 = vrcp.f32 %v684_v52  ;;  %v685_v51 = vadd.f32 1.0, %v3966_v61  ;;  %v3968_v4 = vpop.eup %3967  ;;  %v6848_v52 = vld [vmem:[#allocation31_spill] sm:$0xff]  ;;  %v6849_v61 = vld [vmem:[#allocation32_spill] sm:$0xff] }
 0x174   :  { %3971 = vtanh.f32 %v674_v62  ;;  %v686_v47 = vadd.f32 1.0, %v3968_v4  ;;  %v6841_v62 = vld [vmem:[#allocation24_spill] sm:$0xff]  ;;  %v6851_v4 = vld [vmem:[#allocation34_spill] sm:$0xff] }
 0x175   :  { %3973 = vrcp.f32 %v685_v51  ;;  %v6850_v51 = vld [vmem:[#allocation33_spill] sm:$0xff] }
 0x176   :  { %3975 = vrcp.f32 %v686_v47  ;;  %v6855_v47 = vld [vmem:[#allocation38_spill] sm:$0xff] }
 0x180   :  { %v3970_v55 = vpop.eup %3969 }
 0x181   :  { %v3972_v29 = vpop.eup %3971 }
 0x182   :  { %v3974_v0 = vpop.eup %3973  ;;  %v695_v57 = vmul.f32 %v3972_v29, %v3970_v55  ;;  %v6852_v55 = vld [vmem:[#allocation35_spill] sm:$0xff]  ;;  %v6853_v29 = vld [vmem:[#allocation36_spill] sm:$0xff] }
 0x183   :  { %v694_v2 = vmul.f32 0.0, %v3974_v0  ;;  %v3976_v58 = vpop.eup %3975  ;;  %v6854_v0 = vld [vmem:[#allocation37_spill] sm:$0xff] }
 0x185   :  { %v4967_v56 = vadd.f32 %v695_v57, %v694_v2  ;;  %v6856_v2 = vld [vmem:[#allocation39_spill] sm:$0xff]  ;;  %v6857_v57 = vld [vmem:[#allocation40_spill] sm:$0xff] }
 0x187   :  { %3977 = vtanh.f32 %v4967_v56 }
 0x194   :  { %v3978_v60 = vpop.eup %3977 }
 0x195   :  { %v4970_v1 = vmul.f32 %v3978_v60, %v3976_v58  ;;  %v6858_v58 = vld [vmem:[#allocation41_spill] sm:$0xff]  ;;  %v6859_v60 = vld [vmem:[#allocation42_spill] sm:$0xff] }
 0x197   :  { %6839 = vst [vmem:[#allocation72_spill] sm:$0xff] %v4970_v1  ;;  %769 = vmatmul.mubr.f32.vlgmr.msra.gmra.mxu0 %v4970_v1  ;;  %840 = vmatmul.mubr.f32.vlgmr.msra.gmra.mxu1 %v4970_v1  ;;  %v6860_v1 = vmov 0.0  }
 0x198   :  { %880 = vmatpush1.msra.mxu0 %v4591_v5  ;;  %951 = vmatpush1.msra.mxu1 %v4593_v6 }
 0x199   :  { %881 = vmatprep.subr.mxu0 %v4595_v7  ;;  %952 = vmatprep.subr.mxu1 %v4597_v8 }
 0x19a   :  { %882 = vmatpush1.msra.mxu0 %v4603_v9  ;;  %953 = vmatpush1.msra.mxu1 %v4605_v10 }
 0x19b   :  { %883 = vmatprep.subr.mxu0 %v4611_v12  ;;  %954 = vmatprep.subr.mxu1 %v4613_v13 }
 0x19c   :  { %884 = vmatpush1.msra.mxu0 %v4617_v14  ;;  %955 = vmatpush1.msra.mxu1 %v4619_v15 }
 0x19d   :  { %885 = vmatprep.subr.mxu0 %v4621_v16  ;;  %956 = vmatprep.subr.mxu1 %v4623_v17 }
 0x19e   :  { %886 = vmatpush1.msra.mxu0 %v4629_v18  ;;  %957 = vmatpush1.msra.mxu1 %v4631_v19 }
 0x19f   :  { %887 = vmatprep.subr.mxu0 %v4637_v21  ;;  %958 = vmatprep.subr.mxu1 %v4639_v22 }
 0x1a0   :  { %888 = vmatpush1.msra.mxu0 %v4643_v23  ;;  %959 = vmatpush1.msra.mxu1 %v4645_v24 }
 0x1a1   :  { %889 = vmatprep.subr.mxu0 %v4647_v25  ;;  %960 = vmatprep.subr.mxu1 %v4649_v26 }
 0x1a2   :  { %890 = vmatpush1.msra.mxu0 %v4655_v27  ;;  %961 = vmatpush1.msra.mxu1 %v4657_v28 }
 0x1a3   :  { %891 = vmatprep.subr.mxu0 %v4663_v30  ;;  %962 = vmatprep.subr.mxu1 %v4665_v31 }
 0x1a4   :  { %892 = vmatpush1.msra.mxu0 %v4669_v32  ;;  %963 = vmatpush1.msra.mxu1 %v4671_v33 }
 0x1a5   :  { %893 = vmatprep.subr.mxu0 %v4673_v34  ;;  %964 = vmatprep.subr.mxu1 %v4675_v35 }
 0x1a6   :  { %894 = vmatpush1.msra.mxu0 %v4681_v36  ;;  %965 = vmatpush1.msra.mxu1 %v4683_v37 }
 0x1a7   :  { %895 = vmatprep.subr.mxu0 %v4689_v39  ;;  %966 = vmatprep.subr.mxu1 %v4691_v40 }
 0x1a8   :  { %896 = vmatpush1.msra.mxu0 %v4695_v41  ;;  %967 = vmatpush1.msra.mxu1 %v4697_v42 }
 0x1a9   :  { %897 = vmatprep.subr.mxu0 %v4699_v43  ;;  %968 = vmatprep.subr.mxu1 %v4701_v44 }
 0x1aa   :  { %898 = vmatpush1.msra.mxu0 %v4707_v45  ;;  %969 = vmatpush1.msra.mxu1 %v4709_v46 }
 0x1ab   :  { %899 = vmatprep.subr.mxu0 %v4715_v48  ;;  %970 = vmatprep.subr.mxu1 %v4717_v49 }
 0x1ac   :  { %900 = vmatpush1.msra.mxu0 %v4721_v50  ;;  %971 = vmatpush1.msra.mxu1 %v6840_v3 }
 0x1ad   :  { %901 = vmatprep.subr.mxu0 %v6841_v62  ;;  %972 = vmatprep.subr.mxu1 %v6842_v54 }
 0x1ae   :  { %902 = vmatpush1.msra.mxu0 %v6843_v53  ;;  %973 = vmatpush1.msra.mxu1 %v6844_v11 }
 0x1af   :  { %903 = vmatprep.subr.mxu0 %v6845_v63  ;;  %974 = vmatprep.subr.mxu1 %v6846_v38 }
 0x1b0   :  { %904 = vmatpush1.msra.mxu0 %v6847_v20  ;;  %975 = vmatpush1.msra.mxu1 %v6848_v52  ;;  %v6865_v52 = vld [vmem:[#allocation45_spill] sm:$0xff] }
 0x1b1   :  { %905 = vmatprep.subr.mxu0 %v6849_v61  ;;  %976 = vmatprep.subr.mxu1 %v6850_v51  ;;  %v6861_v51 = vld [vmem:[#allocation43_spill] sm:$0xff] }
 0x1b2   :  { %906 = vmatpush1.msra.mxu0 %v6851_v4  ;;  %977 = vmatpush1.msra.mxu1 %v6852_v55  ;;  %v6862_v55 = vld [vmem:[#allocation21_spill] sm:$0xff] }
 0x1b3   :  { %907 = vmatprep.subr.mxu0 %v6853_v29  ;;  %978 = vmatprep.subr.mxu1 %v6854_v0  ;;  %v6863_v29 = vld [vmem:[#allocation22_spill] sm:$0xff] }
 0x1b4   :  { %908 = vmatpush1.msra.mxu0 %v6855_v47  ;;  %979 = vmatpush1.msra.mxu1 %v6856_v2 }
 0x1b5   :  { %909 = vmatprep.subr.mxu0 %v6857_v57  ;;  %980 = vmatprep.subr.mxu1 %v6858_v58  ;;  %v6864_v57 = vld [vmem:[#allocation46_spill] sm:$0xff] }
 0x1b6   :  { %910 = vmatpush1.msra.mxu0 %v6859_v60  ;;  %943 = vmatprep.mubr.f32.mxu0 %v6860_v1 }
 0x1b7   :  { %981 = vmatpush1.msra.mxu1 %v6861_v51  ;;  %1014 = vmatprep.mubr.f32.mxu1 %v6860_v1  ;;  %v6866_v1 = vld [vmem:[#allocation47_spill] sm:$0xff] }
 0x1b8   :  { %1054 = vmatprep.subr.mxu0 %v6862_v55  ;;  %1125 = vmatprep.subr.mxu1 %v6863_v29 }
 0x257   :  { %v770_v0 = vpop.f32.mrf.mxu0  ;;  %v841_v60 = vpop.f32.mrf.mxu1 }
 0x258   :  { %v846_v47 = vadd.f32 %v770_v0, %v4891_v59  ;;  %v848_v20 = vadd.f32 %v841_v60, %v6865_v52 }
 0x259   :  { %v772_v2 = vpop.f32.mrf.mxu0  ;;  %v843_v51 = vpop.f32.mrf.mxu1 }
 0x25a   :  { %v3850_v4 = vmul.f32 -1.442695, %v846_v47  ;;  %v847_v61 = vadd.f32 %v772_v2, %v6864_v57  ;;  %v3852_v38 = vmul.f32 -1.442695, %v848_v20  ;;  %v849_v63 = vadd.f32 %v843_v51, %v6866_v1 }
 0x25c   :  { %3979 = vpow2.f32 %v3850_v4  ;;  %v3851_v58 = vmul.f32 -1.442695, %v847_v61 }
 0x25e   :  { %3981 = vpow2.f32 %v3851_v58 }
 0x25f   :  { %3983 = vpow2.f32 %v3852_v38 }
 0x260   :  { %3985 = vtanh.f32 %v849_v63 }
 0x269   :  { %v3980_v55 = vpop.eup %3979 }
 0x26a   :  { %v859_v11 = vadd.f32 1.0, %v3980_v55  ;;  %v6890_v55 = vld [vmem:[#allocation49_spill] sm:$0xff] }
 0x26b   :  { %v3982_v29 = vpop.eup %3981 }
 0x26c   :  { %3987 = vrcp.f32 %v859_v11  ;;  %v860_v59 = vadd.f32 1.0, %v3982_v29  ;;  %v3984_v0 = vpop.eup %3983  ;;  %v6889_v11 = vld [vmem:[#allocation50_spill] sm:$0xff] }
 0x26d   :  { %v3986_v47 = vpop.eup %3985  ;;  %v861_v57 = vadd.f32 1.0, %v3984_v0 }
 0x26e   :  { %3989 = vrcp.f32 %v860_v59 }
 0x26f   :  { %3991 = vrcp.f32 %v861_v57 }
 0x279   :  { %v3988_v4 = vpop.eup %3987 }
 0x27a   :  { %v870_v61 = vmul.f32 %v3988_v4, %v3986_v47  ;;  %v6891_v47 = vld [vmem:[#allocation51_spill] sm:$0xff] }
 0x27b   :  { %v3990_v2 = vpop.eup %3989 }
 0x27c   :  { %v869_v52 = vmul.f32 %v3990_v2, %v4967_v56  ;;  %v3992_v1 = vpop.eup %3991 }
 0x27e   :  { %v5045_v58 = vadd.f32 %v870_v61, %v869_v52 }
 0x280   :  { %3993 = vtanh.f32 %v5045_v58 }
 0x28d   :  { %v3994_v38 = vpop.eup %3993 }
 0x28e   :  { %v5048_v20 = vmul.f32 %v3994_v38, %v3992_v1 }
 0x290   :  { %6867 = vst [vmem:[#allocation23_spill] sm:$0xff] %v5048_v20  ;;  %944 = vmatmul.mubr.f32.vlgmr.msra.gmra.mxu0 %v5048_v20  ;;  %1015 = vmatmul.mubr.f32.vlgmr.msra.gmra.mxu1 %v5048_v20  ;;  %v5197_v20 = vld [vmem:[#allocation10 + $0x150] sm:$0xff] }
 0x291   :  { %1055 = vmatpush1.msra.mxu0 %v4591_v5  ;;  %1126 = vmatpush1.msra.mxu1 %v4593_v6  ;;  %v6868_v5 = vld [vmem:[#allocation27_spill] sm:$0xff]  ;;  %v6869_v6 = vld [vmem:[#allocation28_spill] sm:$0xff] }
 0x292   :  { %1056 = vmatprep.subr.mxu0 %v4595_v7  ;;  %1127 = vmatprep.subr.mxu1 %v4597_v8  ;;  %v6870_v7 = vld [vmem:[#allocation29_spill] sm:$0xff]  ;;  %v6871_v8 = vld [vmem:[#allocation30_spill] sm:$0xff] }
 0x293   :  { %1057 = vmatpush1.msra.mxu0 %v4603_v9  ;;  %1128 = vmatpush1.msra.mxu1 %v4605_v10  ;;  %v6872_v9 = vld [vmem:[#allocation31_spill] sm:$0xff]  ;;  %v6873_v10 = vld [vmem:[#allocation32_spill] sm:$0xff] }
 0x294   :  { %1058 = vmatprep.subr.mxu0 %v4611_v12  ;;  %1129 = vmatprep.subr.mxu1 %v4613_v13  ;;  %v6874_v12 = vld [vmem:[#allocation33_spill] sm:$0xff]  ;;  %v6875_v13 = vld [vmem:[#allocation34_spill] sm:$0xff] }
 0x295   :  { %1059 = vmatpush1.msra.mxu0 %v4617_v14  ;;  %1130 = vmatpush1.msra.mxu1 %v4619_v15  ;;  %v6876_v14 = vld [vmem:[#allocation35_spill] sm:$0xff]  ;;  %v6877_v15 = vld [vmem:[#allocation36_spill] sm:$0xff] }
 0x296   :  { %1060 = vmatprep.subr.mxu0 %v4621_v16  ;;  %1131 = vmatprep.subr.mxu1 %v4623_v17  ;;  %v6878_v16 = vld [vmem:[#allocation37_spill] sm:$0xff]  ;;  %v6879_v17 = vld [vmem:[#allocation38_spill] sm:$0xff] }
 0x297   :  { %1061 = vmatpush1.msra.mxu0 %v4629_v18  ;;  %1132 = vmatpush1.msra.mxu1 %v4631_v19  ;;  %v6880_v18 = vld [vmem:[#allocation39_spill] sm:$0xff]  ;;  %v6881_v19 = vld [vmem:[#allocation40_spill] sm:$0xff] }
 0x298   :  { %1062 = vmatprep.subr.mxu0 %v4637_v21  ;;  %1133 = vmatprep.subr.mxu1 %v4639_v22  ;;  %v6882_v21 = vld [vmem:[#allocation41_spill] sm:$0xff]  ;;  %v6883_v22 = vld [vmem:[#allocation42_spill] sm:$0xff] }
 0x299   :  { %1063 = vmatpush1.msra.mxu0 %v4643_v23  ;;  %1134 = vmatpush1.msra.mxu1 %v4645_v24  ;;  %v6884_v23 = vmov 0.0   ;;  %v6885_v24 = vld [vmem:[#allocation43_spill] sm:$0xff] }
 0x29a   :  { %1064 = vmatprep.subr.mxu0 %v4647_v25  ;;  %1135 = vmatprep.subr.mxu1 %v4649_v26  ;;  %v5116_v25 = vld [vmem:[#allocation10 + $0x1e8] sm:$0xff]  ;;  %v5119_v26 = vld [vmem:[#allocation10 + $0x1f8] sm:$0xff] }
 0x29b   :  { %1065 = vmatpush1.msra.mxu0 %v4655_v27  ;;  %1136 = vmatpush1.msra.mxu1 %v4657_v28  ;;  %6886 = vst [vmem:[#allocation24_spill] sm:$0xff] %v5116_v25  ;;  %6887 = vst [vmem:[#allocation25_spill] sm:$0xff] %v5119_v26  ;;  %v6888_v28 = vld [vmem:[#allocation48_spill] sm:$0xff] }
 0x29c   :  { %1066 = vmatprep.subr.mxu0 %v4663_v30  ;;  %1137 = vmatprep.subr.mxu1 %v4665_v31 }
 0x29d   :  { %1067 = vmatpush1.msra.mxu0 %v4669_v32  ;;  %1138 = vmatpush1.msra.mxu1 %v4671_v33 }
 0x29e   :  { %1068 = vmatprep.subr.mxu0 %v4673_v34  ;;  %1139 = vmatprep.subr.mxu1 %v4675_v35 }
 0x29f   :  { %1069 = vmatpush1.msra.mxu0 %v4681_v36  ;;  %1140 = vmatpush1.msra.mxu1 %v4683_v37 }
 0x2a0   :  { %1070 = vmatprep.subr.mxu0 %v4689_v39  ;;  %1141 = vmatprep.subr.mxu1 %v4691_v40 }
 0x2a1   :  { %1071 = vmatpush1.msra.mxu0 %v4695_v41  ;;  %1142 = vmatpush1.msra.mxu1 %v4697_v42 }
 0x2a2   :  { %1072 = vmatprep.subr.mxu0 %v4699_v43  ;;  %1143 = vmatprep.subr.mxu1 %v4701_v44 }
 0x2a3   :  { %1073 = vmatpush1.msra.mxu0 %v4707_v45  ;;  %1144 = vmatpush1.msra.mxu1 %v4709_v46 }
 0x2a4   :  { %1074 = vmatprep.subr.mxu0 %v4715_v48  ;;  %1145 = vmatprep.subr.mxu1 %v4717_v49 }
 0x2a5   :  { %1075 = vmatpush1.msra.mxu0 %v4721_v50  ;;  %1146 = vmatpush1.msra.mxu1 %v6840_v3 }
 0x2a6   :  { %1076 = vmatprep.subr.mxu0 %v6841_v62  ;;  %1147 = vmatprep.subr.mxu1 %v6842_v54 }
 0x2a7   :  { %1077 = vmatpush1.msra.mxu0 %v6843_v53  ;;  %1148 = vmatpush1.msra.mxu1 %v6868_v5 }
 0x2a8   :  { %1078 = vmatprep.subr.mxu0 %v6869_v6  ;;  %1149 = vmatprep.subr.mxu1 %v6870_v7 }
 0x2a9   :  { %1079 = vmatpush1.msra.mxu0 %v6871_v8  ;;  %1150 = vmatpush1.msra.mxu1 %v6872_v9 }
 0x2aa   :  { %1080 = vmatprep.subr.mxu0 %v6873_v10  ;;  %1151 = vmatprep.subr.mxu1 %v6874_v12 }
 0x2ab   :  { %1081 = vmatpush1.msra.mxu0 %v6875_v13  ;;  %1152 = vmatpush1.msra.mxu1 %v6876_v14 }
 0x2ac   :  { %1082 = vmatprep.subr.mxu0 %v6877_v15  ;;  %1153 = vmatprep.subr.mxu1 %v6878_v16 }
 0x2ad   :  { %1083 = vmatpush1.msra.mxu0 %v6879_v17  ;;  %1154 = vmatpush1.msra.mxu1 %v6880_v18 }
 0x2ae   :  { %1084 = vmatprep.subr.mxu0 %v6881_v19  ;;  %1155 = vmatprep.subr.mxu1 %v6882_v21 }
 0x2af   :  { %1085 = vmatpush1.msra.mxu0 %v6883_v22  ;;  %1118 = vmatprep.mubr.f32.mxu0 %v6884_v23 }
 0x2b0   :  { %1156 = vmatpush1.msra.mxu1 %v6885_v24  ;;  %1189 = vmatprep.mubr.f32.mxu1 %v6884_v23 }
 0x2b1   :  { %1229 = vmatprep.subr.mxu0 %v5116_v25  ;;  %1300 = vmatprep.subr.mxu1 %v5119_v26 }
 0x350   :  { %v945_v27 = vpop.f32.mrf.mxu0  ;;  %v1016_v60 = vpop.f32.mrf.mxu1 }
 0x351   :  { %v1021_v30 = vadd.f32 %v945_v27, %v6888_v28  ;;  %v1023_v29 = vadd.f32 %v1016_v60, %v6890_v55  ;;  %v5134_v55 = vld [vmem:[#allocation10 + $0x1e0] sm:$0xff] }
 0x352   :  { %v947_v31 = vpop.f32.mrf.mxu0  ;;  %v1018_v59 = vpop.f32.mrf.mxu1 }
 0x353   :  { %v3853_v56 = vmul.f32 -1.442695, %v1021_v30  ;;  %v1022_v63 = vadd.f32 %v947_v31, %v6889_v11  ;;  %v3855_v0 = vmul.f32 -1.442695, %v1023_v29  ;;  %v1024_v4 = vadd.f32 %v1018_v59, %v6891_v47  ;;  %v5137_v29 = vld [vmem:[#allocation10 + $0x1f0] sm:$0xff]  ;;  %v5143_v59 = vld [vmem:[#allocation10 + $0x1d8] sm:$0xff] }
 0x354   :  { %v5149_v47 = vld [vmem:[#allocation10 + $0x1d0] sm:$0xff] }
 0x355   :  { %3995 = vpow2.f32 %v3853_v56  ;;  %v3854_v51 = vmul.f32 -1.442695, %v1022_v63 }
 0x357   :  { %3997 = vpow2.f32 %v3854_v51 }
 0x358   :  { %3999 = vpow2.f32 %v3855_v0  ;;  %v5146_v0 = vld [vmem:[#allocation10 + $0x1c0] sm:$0xff] }
 0x359   :  { %4001 = vtanh.f32 %v1024_v4  ;;  %v5152_v4 = vld [vmem:[#allocation10 + $0x1a8] sm:$0xff] }
 0x362   :  { %v3996_v61 = vpop.eup %3995 }
 0x363   :  { %v1034_v2 = vadd.f32 1.0, %v3996_v61  ;;  %v5155_v61 = vld [vmem:[#allocation10 + $0x1b8] sm:$0xff] }
 0x364   :  { %v3998_v57 = vpop.eup %3997 }
 0x365   :  { %4003 = vrcp.f32 %v1034_v2  ;;  %v1035_v52 = vadd.f32 1.0, %v3998_v57  ;;  %v4000_v1 = vpop.eup %3999  ;;  %v5158_v2 = vld [vmem:[#allocation10 + $0x1a0] sm:$0xff]  ;;  %v5161_v57 = vld [vmem:[#allocation10 + $0x1b0] sm:$0xff] }
 0x366   :  { %v4002_v38 = vpop.eup %4001  ;;  %v1036_v31 = vadd.f32 1.0, %v4000_v1  ;;  %v5167_v1 = vld [vmem:[#allocation10 + $0x198] sm:$0xff] }
 0x367   :  { %4005 = vrcp.f32 %v1035_v52  ;;  %v5164_v52 = vld [vmem:[#allocation10 + $0x188] sm:$0xff] }
 0x368   :  { %4007 = vrcp.f32 %v1036_v31  ;;  %v5182_v31 = vld [vmem:[#allocation10 + $0x160] sm:$0xff] }
 0x369   :  { %6893 = vst [vmem:[#allocation21_spill] sm:$0xff] %v5182_v31 }
 0x372   :  { %v4004_v27 = vpop.eup %4003 }
 0x373   :  { %v1045_v28 = vmul.f32 %v4004_v27, %v4002_v38  ;;  %v5170_v38 = vld [vmem:[#allocation10 + $0x180] sm:$0xff]  ;;  %v5173_v27 = vld [vmem:[#allocation10 + $0x190] sm:$0xff] }
 0x374   :  { %v4006_v30 = vpop.eup %4005 }
 0x375   :  { %v1044_v56 = vmul.f32 %v4006_v30, %v5045_v58  ;;  %v4008_v63 = vpop.eup %4007  ;;  %v5140_v58 = vld [vmem:[#allocation10 + $0x1c8] sm:$0xff]  ;;  %v5179_v30 = vld [vmem:[#allocation10 + $0x178] sm:$0xff] }
 0x377   :  { %v5127_v11 = vadd.f32 %v1045_v28, %v1044_v56  ;;  %v5176_v28 = vld [vmem:[#allocation10 + $0x168] sm:$0xff]  ;;  %v5185_v56 = vld [vmem:[#allocation10 + $0x170] sm:$0xff] }
 0x378   :  { %6894 = vst [vmem:[#allocation22_spill] sm:$0xff] %v5185_v56 }
 0x379   :  { %4009 = vtanh.f32 %v5127_v11 }
 0x386   :  { %v4010_v51 = vpop.eup %4009 }
 0x387   :  { %v5130_v60 = vmul.f32 %v4010_v51, %v4008_v63  ;;  %v5188_v63 = vld [vmem:[#allocation10 + $0x148] sm:$0xff]  ;;  %v5191_v51 = vld [vmem:[#allocation10 + $0x158] sm:$0xff] }
 0x389   :  { %6892 = vst [vmem:[#allocation26_spill] sm:$0xff] %v5130_v60  ;;  %1119 = vmatmul.mubr.f32.vlgmr.msra.gmra.mxu0 %v5130_v60  ;;  %1190 = vmatmul.mubr.f32.vlgmr.msra.gmra.mxu1 %v5130_v60  ;;  %v5194_v60 = vld [vmem:[#allocation10 + $0x140] sm:$0xff] }
 0x38a   :  { %1230 = vmatpush1.msra.mxu0 %v5134_v55  ;;  %1301 = vmatpush1.msra.mxu1 %v5137_v29 }
 0x38b   :  { %1231 = vmatprep.subr.mxu0 %v5140_v58  ;;  %1302 = vmatprep.subr.mxu1 %v5143_v59 }
 0x38c   :  { %1232 = vmatpush1.msra.mxu0 %v5146_v0  ;;  %1303 = vmatpush1.msra.mxu1 %v5149_v47 }
 0x38d   :  { %1233 = vmatprep.subr.mxu0 %v5152_v4  ;;  %1304 = vmatprep.subr.mxu1 %v5155_v61 }
 0x38e   :  { %1234 = vmatpush1.msra.mxu0 %v5158_v2  ;;  %1305 = vmatpush1.msra.mxu1 %v5161_v57 }
 0x38f   :  { %1235 = vmatprep.subr.mxu0 %v5164_v52  ;;  %1306 = vmatprep.subr.mxu1 %v5167_v1 }
 0x390   :  { %1236 = vmatpush1.msra.mxu0 %v5170_v38  ;;  %1307 = vmatpush1.msra.mxu1 %v5173_v27 }
 0x391   :  { %1237 = vmatprep.subr.mxu0 %v5176_v28  ;;  %1308 = vmatprep.subr.mxu1 %v5179_v30 }
 0x392   :  { %1238 = vmatpush1.msra.mxu0 %v5182_v31  ;;  %1309 = vmatpush1.msra.mxu1 %v5185_v56  ;;  %v5200_v31 = vld [vmem:[#allocation10 + $0x128] sm:$0xff]  ;;  %v5203_v56 = vld [vmem:[#allocation10 + $0x138] sm:$0xff] }
 0x393   :  { %1239 = vmatprep.subr.mxu0 %v5188_v63  ;;  %1310 = vmatprep.subr.mxu1 %v5191_v51 }
 0x394   :  { %1240 = vmatpush1.msra.mxu0 %v5194_v60  ;;  %1311 = vmatpush1.msra.mxu1 %v5197_v20 }
 0x395   :  { %1241 = vmatprep.subr.mxu0 %v5200_v31  ;;  %1312 = vmatprep.subr.mxu1 %v5203_v56 }
 0x396   :  { %1242 = vmatpush1.msra.mxu0 %v4669_v32  ;;  %1313 = vmatpush1.msra.mxu1 %v4671_v33  ;;  %v6895_v33 = vld [vmem:[#allocation52_spill] sm:$0xff] }
 0x397   :  { %1243 = vmatprep.subr.mxu0 %v4673_v34  ;;  %1314 = vmatprep.subr.mxu1 %v4675_v35 }
 0x398   :  { %1244 = vmatpush1.msra.mxu0 %v4681_v36  ;;  %1315 = vmatpush1.msra.mxu1 %v4683_v37  ;;  %v6896_v37 = vld [vmem:[#allocation54_spill] sm:$0xff] }
 0x399   :  { %1245 = vmatprep.subr.mxu0 %v4689_v39  ;;  %1316 = vmatprep.subr.mxu1 %v4691_v40 }
 0x39a   :  { %1246 = vmatpush1.msra.mxu0 %v4695_v41  ;;  %1317 = vmatpush1.msra.mxu1 %v4697_v42  ;;  %v6897_v42 = vld [vmem:[#allocation53_spill] sm:$0xff] }
 0x39b   :  { %1247 = vmatprep.subr.mxu0 %v4699_v43  ;;  %1318 = vmatprep.subr.mxu1 %v4701_v44 }
 0x39c   :  { %1248 = vmatpush1.msra.mxu0 %v4707_v45  ;;  %1319 = vmatpush1.msra.mxu1 %v4709_v46  ;;  %v6898_v46 = vld [vmem:[#allocation55_spill] sm:$0xff] }
 0x39d   :  { %1249 = vmatprep.subr.mxu0 %v4715_v48  ;;  %1320 = vmatprep.subr.mxu1 %v4717_v49 }
 0x39e   :  { %1250 = vmatpush1.msra.mxu0 %v4721_v50  ;;  %1321 = vmatpush1.msra.mxu1 %v6840_v3 }
 0x39f   :  { %1251 = vmatprep.subr.mxu0 %v6841_v62  ;;  %1322 = vmatprep.subr.mxu1 %v6842_v54 }
 0x3a0   :  { %1252 = vmatpush1.msra.mxu0 %v6843_v53  ;;  %1323 = vmatpush1.msra.mxu1 %v6868_v5 }
 0x3a1   :  { %1253 = vmatprep.subr.mxu0 %v6869_v6  ;;  %1324 = vmatprep.subr.mxu1 %v6870_v7 }
 0x3a2   :  { %1254 = vmatpush1.msra.mxu0 %v6871_v8  ;;  %1325 = vmatpush1.msra.mxu1 %v6872_v9 }
 0x3a3   :  { %1255 = vmatprep.subr.mxu0 %v6873_v10  ;;  %1326 = vmatprep.subr.mxu1 %v6874_v12 }
 0x3a4   :  { %1256 = vmatpush1.msra.mxu0 %v6875_v13  ;;  %1327 = vmatpush1.msra.mxu1 %v6876_v14 }
 0x3a5   :  { %1257 = vmatprep.subr.mxu0 %v6877_v15  ;;  %1328 = vmatprep.subr.mxu1 %v6878_v16  ;;  %v6900_v15 = vld [vmem:[#allocation21_spill] sm:$0xff]  ;;  %v6901_v16 = vld [vmem:[#allocation22_spill] sm:$0xff] }
 0x3a6   :  { %1258 = vmatpush1.msra.mxu0 %v6879_v17  ;;  %1329 = vmatpush1.msra.mxu1 %v6880_v18  ;;  %v5284_v17 = vld [vmem:[#allocation10 + $0x120] sm:$0xff]  ;;  %v5287_v18 = vld [vmem:[#allocation10 + $0x130] sm:$0xff] }
 0x3a7   :  { %1259 = vmatprep.subr.mxu0 %v6881_v19  ;;  %1330 = vmatprep.subr.mxu1 %v6882_v21  ;;  %v5290_v19 = vld [vmem:[#allocation10 + $0x108] sm:$0xff]  ;;  %v5293_v21 = vld [vmem:[#allocation10 + $0x118] sm:$0xff] }
 0x3a8   :  { %1260 = vmatpush1.msra.mxu0 %v6883_v22  ;;  %1293 = vmatprep.mubr.f32.mxu0 %v6884_v23  ;;  %v5296_v22 = vld [vmem:[#allocation10 + $0x100] sm:$0xff] }
 0x3a9   :  { %1331 = vmatpush1.msra.mxu1 %v6885_v24  ;;  %1364 = vmatprep.mubr.f32.mxu1 %v6884_v23  ;;  %v5299_v24 = vld [vmem:[#allocation10 + $0x110] sm:$0xff] }
 0x3aa   :  { %1404 = vmatprep.subr.mxu0 %v5116_v25  ;;  %1475 = vmatprep.subr.mxu1 %v5119_v26 }
 0x449   :  { %v1120_v32 = vpop.f32.mrf.mxu0  ;;  %v1191_v41 = vpop.f32.mrf.mxu1 }
 0x44a   :  { %v1196_v34 = vadd.f32 %v1120_v32, %v6895_v33  ;;  %v1198_v43 = vadd.f32 %v1191_v41, %v6897_v42  ;;  %v5305_v32 = vld [vmem:[#allocation10 + $0xf8] sm:$0xff]  ;;  %v5308_v33 = vld [vmem:[#allocation10 + $0xe0] sm:$0xff] }
 0x44b   :  { %v1122_v35 = vpop.f32.mrf.mxu0  ;;  %v1193_v44 = vpop.f32.mrf.mxu1  ;;  %v5329_v41 = vld [vmem:[#allocation10 + $0xb8] sm:$0xff]  ;;  %v5332_v42 = vld [vmem:[#allocation10 + $0xa0] sm:$0xff] }
 0x44c   :  { %v3856_v36 = vmul.f32 -1.442695, %v1196_v34  ;;  %v1197_v39 = vadd.f32 %v1122_v35, %v6896_v37  ;;  %v3858_v45 = vmul.f32 -1.442695, %v1198_v43  ;;  %v1199_v48 = vadd.f32 %v1193_v44, %v6898_v46  ;;  %v5311_v34 = vld [vmem:[#allocation10 + $0xf0] sm:$0xff]  ;;  %v5314_v35 = vld [vmem:[#allocation10 + $0xc8] sm:$0xff] }
 0x44d   :  { %v5320_v37 = vld [vmem:[#allocation10 + $0xc0] sm:$0xff]  ;;  %v5335_v43 = vld [vmem:[#allocation10 + $0xb0] sm:$0xff]  ;;  %v5338_v44 = vld [vmem:[#allocation10 + $0x88] sm:$0xff] }
 0x44e   :  { %4011 = vpow2.f32 %v3856_v36  ;;  %v3857_v40 = vmul.f32 -1.442695, %v1197_v39  ;;  %v5317_v36 = vld [vmem:[#allocation10 + $0xd8] sm:$0xff]  ;;  %v5323_v39 = vld [vmem:[#allocation10 + $0xd0] sm:$0xff]  ;;  %v5344_v46 = vld [vmem:[#allocation10 + $0x80] sm:$0xff] }
 0x450   :  { %4013 = vpow2.f32 %v3857_v40  ;;  %v5326_v40 = vld [vmem:[#allocation10 + $0xa8] sm:$0xff] }
 0x451   :  { %4015 = vpow2.f32 %v3858_v45  ;;  %v5341_v45 = vld [vmem:[#allocation10 + $0x98] sm:$0xff] }
 0x452   :  { %4017 = vtanh.f32 %v1199_v48  ;;  %v5347_v48 = vld [vmem:[#allocation10 + $0x90] sm:$0xff] }
 0x453   :  { %6902 = vst [vmem:[#allocation45_spill] sm:$0xff] %v5347_v48 }
 0x45b   :  { %v4012_v49 = vpop.eup %4011 }
 0x45c   :  { %v1209_v50 = vadd.f32 1.0, %v4012_v49  ;;  %v5350_v49 = vld [vmem:[#allocation10 + $0x68] sm:$0xff] }
 0x45d   :  { %v4014_v3 = vpop.eup %4013  ;;  %6903 = vst [vmem:[#allocation47_spill] sm:$0xff] %v5350_v49 }
 0x45e   :  { %4019 = vrcp.f32 %v1209_v50  ;;  %v1210_v62 = vadd.f32 1.0, %v4014_v3  ;;  %v4016_v54 = vpop.eup %4015  ;;  %v5353_v50 = vld [vmem:[#allocation10 + $0x78] sm:$0xff]  ;;  %v5356_v3 = vld [vmem:[#allocation10 + $0x60] sm:$0xff] }
 0x45f   :  { %v4018_v53 = vpop.eup %4017  ;;  %v1211_v8 = vadd.f32 1.0, %v4016_v54  ;;  %6904 = vst [vmem:[#allocation27_spill] sm:$0xff] %v5353_v50  ;;  %6905 = vst [vmem:[#allocation28_spill] sm:$0xff] %v5356_v3  ;;  %v5362_v54 = vld [vmem:[#allocation10 + $0x48] sm:$0xff] }
 0x460   :  { %4021 = vrcp.f32 %v1210_v62  ;;  %v5359_v62 = vld [vmem:[#allocation10 + $0x70] sm:$0xff]  ;;  %6907 = vst [vmem:[#allocation30_spill] sm:$0xff] %v5362_v54 }
 0x461   :  { %4023 = vrcp.f32 %v1211_v8  ;;  %6906 = vst [vmem:[#allocation29_spill] sm:$0xff] %v5359_v62  ;;  %v5377_v8 = vld [vmem:[#allocation10 + $0x38] sm:$0xff] }
 0x462   :  { %6912 = vst [vmem:[#allocation35_spill] sm:$0xff] %v5377_v8 }
 0x46b   :  { %v4020_v5 = vpop.eup %4019 }
 0x46c   :  { %v1220_v6 = vmul.f32 %v4020_v5, %v4018_v53  ;;  %v5365_v53 = vld [vmem:[#allocation10 + $0x58] sm:$0xff]  ;;  %v5368_v5 = vld [vmem:[#allocation10 + $0x40] sm:$0xff] }
 0x46d   :  { %v4022_v7 = vpop.eup %4021  ;;  %6908 = vst [vmem:[#allocation31_spill] sm:$0xff] %v5365_v53  ;;  %6909 = vst [vmem:[#allocation32_spill] sm:$0xff] %v5368_v5 }
 0x46e   :  { %v1219_v9 = vmul.f32 %v4022_v7, %v5127_v11  ;;  %v4024_v12 = vpop.eup %4023  ;;  %v5302_v11 = vld [vmem:[#allocation10 + $0xe8] sm:$0xff] }
 0x46f   :  { %v5374_v7 = vld [vmem:[#allocation10 + $0x28] sm:$0xff] }
 0x470   :  { %v5253_v10 = vadd.f32 %v1220_v6, %v1219_v9  ;;  %v5371_v6 = vld [vmem:[#allocation10 + $0x50] sm:$0xff]  ;;  %6911 = vst [vmem:[#allocation34_spill] sm:$0xff] %v5374_v7  ;;  %v5380_v9 = vld [vmem:[#allocation10 + $0x20] sm:$0xff] }
 0x471   :  { %6910 = vst [vmem:[#allocation33_spill] sm:$0xff] %v5371_v6  ;;  %6913 = vst [vmem:[#allocation36_spill] sm:$0xff] %v5380_v9 }
 0x472   :  { %4025 = vtanh.f32 %v5253_v10 }
 0x47f   :  { %v4026_v13 = vpop.eup %4025 }
 0x480   :  { %v5256_v14 = vmul.f32 %v4026_v13, %v4024_v12  ;;  %v5383_v12 = vld [vmem:[#allocation10 + $0x30] sm:$0xff]  ;;  %v5386_v13 = vld [vmem:[#allocation10 + $0x8] sm:$0xff] }
 0x481   :  { %6914 = vst [vmem:[#allocation37_spill] sm:$0xff] %v5383_v12  ;;  %6915 = vst [vmem:[#allocation38_spill] sm:$0xff] %v5386_v13 }
 0x482   :  { %6899 = vst [vmem:[#allocation46_spill] sm:$0xff] %v5256_v14  ;;  %1294 = vmatmul.mubr.f32.vlgmr.msra.gmra.mxu0 %v5256_v14  ;;  %1365 = vmatmul.mubr.f32.vlgmr.msra.gmra.mxu1 %v5256_v14  ;;  %v5389_v14 = vld [vmem:[#allocation10 + $0x18] sm:$0xff] }
 0x483   :  { %1405 = vmatpush1.msra.mxu0 %v5134_v55  ;;  %1476 = vmatpush1.msra.mxu1 %v5137_v29  ;;  %6916 = vst [vmem:[#allocation39_spill] sm:$0xff] %v5389_v14 }
 0x484   :  { %1406 = vmatprep.subr.mxu0 %v5140_v58  ;;  %1477 = vmatprep.subr.mxu1 %v5143_v59 }
 0x485   :  { %1407 = vmatpush1.msra.mxu0 %v5146_v0  ;;  %1478 = vmatpush1.msra.mxu1 %v5149_v47 }
 0x486   :  { %1408 = vmatprep.subr.mxu0 %v5152_v4  ;;  %1479 = vmatprep.subr.mxu1 %v5155_v61 }
 0x487   :  { %1409 = vmatpush1.msra.mxu0 %v5158_v2  ;;  %1480 = vmatpush1.msra.mxu1 %v5161_v57 }
 0x488   :  { %1410 = vmatprep.subr.mxu0 %v5164_v52  ;;  %1481 = vmatprep.subr.mxu1 %v5167_v1 }
 0x489   :  { %1411 = vmatpush1.msra.mxu0 %v5170_v38  ;;  %1482 = vmatpush1.msra.mxu1 %v5173_v27 }
 0x48a   :  { %1412 = vmatprep.subr.mxu0 %v5176_v28  ;;  %1483 = vmatprep.subr.mxu1 %v5179_v30 }
 0x48b   :  { %1413 = vmatpush1.msra.mxu0 %v6900_v15  ;;  %1484 = vmatpush1.msra.mxu1 %v6901_v16 }
 0x48c   :  { %1414 = vmatprep.subr.mxu0 %v5188_v63  ;;  %1485 = vmatprep.subr.mxu1 %v5191_v51 }
 0x48d   :  { %1415 = vmatpush1.msra.mxu0 %v5194_v60  ;;  %1486 = vmatpush1.msra.mxu1 %v5197_v20 }
 0x48e   :  { %1416 = vmatprep.subr.mxu0 %v5200_v31  ;;  %1487 = vmatprep.subr.mxu1 %v5203_v56 }
 0x48f   :  { %1417 = vmatpush1.msra.mxu0 %v5284_v17  ;;  %1488 = vmatpush1.msra.mxu1 %v5287_v18 }
 0x490   :  { %1418 = vmatprep.subr.mxu0 %v5290_v19  ;;  %1489 = vmatprep.subr.mxu1 %v5293_v21 }
 0x491   :  { %1419 = vmatpush1.msra.mxu0 %v5296_v22  ;;  %1490 = vmatpush1.msra.mxu1 %v5299_v24 }
 0x492   :  { %1420 = vmatprep.subr.mxu0 %v5302_v11  ;;  %1491 = vmatprep.subr.mxu1 %v5305_v32 }
 0x493   :  { %1421 = vmatpush1.msra.mxu0 %v5308_v33  ;;  %1492 = vmatpush1.msra.mxu1 %v5311_v34 }
 0x494   :  { %1422 = vmatprep.subr.mxu0 %v5314_v35  ;;  %1493 = vmatprep.subr.mxu1 %v5317_v36 }
 0x495   :  { %1423 = vmatpush1.msra.mxu0 %v5320_v37  ;;  %1494 = vmatpush1.msra.mxu1 %v5323_v39 }
 0x496   :  { %1424 = vmatprep.subr.mxu0 %v5326_v40  ;;  %1495 = vmatprep.subr.mxu1 %v5329_v41 }
 0x497   :  { %1425 = vmatpush1.msra.mxu0 %v5332_v42  ;;  %1496 = vmatpush1.msra.mxu1 %v5335_v43 }
 0x498   :  { %1426 = vmatprep.subr.mxu0 %v5338_v44  ;;  %1497 = vmatprep.subr.mxu1 %v5341_v45 }
 0x499   :  { %1427 = vmatpush1.msra.mxu0 %v5344_v46  ;;  %1498 = vmatpush1.msra.mxu1 %v5347_v48 }
 0x49a   :  { %1428 = vmatprep.subr.mxu0 %v5350_v49  ;;  %1499 = vmatprep.subr.mxu1 %v5353_v50 }
 0x49b   :  { %1429 = vmatpush1.msra.mxu0 %v5356_v3  ;;  %1500 = vmatpush1.msra.mxu1 %v5359_v62  ;;  %v6921_v62 = vld [vmem:[#allocation57_spill] sm:$0xff] }
 0x49c   :  { %1430 = vmatprep.subr.mxu0 %v5362_v54  ;;  %1501 = vmatprep.subr.mxu1 %v5365_v53 }
 0x49d   :  { %1431 = vmatpush1.msra.mxu0 %v5368_v5  ;;  %1502 = vmatpush1.msra.mxu1 %v5371_v6  ;;  %v6920_v5 = vld [vmem:[#allocation58_spill] sm:$0xff] }
 0x49e   :  { %1432 = vmatprep.subr.mxu0 %v5374_v7  ;;  %1503 = vmatprep.subr.mxu1 %v5377_v8  ;;  %v5392_v7 = vld [vmem:[#allocation10] sm:$0xff]  ;;  %v5396_v8 = vld [vmem:[#allocation10 + $0x10] sm:$0xff] }
 0x49f   :  { %1433 = vmatpush1.msra.mxu0 %v5380_v9  ;;  %1504 = vmatpush1.msra.mxu1 %v5383_v12  ;;  %6917 = vst [vmem:[#allocation40_spill] sm:$0xff] %v5392_v7  ;;  %6918 = vst [vmem:[#allocation41_spill] sm:$0xff] %v5396_v8  ;;  %v6919_v12 = vld [vmem:[#allocation56_spill] sm:$0xff] }
 0x4a0   :  { %1434 = vmatprep.subr.mxu0 %v5386_v13  ;;  %1505 = vmatprep.subr.mxu1 %v5389_v14 }
 0x4a1   :  { %1435 = vmatpush1.msra.mxu0 %v5392_v7  ;;  %1468 = vmatprep.mubr.f32.mxu0 %v6884_v23 }
 0x4a2   :  { %1506 = vmatpush1.msra.mxu1 %v5396_v8  ;;  %1539 = vmatprep.mubr.f32.mxu1 %v6884_v23  ;;  %v6922_v23 = vld [vmem:[#allocation59_spill] sm:$0xff] }
 0x4a3   :  { %1579 = vmatprep.subr.mxu0 %v5116_v25  ;;  %1650 = vmatprep.subr.mxu1 %v5119_v26 }
 0x542   :  { %v1295_v13 = vpop.f32.mrf.mxu0  ;;  %v1366_v54 = vpop.f32.mrf.mxu1 }
 0x543   :  { %v1371_v9 = vadd.f32 %v1295_v13, %v6919_v12  ;;  %v1373_v3 = vadd.f32 %v1366_v54, %v6921_v62  ;;  %v6930_v13 = vld [vmem:[#allocation31_spill] sm:$0xff] }
 0x544   :  { %v1297_v14 = vpop.f32.mrf.mxu0  ;;  %v1368_v8 = vpop.f32.mrf.mxu1 }
 0x545   :  { %v3859_v6 = vmul.f32 -1.442695, %v1371_v9  ;;  %v1372_v53 = vadd.f32 %v1297_v14, %v6920_v5  ;;  %v3861_v50 = vmul.f32 -1.442695, %v1373_v3  ;;  %v1374_v49 = vadd.f32 %v1368_v8, %v6922_v23  ;;  %v6928_v3 = vld [vmem:[#allocation29_spill] sm:$0xff]  ;;  %v6929_v8 = vld [vmem:[#allocation30_spill] sm:$0xff] }
 0x547   :  { %4027 = vpow2.f32 %v3859_v6  ;;  %v3860_v7 = vmul.f32 -1.442695, %v1372_v53 }
 0x549   :  { %4029 = vpow2.f32 %v3860_v7 }
 0x54a   :  { %4031 = vpow2.f32 %v3861_v50 }
 0x54b   :  { %4033 = vtanh.f32 %v1374_v49  ;;  %v6927_v49 = vld [vmem:[#allocation28_spill] sm:$0xff] }
 0x554   :  { %v4028_v25 = vpop.eup %4027 }
 0x555   :  { %v1384_v48 = vadd.f32 1.0, %v4028_v25 }
 0x556   :  { %v4030_v26 = vpop.eup %4029 }
 0x557   :  { %4035 = vrcp.f32 %v1384_v48  ;;  %v1385_v12 = vadd.f32 1.0, %v4030_v26  ;;  %v4032_v9 = vpop.eup %4031  ;;  %v6924_v26 = vld [vmem:[#allocation45_spill] sm:$0xff]  ;;  %v6926_v48 = vld [vmem:[#allocation27_spill] sm:$0xff] }
 0x558   :  { %v4034_v14 = vpop.eup %4033  ;;  %v1386_v7 = vadd.f32 1.0, %v4032_v9  ;;  %v6932_v9 = vld [vmem:[#allocation33_spill] sm:$0xff] }
 0x559   :  { %4037 = vrcp.f32 %v1385_v12  ;;  %v6931_v12 = vld [vmem:[#allocation32_spill] sm:$0xff] }
 0x55a   :  { %4039 = vrcp.f32 %v1386_v7  ;;  %v6937_v7 = vld [vmem:[#allocation38_spill] sm:$0xff] }
 0x564   :  { %v4036_v5 = vpop.eup %4035 }
 0x565   :  { %v1395_v53 = vmul.f32 %v4036_v5, %v4034_v14  ;;  %v6933_v14 = vld [vmem:[#allocation34_spill] sm:$0xff]  ;;  %v6934_v5 = vld [vmem:[#allocation35_spill] sm:$0xff] }
 0x566   :  { %v4038_v6 = vpop.eup %4037 }
 0x567   :  { %v1394_v62 = vmul.f32 %v4038_v6, %v5253_v10  ;;  %v4040_v23 = vpop.eup %4039  ;;  %v6925_v10 = vld [vmem:[#allocation47_spill] sm:$0xff]  ;;  %v6936_v6 = vld [vmem:[#allocation37_spill] sm:$0xff] }
 0x569   :  { %v5407_v54 = vadd.f32 %v1395_v53, %v1394_v62  ;;  %v6935_v53 = vld [vmem:[#allocation36_spill] sm:$0xff]  ;;  %v6938_v62 = vld [vmem:[#allocation39_spill] sm:$0xff] }
 0x56b   :  { %4041 = vtanh.f32 %v5407_v54 }
 0x578   :  { %v4042_v25 = vpop.eup %4041 }
 0x579   :  { %v5410_v50 = vmul.f32 %v4042_v25, %v4040_v23  ;;  %v6939_v23 = vld [vmem:[#allocation40_spill] sm:$0xff]  ;;  %v6940_v25 = vmov 0.0  }
 0x57b   :  { %6923 = vst [vmem:[#allocation42_spill] sm:$0xff] %v5410_v50  ;;  %1469 = vmatmul.mubr.f32.vlgmr.msra.gmra.mxu0 %v5410_v50  ;;  %1540 = vmatmul.mubr.f32.vlgmr.msra.gmra.mxu1 %v5410_v50  ;;  %v6941_v50 = vld [vmem:[#allocation41_spill] sm:$0xff] }
 0x57c   :  { %1580 = vmatpush1.msra.mxu0 %v5134_v55  ;;  %1651 = vmatpush1.msra.mxu1 %v5137_v29 }
 0x57d   :  { %1581 = vmatprep.subr.mxu0 %v5140_v58  ;;  %1652 = vmatprep.subr.mxu1 %v5143_v59 }
 0x57e   :  { %1582 = vmatpush1.msra.mxu0 %v5146_v0  ;;  %1653 = vmatpush1.msra.mxu1 %v5149_v47 }
 0x57f   :  { %1583 = vmatprep.subr.mxu0 %v5152_v4  ;;  %1654 = vmatprep.subr.mxu1 %v5155_v61 }
 0x580   :  { %1584 = vmatpush1.msra.mxu0 %v5158_v2  ;;  %1655 = vmatpush1.msra.mxu1 %v5161_v57 }
 0x581   :  { %1585 = vmatprep.subr.mxu0 %v5164_v52  ;;  %1656 = vmatprep.subr.mxu1 %v5167_v1 }
 0x582   :  { %1586 = vmatpush1.msra.mxu0 %v5170_v38  ;;  %1657 = vmatpush1.msra.mxu1 %v5173_v27 }
 0x583   :  { %1587 = vmatprep.subr.mxu0 %v5176_v28  ;;  %1658 = vmatprep.subr.mxu1 %v5179_v30 }
 0x584   :  { %1588 = vmatpush1.msra.mxu0 %v6900_v15  ;;  %1659 = vmatpush1.msra.mxu1 %v6901_v16 }
 0x585   :  { %1589 = vmatprep.subr.mxu0 %v5188_v63  ;;  %1660 = vmatprep.subr.mxu1 %v5191_v51 }
 0x586   :  { %1590 = vmatpush1.msra.mxu0 %v5194_v60  ;;  %1661 = vmatpush1.msra.mxu1 %v5197_v20 }
 0x587   :  { %1591 = vmatprep.subr.mxu0 %v5200_v31  ;;  %1662 = vmatprep.subr.mxu1 %v5203_v56 }
 0x588   :  { %1592 = vmatpush1.msra.mxu0 %v5284_v17  ;;  %1663 = vmatpush1.msra.mxu1 %v5287_v18 }
 0x589   :  { %1593 = vmatprep.subr.mxu0 %v5290_v19  ;;  %1664 = vmatprep.subr.mxu1 %v5293_v21 }
 0x58a   :  { %1594 = vmatpush1.msra.mxu0 %v5296_v22  ;;  %1665 = vmatpush1.msra.mxu1 %v5299_v24 }
 0x58b   :  { %1595 = vmatprep.subr.mxu0 %v5302_v11  ;;  %1666 = vmatprep.subr.mxu1 %v5305_v32 }
 0x58c   :  { %1596 = vmatpush1.msra.mxu0 %v5308_v33  ;;  %1667 = vmatpush1.msra.mxu1 %v5311_v34 }
 0x58d   :  { %1597 = vmatprep.subr.mxu0 %v5314_v35  ;;  %1668 = vmatprep.subr.mxu1 %v5317_v36 }
 0x58e   :  { %1598 = vmatpush1.msra.mxu0 %v5320_v37  ;;  %1669 = vmatpush1.msra.mxu1 %v5323_v39 }
 0x58f   :  { %1599 = vmatprep.subr.mxu0 %v5326_v40  ;;  %1670 = vmatprep.subr.mxu1 %v5329_v41 }
 0x590   :  { %1600 = vmatpush1.msra.mxu0 %v5332_v42  ;;  %1671 = vmatpush1.msra.mxu1 %v5335_v43 }
 0x591   :  { %1601 = vmatprep.subr.mxu0 %v5338_v44  ;;  %1672 = vmatprep.subr.mxu1 %v5341_v45 }
 0x592   :  { %1602 = vmatpush1.msra.mxu0 %v5344_v46  ;;  %1673 = vmatpush1.msra.mxu1 %v6924_v26 }
 0x593   :  { %1603 = vmatprep.subr.mxu0 %v6925_v10  ;;  %1674 = vmatprep.subr.mxu1 %v6926_v48 }
 0x594   :  { %1604 = vmatpush1.msra.mxu0 %v6927_v49  ;;  %1675 = vmatpush1.msra.mxu1 %v6928_v3  ;;  %v6946_v3 = vld [vmem:[#allocation61_spill] sm:$0xff] }
 0x595   :  { %1605 = vmatprep.subr.mxu0 %v6929_v8  ;;  %1676 = vmatprep.subr.mxu1 %v6930_v13 }
 0x596   :  { %1606 = vmatpush1.msra.mxu0 %v6931_v12  ;;  %1677 = vmatpush1.msra.mxu1 %v6932_v9  ;;  %v6942_v9 = vld [vmem:[#allocation24_spill] sm:$0xff] }
 0x597   :  { %1607 = vmatprep.subr.mxu0 %v6933_v14  ;;  %1678 = vmatprep.subr.mxu1 %v6934_v5  ;;  %v6943_v14 = vld [vmem:[#allocation25_spill] sm:$0xff] }
 0x598   :  { %1608 = vmatpush1.msra.mxu0 %v6935_v53  ;;  %1679 = vmatpush1.msra.mxu1 %v6936_v6  ;;  %v6944_v53 = vld [vmem:[#allocation60_spill] sm:$0xff] }
 0x599   :  { %1609 = vmatprep.subr.mxu0 %v6937_v7  ;;  %1680 = vmatprep.subr.mxu1 %v6938_v62  ;;  %v6945_v7 = vld [vmem:[#allocation62_spill] sm:$0xff] }
 0x59a   :  { %1610 = vmatpush1.msra.mxu0 %v6939_v23  ;;  %1643 = vmatprep.mubr.f32.mxu0 %v6940_v25 }
 0x59b   :  { %1681 = vmatpush1.msra.mxu1 %v6941_v50  ;;  %1714 = vmatprep.mubr.f32.mxu1 %v6940_v25  ;;  %v6947_v25 = vld [vmem:[#allocation63_spill] sm:$0xff] }
 0x59c   :  { %1754 = vmatprep.subr.mxu0 %v6942_v9  ;;  %1825 = vmatprep.subr.mxu1 %v6943_v14 }
 0x63b   :  { %v1470_v5 = vpop.f32.mrf.mxu0  ;;  %v1541_v23 = vpop.f32.mrf.mxu1 }
 0x63c   :  { %v1546_v12 = vadd.f32 %v1470_v5, %v6944_v53  ;;  %v1548_v49 = vadd.f32 %v1541_v23, %v6946_v3 }
 0x63d   :  { %v1472_v6 = vpop.f32.mrf.mxu0  ;;  %v1543_v50 = vpop.f32.mrf.mxu1 }
 0x63e   :  { %v3862_v13 = vmul.f32 -1.442695, %v1546_v12  ;;  %v1547_v8 = vadd.f32 %v1472_v6, %v6945_v7  ;;  %v3864_v48 = vmul.f32 -1.442695, %v1548_v49  ;;  %v1549_v10 = vadd.f32 %v1543_v50, %v6947_v25 }
 0x640   :  { %4043 = vpow2.f32 %v3862_v13  ;;  %v3863_v62 = vmul.f32 -1.442695, %v1547_v8 }
 0x642   :  { %4045 = vpow2.f32 %v3863_v62 }
 0x643   :  { %4047 = vpow2.f32 %v3864_v48 }
 0x644   :  { %4049 = vtanh.f32 %v1549_v10 }
 0x64d   :  { %v4044_v9 = vpop.eup %4043 }
 0x64e   :  { %v1559_v26 = vadd.f32 1.0, %v4044_v9  ;;  %v2052_v9 = vld [vmem:[#allocation9 + $0x1e0] sm:$0xff] }
 0x64f   :  { %v4046_v14 = vpop.eup %4045 }
 0x650   :  { %4051 = vrcp.f32 %v1559_v26  ;;  %v1560_v5 = vadd.f32 1.0, %v4046_v14  ;;  %v4048_v12 = vpop.eup %4047  ;;  %v2054_v14 = vld [vmem:[#allocation9 + $0x1f0] sm:$0xff] }
 0x651   :  { %v4050_v53 = vpop.eup %4049  ;;  %v1561_v7 = vadd.f32 1.0, %v4048_v12  ;;  %v2051_v12 = vld [vmem:[#allocation9 + $0x1d8] sm:$0xff] }
 0x652   :  { %4053 = vrcp.f32 %v1560_v5  ;;  %v2049_v5 = vld [vmem:[#allocation9 + $0x1c8] sm:$0xff] }
 0x653   :  { %4055 = vrcp.f32 %v1561_v7  ;;  %v2044_v7 = vld [vmem:[#allocation9 + $0x1a0] sm:$0xff] }
 0x65d   :  { %v4052_v13 = vpop.eup %4051 }
 0x65e   :  { %v1570_v8 = vmul.f32 %v4052_v13, %v4050_v53  ;;  %v2048_v53 = vld [vmem:[#allocation9 + $0x1c0] sm:$0xff]  ;;  %v2050_v13 = vld [vmem:[#allocation9 + $0x1d0] sm:$0xff] }
 0x65f   :  { %v4054_v6 = vpop.eup %4053 }
 0x660   :  { %v1569_v3 = vmul.f32 %v4054_v6, %v5407_v54  ;;  %v4056_v50 = vpop.eup %4055  ;;  %v2047_v6 = vld [vmem:[#allocation9 + $0x1b8] sm:$0xff] }
 0x662   :  { %v5485_v62 = vadd.f32 %v1570_v8, %v1569_v3  ;;  %v2045_v8 = vld [vmem:[#allocation9 + $0x1a8] sm:$0xff]  ;;  %v2046_v3 = vld [vmem:[#allocation9 + $0x1b0] sm:$0xff] }
 0x664   :  { %4057 = vtanh.f32 %v5485_v62 }
 0x671   :  { %v4058_v48 = vpop.eup %4057 }
 0x672   :  { %v5488_v49 = vmul.f32 %v4058_v48, %v4056_v50  ;;  %v2043_v50 = vld [vmem:[#allocation9 + $0x198] sm:$0xff]  ;;  %v2040_v48 = vld [vmem:[#allocation9 + $0x180] sm:$0xff] }
 0x674   :  { %1644 = vmatmul.mubr.f32.vlgmr.msra.gmra.mxu0 %v5488_v49  ;;  %1715 = vmatmul.mubr.f32.vlgmr.msra.gmra.mxu1 %v5488_v49 }
 0x675   :  { %1755 = vmatpush1.msra.mxu0 %v5134_v55  ;;  %1826 = vmatpush1.msra.mxu1 %v5137_v29  ;;  %v6950_v55 = vld [vmem:[#allocation27_spill] sm:$0xff]  ;;  %v6951_v29 = vld [vmem:[#allocation28_spill] sm:$0xff] }
 0x676   :  { %1756 = vmatprep.subr.mxu0 %v5140_v58  ;;  %1827 = vmatprep.subr.mxu1 %v5143_v59  ;;  %v6952_v58 = vld [vmem:[#allocation29_spill] sm:$0xff]  ;;  %v6953_v59 = vld [vmem:[#allocation30_spill] sm:$0xff] }
 0x677   :  { %1757 = vmatpush1.msra.mxu0 %v5146_v0  ;;  %1828 = vmatpush1.msra.mxu1 %v5149_v47  ;;  %v6954_v0 = vld [vmem:[#allocation31_spill] sm:$0xff]  ;;  %v6955_v47 = vld [vmem:[#allocation32_spill] sm:$0xff] }
 0x678   :  { %1758 = vmatprep.subr.mxu0 %v5152_v4  ;;  %1829 = vmatprep.subr.mxu1 %v5155_v61  ;;  %v6956_v4 = vld [vmem:[#allocation33_spill] sm:$0xff]  ;;  %v6957_v61 = vld [vmem:[#allocation34_spill] sm:$0xff] }
 0x679   :  { %1759 = vmatpush1.msra.mxu0 %v5158_v2  ;;  %1830 = vmatpush1.msra.mxu1 %v5161_v57  ;;  %v6958_v2 = vld [vmem:[#allocation35_spill] sm:$0xff]  ;;  %v6959_v57 = vld [vmem:[#allocation36_spill] sm:$0xff] }
 0x67a   :  { %1760 = vmatprep.subr.mxu0 %v5164_v52  ;;  %1831 = vmatprep.subr.mxu1 %v5167_v1  ;;  %v6960_v52 = vld [vmem:[#allocation37_spill] sm:$0xff]  ;;  %v6961_v1 = vld [vmem:[#allocation38_spill] sm:$0xff] }
 0x67b   :  { %1761 = vmatpush1.msra.mxu0 %v5170_v38  ;;  %1832 = vmatpush1.msra.mxu1 %v5173_v27  ;;  %v6962_v38 = vld [vmem:[#allocation39_spill] sm:$0xff]  ;;  %v6963_v27 = vld [vmem:[#allocation40_spill] sm:$0xff] }
 0x67c   :  { %1762 = vmatprep.subr.mxu0 %v5176_v28  ;;  %1833 = vmatprep.subr.mxu1 %v5179_v30  ;;  %v6964_v28 = vld [vmem:[#allocation41_spill] sm:$0xff]  ;;  %v6965_v30 = vmov 0.0  }
 0x67d   :  { %1763 = vmatpush1.msra.mxu0 %v6900_v15  ;;  %1834 = vmatpush1.msra.mxu1 %v6901_v16 }
 0x67e   :  { %1764 = vmatprep.subr.mxu0 %v5188_v63  ;;  %1835 = vmatprep.subr.mxu1 %v5191_v51  ;;  %v6966_v51 = vld [vmem:[#allocation64_spill] sm:$0xff] }
 0x67f   :  { %1765 = vmatpush1.msra.mxu0 %v5194_v60  ;;  %1836 = vmatpush1.msra.mxu1 %v5197_v20  ;;  %v6948_v20 = vld [vmem:[#allocation45_spill] sm:$0xff]  ;;  %v6949_v60 = vld [vmem:[#allocation47_spill] sm:$0xff] }
 0x680   :  { %1766 = vmatprep.subr.mxu0 %v5200_v31  ;;  %1837 = vmatprep.subr.mxu1 %v5203_v56  ;;  %v2053_v31 = vld [vmem:[#allocation9 + $0x1e8] sm:$0xff]  ;;  %v2055_v56 = vld [vmem:[#allocation9 + $0x1f8] sm:$0xff] }
 0x681   :  { %1767 = vmatpush1.msra.mxu0 %v5284_v17  ;;  %1838 = vmatpush1.msra.mxu1 %v5287_v18  ;;  %v6967_v18 = vld [vmem:[#allocation66_spill] sm:$0xff] }
 0x682   :  { %1768 = vmatprep.subr.mxu0 %v5290_v19  ;;  %1839 = vmatprep.subr.mxu1 %v5293_v21 }
 0x683   :  { %1769 = vmatpush1.msra.mxu0 %v5296_v22  ;;  %1840 = vmatpush1.msra.mxu1 %v5299_v24  ;;  %v6968_v24 = vld [vmem:[#allocation65_spill] sm:$0xff] }
 0x684   :  { %1770 = vmatprep.subr.mxu0 %v5302_v11  ;;  %1841 = vmatprep.subr.mxu1 %v5305_v32 }
 0x685   :  { %1771 = vmatpush1.msra.mxu0 %v5308_v33  ;;  %1842 = vmatpush1.msra.mxu1 %v5311_v34  ;;  %v6969_v34 = vld [vmem:[#allocation67_spill] sm:$0xff] }
 0x686   :  { %1772 = vmatprep.subr.mxu0 %v5314_v35  ;;  %1843 = vmatprep.subr.mxu1 %v5317_v36 }
 0x687   :  { %1773 = vmatpush1.msra.mxu0 %v5320_v37  ;;  %1844 = vmatpush1.msra.mxu1 %v5323_v39 }
 0x688   :  { %1774 = vmatprep.subr.mxu0 %v5326_v40  ;;  %1845 = vmatprep.subr.mxu1 %v5329_v41 }
 0x689   :  { %1775 = vmatpush1.msra.mxu0 %v5332_v42  ;;  %1846 = vmatpush1.msra.mxu1 %v5335_v43 }
 0x68a   :  { %1776 = vmatprep.subr.mxu0 %v5338_v44  ;;  %1847 = vmatprep.subr.mxu1 %v5341_v45 }
 0x68b   :  { %1777 = vmatpush1.msra.mxu0 %v5344_v46  ;;  %1848 = vmatpush1.msra.mxu1 %v6948_v20  ;;  %v2042_v20 = vld [vmem:[#allocation9 + $0x190] sm:$0xff] }
 0x68c   :  { %1778 = vmatprep.subr.mxu0 %v6949_v60  ;;  %1849 = vmatprep.subr.mxu1 %v6950_v55  ;;  %v2037_v60 = vld [vmem:[#allocation9 + $0x168] sm:$0xff]  ;;  %v2039_v55 = vld [vmem:[#allocation9 + $0x178] sm:$0xff] }
 0x68d   :  { %1779 = vmatpush1.msra.mxu0 %v6951_v29  ;;  %1850 = vmatpush1.msra.mxu1 %v6952_v58  ;;  %v2036_v29 = vld [vmem:[#allocation9 + $0x160] sm:$0xff]  ;;  %v2038_v58 = vld [vmem:[#allocation9 + $0x170] sm:$0xff] }
 0x68e   :  { %1780 = vmatprep.subr.mxu0 %v6953_v59  ;;  %1851 = vmatprep.subr.mxu1 %v6954_v0  ;;  %v2033_v59 = vld [vmem:[#allocation9 + $0x148] sm:$0xff]  ;;  %v2035_v0 = vld [vmem:[#allocation9 + $0x158] sm:$0xff] }
 0x68f   :  { %1781 = vmatpush1.msra.mxu0 %v6955_v47  ;;  %1852 = vmatpush1.msra.mxu1 %v6956_v4  ;;  %v2032_v47 = vld [vmem:[#allocation9 + $0x140] sm:$0xff]  ;;  %v2034_v4 = vld [vmem:[#allocation9 + $0x150] sm:$0xff] }
 0x690   :  { %1782 = vmatprep.subr.mxu0 %v6957_v61  ;;  %1853 = vmatprep.subr.mxu1 %v6958_v2  ;;  %v2029_v61 = vld [vmem:[#allocation9 + $0x128] sm:$0xff]  ;;  %v2031_v2 = vld [vmem:[#allocation9 + $0x138] sm:$0xff] }
 0x691   :  { %1783 = vmatpush1.msra.mxu0 %v6959_v57  ;;  %1854 = vmatpush1.msra.mxu1 %v6960_v52  ;;  %v2028_v57 = vld [vmem:[#allocation9 + $0x120] sm:$0xff]  ;;  %v2030_v52 = vld [vmem:[#allocation9 + $0x130] sm:$0xff] }
 0x692   :  { %1784 = vmatprep.subr.mxu0 %v6961_v1  ;;  %1855 = vmatprep.subr.mxu1 %v6962_v38  ;;  %v2025_v1 = vld [vmem:[#allocation9 + $0x108] sm:$0xff]  ;;  %v2027_v38 = vld [vmem:[#allocation9 + $0x118] sm:$0xff] }
 0x693   :  { %1785 = vmatpush1.msra.mxu0 %v6963_v27  ;;  %1856 = vmatpush1.msra.mxu1 %v6964_v28  ;;  %v2024_v27 = vld [vmem:[#allocation9 + $0x100] sm:$0xff]  ;;  %v2026_v28 = vld [vmem:[#allocation9 + $0x110] sm:$0xff] }
 0x694   :  { %1818 = vmatprep.mubr.f32.mxu0 %v6965_v30  ;;  %1889 = vmatprep.mubr.f32.mxu1 %v6965_v30 }
 0x695   :  { %2085 = vmatprep.subr.mxu0 %v2053_v31  ;;  %2198 = vmatprep.subr.mxu1 %v2055_v56  ;;  %v2021_v31 = vld [vmem:[#allocation9 + $0xe8] sm:$0xff]  ;;  %v2023_v56 = vld [vmem:[#allocation9 + $0xf8] sm:$0xff] }
 0x734   :  { %v1645_v63 = vpop.f32.mrf.mxu0  ;;  %v1716_v22 = vpop.f32.mrf.mxu1 }
 0x735   :  { %v1721_v15 = vadd.f32 %v1645_v63, %v6966_v51  ;;  %v1723_v11 = vadd.f32 %v1716_v22, %v6968_v24  ;;  %v2020_v63 = vld [vmem:[#allocation9 + $0xe0] sm:$0xff]  ;;  %v2022_v51 = vld [vmem:[#allocation9 + $0xf0] sm:$0xff] }
 0x736   :  { %v1647_v16 = vpop.f32.mrf.mxu0  ;;  %v1718_v32 = vpop.f32.mrf.mxu1  ;;  %v2012_v22 = vld [vmem:[#allocation9 + $0xa0] sm:$0xff]  ;;  %v2014_v24 = vld [vmem:[#allocation9 + $0xb0] sm:$0xff] }
 0x737   :  { %v3865_v17 = vmul.f32 -1.442695, %v1721_v15  ;;  %v1722_v19 = vadd.f32 %v1647_v16, %v6967_v18  ;;  %v3867_v33 = vmul.f32 -1.442695, %v1723_v11  ;;  %v1724_v35 = vadd.f32 %v1718_v32, %v6969_v34  ;;  %v2017_v15 = vld [vmem:[#allocation9 + $0xc8] sm:$0xff]  ;;  %v2019_v16 = vld [vmem:[#allocation9 + $0xd8] sm:$0xff] }
 0x738   :  { %v2018_v18 = vld [vmem:[#allocation9 + $0xd0] sm:$0xff]  ;;  %v2009_v11 = vld [vmem:[#allocation9 + $0x88] sm:$0xff]  ;;  %v2011_v32 = vld [vmem:[#allocation9 + $0x98] sm:$0xff] }
 0x739   :  { %4059 = vpow2.f32 %v3865_v17  ;;  %v3866_v21 = vmul.f32 -1.442695, %v1722_v19  ;;  %v2016_v17 = vld [vmem:[#allocation9 + $0xc0] sm:$0xff]  ;;  %v2013_v19 = vld [vmem:[#allocation9 + $0xa8] sm:$0xff]  ;;  %v2010_v34 = vld [vmem:[#allocation9 + $0x90] sm:$0xff] }
 0x73b   :  { %4061 = vpow2.f32 %v3866_v21  ;;  %v2015_v21 = vld [vmem:[#allocation9 + $0xb8] sm:$0xff] }
 0x73c   :  { %4063 = vpow2.f32 %v3867_v33  ;;  %v2008_v33 = vld [vmem:[#allocation9 + $0x80] sm:$0xff] }
 0x73d   :  { %4065 = vtanh.f32 %v1724_v35  ;;  %v2005_v35 = vld [vmem:[#allocation9 + $0x68] sm:$0xff] }
 0x746   :  { %v4060_v36 = vpop.eup %4059 }
 0x747   :  { %v1734_v37 = vadd.f32 1.0, %v4060_v36  ;;  %v2007_v36 = vld [vmem:[#allocation9 + $0x78] sm:$0xff] }
 0x748   :  { %v4062_v39 = vpop.eup %4061 }
 0x749   :  { %4067 = vrcp.f32 %v1734_v37  ;;  %v1735_v40 = vadd.f32 1.0, %v4062_v39  ;;  %v4064_v41 = vpop.eup %4063  ;;  %v2004_v37 = vld [vmem:[#allocation9 + $0x60] sm:$0xff]  ;;  %v2006_v39 = vld [vmem:[#allocation9 + $0x70] sm:$0xff] }
 0x74a   :  { %v4066_v42 = vpop.eup %4065  ;;  %v1736_v46 = vadd.f32 1.0, %v4064_v41  ;;  %v2003_v41 = vld [vmem:[#allocation9 + $0x58] sm:$0xff] }
 0x74b   :  { %4069 = vrcp.f32 %v1735_v40  ;;  %v2001_v40 = vld [vmem:[#allocation9 + $0x48] sm:$0xff] }
 0x74c   :  { %4071 = vrcp.f32 %v1736_v46  ;;  %v1996_v46 = vld [vmem:[#allocation9 + $0x20] sm:$0xff] }
 0x756   :  { %v4068_v43 = vpop.eup %4067 }
 0x757   :  { %v1745_v44 = vmul.f32 %v4068_v43, %v4066_v42  ;;  %v2000_v42 = vld [vmem:[#allocation9 + $0x40] sm:$0xff]  ;;  %v2002_v43 = vld [vmem:[#allocation9 + $0x50] sm:$0xff] }
 0x758   :  { %v4070_v45 = vpop.eup %4069 }
 0x759   :  { %v1744_v54 = vmul.f32 %v4070_v45, %v5485_v62  ;;  %v4072_v10 = vpop.eup %4071  ;;  %v2041_v62 = vld [vmem:[#allocation9 + $0x188] sm:$0xff]  ;;  %v1999_v45 = vld [vmem:[#allocation9 + $0x38] sm:$0xff] }
 0x75b   :  { %v5561_v26 = vadd.f32 %v1745_v44, %v1744_v54  ;;  %v1997_v44 = vld [vmem:[#allocation9 + $0x28] sm:$0xff]  ;;  %v1998_v54 = vld [vmem:[#allocation9 + $0x30] sm:$0xff] }
 0x75d   :  { %4073 = vtanh.f32 %v5561_v26 }
 0x76a   :  { %v4074_v23 = vpop.eup %4073 }
 0x76b   :  { %v5564_v25 = vmul.f32 %v4074_v23, %v4072_v10  ;;  %v1993_v10 = vld [vmem:[#allocation9 + $0x8] sm:$0xff]  ;;  %v1995_v23 = vld [vmem:[#allocation9 + $0x18] sm:$0xff] }
 0x76d   :  { %1819 = vmatmul.mubr.f32.vlgmr.msra.gmra.mxu0 %v5564_v25  ;;  %1890 = vmatmul.mubr.f32.vlgmr.msra.gmra.mxu1 %v5564_v25 }
 0x76e   :  { %2086 = vmatpush1.msra.mxu0 %v2052_v9  ;;  %2199 = vmatpush1.msra.mxu1 %v2054_v14  ;;  %v1992_v9 = vld [vmem:[#allocation9] sm:$0xff]  ;;  %v1994_v14 = vld [vmem:[#allocation9 + $0x10] sm:$0xff] }
 0x76f   :  { %2087 = vmatprep.subr.mxu0 %v2049_v5  ;;  %2200 = vmatprep.subr.mxu1 %v2051_v12  ;;  %v6970_v5 = vld [vmem:[#allocation72_spill] sm:$0xff]  ;;  %v6971_v12 = vld [vmem:[#allocation23_spill] sm:$0xff] }
 0x770   :  { %2088 = vmatpush1.msra.mxu0 %v2048_v53  ;;  %2201 = vmatpush1.msra.mxu1 %v2050_v13  ;;  %v6972_v53 = vld [vmem:[#allocation26_spill] sm:$0xff] }
 0x771   :  { %2089 = vmatprep.subr.mxu0 %v2045_v8  ;;  %2202 = vmatprep.subr.mxu1 %v2047_v6  ;;  %v6973_v13 = vld [vmem:[#allocation46_spill] sm:$0xff]  ;;  %v5598_v6 = vld [vmem:[#allocation10 + $0x3e8] sm:$0xff] }
 0x772   :  { %2090 = vmatpush1.msra.mxu0 %v2044_v7  ;;  %2203 = vmatpush1.msra.mxu1 %v2046_v3  ;;  %v6974_v8 = vld [vmem:[#allocation42_spill] sm:$0xff]  ;;  %6975 = vst [vmem:[#allocation43_spill] sm:$0xff] %v5598_v6  ;;  %v5606_v3 = vld [vmem:[#allocation10 + $0x3f0] sm:$0xff] }
 0x773   :  { %2091 = vmatprep.subr.mxu0 %v2041_v62  ;;  %2204 = vmatprep.subr.mxu1 %v2043_v50  ;;  %v5600_v7 = vld [vmem:[#allocation10 + $0x3f8] sm:$0xff]  ;;  %v5616_v50 = vld [vmem:[#allocation10 + $0x3c0] sm:$0xff] }
 0x774   :  { %2092 = vmatpush1.msra.mxu0 %v2040_v48  ;;  %2205 = vmatpush1.msra.mxu1 %v2042_v20  ;;  %6976 = vst [vmem:[#allocation48_spill] sm:$0xff] %v5600_v7  ;;  %v5612_v62 = vld [vmem:[#allocation10 + $0x3d8] sm:$0xff]  ;;  %v5618_v48 = vld [vmem:[#allocation10 + $0x3d0] sm:$0xff]  ;;  %v5622_v20 = vld [vmem:[#allocation10 + $0x3a8] sm:$0xff] }
 0x775   :  { %2093 = vmatprep.subr.mxu0 %v2037_v60  ;;  %2206 = vmatprep.subr.mxu1 %v2039_v55  ;;  %v5624_v60 = vld [vmem:[#allocation10 + $0x3b8] sm:$0xff]  ;;  %v5628_v55 = vld [vmem:[#allocation10 + $0x3a0] sm:$0xff] }
 0x776   :  { %2094 = vmatpush1.msra.mxu0 %v2036_v29  ;;  %2207 = vmatpush1.msra.mxu1 %v2038_v58  ;;  %v5630_v29 = vld [vmem:[#allocation10 + $0x3b0] sm:$0xff]  ;;  %v5634_v58 = vld [vmem:[#allocation10 + $0x388] sm:$0xff] }
 0x777   :  { %2095 = vmatprep.subr.mxu0 %v2033_v59  ;;  %2208 = vmatprep.subr.mxu1 %v2035_v0  ;;  %v5636_v59 = vld [vmem:[#allocation10 + $0x398] sm:$0xff]  ;;  %v5640_v0 = vld [vmem:[#allocation10 + $0x380] sm:$0xff] }
 0x778   :  { %2096 = vmatpush1.msra.mxu0 %v2032_v47  ;;  %2209 = vmatpush1.msra.mxu1 %v2034_v4  ;;  %v5642_v47 = vld [vmem:[#allocation10 + $0x390] sm:$0xff]  ;;  %v5646_v4 = vld [vmem:[#allocation10 + $0x368] sm:$0xff] }
 0x779   :  { %2097 = vmatprep.subr.mxu0 %v2029_v61  ;;  %2210 = vmatprep.subr.mxu1 %v2031_v2  ;;  %v5648_v61 = vld [vmem:[#allocation10 + $0x378] sm:$0xff]  ;;  %v5652_v2 = vld [vmem:[#allocation10 + $0x360] sm:$0xff] }
 0x77a   :  { %2098 = vmatpush1.msra.mxu0 %v2028_v57  ;;  %2211 = vmatpush1.msra.mxu1 %v2030_v52  ;;  %v5654_v57 = vld [vmem:[#allocation10 + $0x370] sm:$0xff]  ;;  %v5658_v52 = vld [vmem:[#allocation10 + $0x348] sm:$0xff] }
 0x77b   :  { %2099 = vmatprep.subr.mxu0 %v2025_v1  ;;  %2212 = vmatprep.subr.mxu1 %v2027_v38  ;;  %v5660_v1 = vld [vmem:[#allocation10 + $0x358] sm:$0xff]  ;;  %v5664_v38 = vld [vmem:[#allocation10 + $0x340] sm:$0xff] }
 0x77c   :  { %2100 = vmatpush1.msra.mxu0 %v2024_v27  ;;  %2213 = vmatpush1.msra.mxu1 %v2026_v28  ;;  %v5666_v27 = vld [vmem:[#allocation10 + $0x350] sm:$0xff]  ;;  %v5670_v28 = vld [vmem:[#allocation10 + $0x328] sm:$0xff] }
 0x77d   :  { %2101 = vmatprep.subr.mxu0 %v2021_v31  ;;  %2214 = vmatprep.subr.mxu1 %v2023_v56  ;;  %v5672_v31 = vld [vmem:[#allocation10 + $0x338] sm:$0xff]  ;;  %v5676_v56 = vld [vmem:[#allocation10 + $0x320] sm:$0xff] }
 0x77e   :  { %2102 = vmatpush1.msra.mxu0 %v2020_v63  ;;  %2215 = vmatpush1.msra.mxu1 %v2022_v51  ;;  %v5678_v63 = vld [vmem:[#allocation10 + $0x330] sm:$0xff]  ;;  %v5682_v51 = vld [vmem:[#allocation10 + $0x308] sm:$0xff] }
 0x77f   :  { %2103 = vmatprep.subr.mxu0 %v2017_v15  ;;  %2216 = vmatprep.subr.mxu1 %v2019_v16  ;;  %v5684_v15 = vld [vmem:[#allocation10 + $0x318] sm:$0xff]  ;;  %v5688_v16 = vld [vmem:[#allocation10 + $0x300] sm:$0xff] }
 0x780   :  { %2104 = vmatpush1.msra.mxu0 %v2016_v17  ;;  %2217 = vmatpush1.msra.mxu1 %v2018_v18  ;;  %v5690_v17 = vld [vmem:[#allocation10 + $0x310] sm:$0xff]  ;;  %v5694_v18 = vld [vmem:[#allocation10 + $0x2e8] sm:$0xff] }
 0x781   :  { %2105 = vmatprep.subr.mxu0 %v2013_v19  ;;  %2218 = vmatprep.subr.mxu1 %v2015_v21  ;;  %v5696_v19 = vld [vmem:[#allocation10 + $0x2f8] sm:$0xff]  ;;  %v5700_v21 = vld [vmem:[#allocation10 + $0x2e0] sm:$0xff] }
 0x782   :  { %2106 = vmatpush1.msra.mxu0 %v2012_v22  ;;  %2219 = vmatpush1.msra.mxu1 %v2014_v24  ;;  %v5702_v22 = vld [vmem:[#allocation10 + $0x2f0] sm:$0xff]  ;;  %v5706_v24 = vld [vmem:[#allocation10 + $0x2c8] sm:$0xff] }
 0x783   :  { %2107 = vmatprep.subr.mxu0 %v2009_v11  ;;  %2220 = vmatprep.subr.mxu1 %v2011_v32  ;;  %v5708_v11 = vld [vmem:[#allocation10 + $0x2d8] sm:$0xff]  ;;  %v5712_v32 = vld [vmem:[#allocation10 + $0x2c0] sm:$0xff] }
 0x784   :  { %2108 = vmatpush1.msra.mxu0 %v2008_v33  ;;  %2221 = vmatpush1.msra.mxu1 %v2010_v34  ;;  %v5714_v33 = vld [vmem:[#allocation10 + $0x2d0] sm:$0xff]  ;;  %v5718_v34 = vld [vmem:[#allocation10 + $0x2a8] sm:$0xff] }
 0x785   :  { %2109 = vmatprep.subr.mxu0 %v2005_v35  ;;  %2222 = vmatprep.subr.mxu1 %v2007_v36  ;;  %v5720_v35 = vld [vmem:[#allocation10 + $0x2b8] sm:$0xff]  ;;  %v5724_v36 = vld [vmem:[#allocation10 + $0x2a0] sm:$0xff] }
 0x786   :  { %2110 = vmatpush1.msra.mxu0 %v2004_v37  ;;  %2223 = vmatpush1.msra.mxu1 %v2006_v39  ;;  %v5726_v37 = vld [vmem:[#allocation10 + $0x2b0] sm:$0xff]  ;;  %v5730_v39 = vld [vmem:[#allocation10 + $0x288] sm:$0xff] }
 0x787   :  { %2111 = vmatprep.subr.mxu0 %v2001_v40  ;;  %2224 = vmatprep.subr.mxu1 %v2003_v41  ;;  %6977 = vst [vmem:[#allocation50_spill] sm:$0xff] %v5726_v37  ;;  %6978 = vst [vmem:[#allocation49_spill] sm:$0xff] %v5730_v39  ;;  %v5732_v40 = vld [vmem:[#allocation10 + $0x298] sm:$0xff]  ;;  %v5736_v41 = vld [vmem:[#allocation10 + $0x280] sm:$0xff] }
 0x788   :  { %2112 = vmatpush1.msra.mxu0 %v2000_v42  ;;  %2225 = vmatpush1.msra.mxu1 %v2002_v43  ;;  %6979 = vst [vmem:[#allocation51_spill] sm:$0xff] %v5732_v40  ;;  %6980 = vst [vmem:[#allocation52_spill] sm:$0xff] %v5736_v41  ;;  %v5738_v42 = vld [vmem:[#allocation10 + $0x290] sm:$0xff]  ;;  %v5742_v43 = vld [vmem:[#allocation10 + $0x268] sm:$0xff] }
 0x789   :  { %2113 = vmatprep.subr.mxu0 %v1997_v44  ;;  %2226 = vmatprep.subr.mxu1 %v1999_v45  ;;  %6981 = vst [vmem:[#allocation54_spill] sm:$0xff] %v5738_v42  ;;  %6982 = vst [vmem:[#allocation53_spill] sm:$0xff] %v5742_v43  ;;  %v5744_v44 = vld [vmem:[#allocation10 + $0x278] sm:$0xff]  ;;  %v5748_v45 = vld [vmem:[#allocation10 + $0x260] sm:$0xff] }
 0x78a   :  { %2114 = vmatpush1.msra.mxu0 %v1996_v46  ;;  %2227 = vmatpush1.msra.mxu1 %v1998_v54  ;;  %6983 = vst [vmem:[#allocation55_spill] sm:$0xff] %v5744_v44  ;;  %6984 = vst [vmem:[#allocation21_spill] sm:$0xff] %v5748_v45  ;;  %v5750_v46 = vld [vmem:[#allocation10 + $0x270] sm:$0xff]  ;;  %v5754_v54 = vld [vmem:[#allocation10 + $0x248] sm:$0xff] }
 0x78b   :  { %2115 = vmatprep.subr.mxu0 %v1993_v10  ;;  %2228 = vmatprep.subr.mxu1 %v1995_v23  ;;  %6985 = vst [vmem:[#allocation22_spill] sm:$0xff] %v5750_v46  ;;  %6986 = vst [vmem:[#allocation56_spill] sm:$0xff] %v5754_v54  ;;  %v5756_v10 = vld [vmem:[#allocation10 + $0x258] sm:$0xff]  ;;  %v5760_v23 = vld [vmem:[#allocation10 + $0x240] sm:$0xff] }
 0x78c   :  { %2116 = vmatpush1.msra.mxu0 %v1992_v9  ;;  %2149 = vmatprep.mubr.f32.mxu0 %v6965_v30  ;;  %6987 = vst [vmem:[#allocation58_spill] sm:$0xff] %v5756_v10  ;;  %6988 = vst [vmem:[#allocation57_spill] sm:$0xff] %v5760_v23  ;;  %v5762_v9 = vld [vmem:[#allocation10 + $0x250] sm:$0xff] }
 0x78d   :  { %2229 = vmatpush1.msra.mxu1 %v1994_v14  ;;  %2262 = vmatprep.mubr.f32.mxu1 %v6965_v30  ;;  %6989 = vst [vmem:[#allocation59_spill] sm:$0xff] %v5762_v9  ;;  %v5766_v14 = vld [vmem:[#allocation10 + $0x228] sm:$0xff] }
 0x78e   :  { %2150 = vmatmul.mubr.f32.vlgmr.msra.gmra.mxu0 %v6970_v5  ;;  %2263 = vmatmul.mubr.f32.vlgmr.msra.gmra.mxu1 %v6970_v5  ;;  %6990 = vst [vmem:[#allocation24_spill] sm:$0xff] %v5766_v14  ;;  %v5768_v5 = vld [vmem:[#allocation10 + $0x238] sm:$0xff] }
 0x78f   :  { %2155 = vmatprep.mubr.f32.mxu0 %v6965_v30  ;;  %2268 = vmatprep.mubr.f32.mxu1 %v6965_v30  ;;  %6991 = vst [vmem:[#allocation25_spill] sm:$0xff] %v5768_v5 }
 0x790   :  { %2347 = vmatprep.subr.mxu0 %v5598_v6  ;;  %2418 = vmatprep.subr.mxu1 %v5600_v7 }
 0x791   :  { %2419 = vmatpush1.msra.mxu1 %v5606_v3 }
 0x792   :  { %2156 = vmatmul.mubr.f32.gmra.mxu0 %v6971_v12  ;;  %2269 = vmatmul.mubr.f32.gmra.mxu1 %v6971_v12  ;;  %v5772_v12 = vld [vmem:[#allocation10 + $0x220] sm:$0xff] }
 0x793   :  { %2161 = vmatprep.mubr.f32.mxu0 %v6965_v30  ;;  %2274 = vmatprep.mubr.f32.mxu1 %v6965_v30  ;;  %6992 = vst [vmem:[#allocation60_spill] sm:$0xff] %v5772_v12 }
 0x794   :  { %2420 = vmatprep.subr.mxu1 %v5612_v62 }
 0x795   :  { %2421 = vmatpush1.msra.mxu1 %v5618_v48 }
 0x796   :  { %2162 = vmatmul.mubr.f32.gmra.mxu0 %v6972_v53  ;;  %2275 = vmatmul.mubr.f32.gmra.mxu1 %v6972_v53  ;;  %v5774_v53 = vld [vmem:[#allocation10 + $0x230] sm:$0xff] }
 0x797   :  { %2167 = vmatprep.mubr.f32.mxu0 %v6965_v30  ;;  %2280 = vmatprep.mubr.f32.mxu1 %v6965_v30  ;;  %6993 = vst [vmem:[#allocation62_spill] sm:$0xff] %v5774_v53 }
 0x798   :  { %2422 = vmatprep.subr.mxu1 %v5624_v60 }
 0x799   :  { %2423 = vmatpush1.msra.mxu1 %v5630_v29 }
 0x79a   :  { %2168 = vmatmul.mubr.f32.gmra.mxu0 %v6973_v13  ;;  %2281 = vmatmul.mubr.f32.gmra.mxu1 %v6973_v13  ;;  %v5776_v13 = vld [vmem:[#allocation10 + $0x208] sm:$0xff] }
 0x79b   :  { %2173 = vmatprep.mubr.f32.mxu0 %v6965_v30  ;;  %2286 = vmatprep.mubr.f32.mxu1 %v6965_v30  ;;  %6994 = vst [vmem:[#allocation61_spill] sm:$0xff] %v5776_v13 }
 0x79c   :  { %2424 = vmatprep.subr.mxu1 %v5636_v59 }
 0x79d   :  { %2425 = vmatpush1.msra.mxu1 %v5642_v47 }
 0x79e   :  { %2174 = vmatmul.mubr.f32.gmra.mxu0 %v6974_v8  ;;  %2287 = vmatmul.mubr.f32.gmra.mxu1 %v6974_v8  ;;  %v5780_v8 = vld [vmem:[#allocation10 + $0x218] sm:$0xff] }
 0x79f   :  { %2179 = vmatprep.mubr.f32.mxu0 %v6965_v30  ;;  %2292 = vmatprep.mubr.f32.mxu1 %v6965_v30  ;;  %6995 = vst [vmem:[#allocation63_spill] sm:$0xff] %v5780_v8 }
 0x7a0   :  { %2426 = vmatprep.subr.mxu1 %v5648_v61 }
 0x7a1   :  { %2427 = vmatpush1.msra.mxu1 %v5654_v57 }
 0x7a2   :  { %2180 = vmatmul.mubr.f32.gmra.mxu0 %v5488_v49  ;;  %2293 = vmatmul.mubr.f32.gmra.mxu1 %v5488_v49  ;;  %v5604_v49 = vld [vmem:[#allocation10 + $0x3e0] sm:$0xff] }
 0x7a3   :  { %2185 = vmatprep.mubr.f32.mxu0 %v6965_v30  ;;  %2298 = vmatprep.mubr.f32.mxu1 %v6965_v30 }
 0x7a4   :  { %2348 = vmatpush1.msra.mxu0 %v5604_v49  ;;  %2428 = vmatprep.subr.mxu1 %v5660_v1 }
 0x7a5   :  { %2429 = vmatpush1.msra.mxu1 %v5666_v27 }
 0x7a6   :  { %2186 = vmatmul.mubr.f32.gmra.mxu0 %v5564_v25  ;;  %2299 = vmatmul.mubr.f32.gmra.mxu1 %v5564_v25  ;;  %v5610_v25 = vld [vmem:[#allocation10 + $0x3c8] sm:$0xff] }
 0x7a7   :  { %2191 = vmatprep.mubr.f32.mxu0 %v6965_v30  ;;  %2304 = vmatprep.mubr.f32.mxu1 %v6965_v30 }
 0x7a8   :  { %2349 = vmatprep.subr.mxu0 %v5610_v25  ;;  %2430 = vmatprep.subr.mxu1 %v5672_v31 }
 0x7a9   :  { %2350 = vmatpush1.msra.mxu0 %v5616_v50  ;;  %2431 = vmatpush1.msra.mxu1 %v5678_v63 }
 0x7aa   :  { %2351 = vmatprep.subr.mxu0 %v5622_v20  ;;  %2432 = vmatprep.subr.mxu1 %v5684_v15 }
 0x7ab   :  { %2352 = vmatpush1.msra.mxu0 %v5628_v55  ;;  %2433 = vmatpush1.msra.mxu1 %v5690_v17 }
 0x7ac   :  { %2353 = vmatprep.subr.mxu0 %v5634_v58  ;;  %2434 = vmatprep.subr.mxu1 %v5696_v19 }
 0x7ad   :  { %2354 = vmatpush1.msra.mxu0 %v5640_v0  ;;  %2435 = vmatpush1.msra.mxu1 %v5702_v22 }
 0x7ae   :  { %2355 = vmatprep.subr.mxu0 %v5646_v4  ;;  %2436 = vmatprep.subr.mxu1 %v5708_v11 }
 0x7af   :  { %2356 = vmatpush1.msra.mxu0 %v5652_v2  ;;  %2437 = vmatpush1.msra.mxu1 %v5714_v33 }
 0x7b0   :  { %2357 = vmatprep.subr.mxu0 %v5658_v52  ;;  %2438 = vmatprep.subr.mxu1 %v5720_v35 }
 0x7b1   :  { %2358 = vmatpush1.msra.mxu0 %v5664_v38  ;;  %2439 = vmatpush1.msra.mxu1 %v5726_v37 }
 0x7b2   :  { %2359 = vmatprep.subr.mxu0 %v5670_v28  ;;  %2440 = vmatprep.subr.mxu1 %v5732_v40 }
 0x7b3   :  { %2360 = vmatpush1.msra.mxu0 %v5676_v56  ;;  %2441 = vmatpush1.msra.mxu1 %v5738_v42 }
 0x7b4   :  { %2361 = vmatprep.subr.mxu0 %v5682_v51  ;;  %2442 = vmatprep.subr.mxu1 %v5744_v44 }
 0x7b5   :  { %2362 = vmatpush1.msra.mxu0 %v5688_v16  ;;  %2443 = vmatpush1.msra.mxu1 %v5750_v46 }
 0x7b6   :  { %2363 = vmatprep.subr.mxu0 %v5694_v18  ;;  %2444 = vmatprep.subr.mxu1 %v5756_v10 }
 0x7b7   :  { %2364 = vmatpush1.msra.mxu0 %v5700_v21  ;;  %2445 = vmatpush1.msra.mxu1 %v5762_v9  ;;  %v5782_v9 = vld [vmem:[#allocation10 + $0x200] sm:$0xff] }
 0x7b8   :  { %2365 = vmatprep.subr.mxu0 %v5706_v24  ;;  %2446 = vmatprep.subr.mxu1 %v5768_v5  ;;  %6996 = vst [vmem:[#allocation45_spill] sm:$0xff] %v5782_v9 }
 0x7b9   :  { %2366 = vmatpush1.msra.mxu0 %v5712_v32  ;;  %2447 = vmatpush1.msra.mxu1 %v5774_v53  ;;  %v6998_v53 = vld [vmem:[#allocation68_spill] sm:$0xff] }
 0x7ba   :  { %2367 = vmatprep.subr.mxu0 %v5718_v34  ;;  %2448 = vmatprep.subr.mxu1 %v5780_v8  ;;  %v7000_v8 = vld [vmem:[#allocation69_spill] sm:$0xff] }
 0x7bb   :  { %2368 = vmatpush1.msra.mxu0 %v5724_v36 }
 0x7bc   :  { %2369 = vmatprep.subr.mxu0 %v5730_v39 }
 0x7bd   :  { %2370 = vmatpush1.msra.mxu0 %v5736_v41 }
 0x7be   :  { %2371 = vmatprep.subr.mxu0 %v5742_v43 }
 0x7bf   :  { %2372 = vmatpush1.msra.mxu0 %v5748_v45 }
 0x7c0   :  { %2373 = vmatprep.subr.mxu0 %v5754_v54  ;;  %v6999_v54 = vld [vmem:[#allocation70_spill] sm:$0xff] }
 0x7c1   :  { %2374 = vmatpush1.msra.mxu0 %v5760_v23  ;;  %v5784_v23 = vld [vmem:[#allocation10 + $0x210] sm:$0xff] }
 0x7c2   :  { %2375 = vmatprep.subr.mxu0 %v5766_v14  ;;  %6997 = vst [vmem:[#allocation47_spill] sm:$0xff] %v5784_v23  ;;  %2449 = vmatpush1.msra.mxu1 %v5784_v23  ;;  %v7001_v23 = vld [vmem:[#allocation71_spill] sm:$0xff] }
 0x7c3   :  { %2376 = vmatpush1.msra.mxu0 %v5772_v12  ;;  %2592 = vmatprep.subr.mxu1 %v5600_v7 }
 0x7c4   :  { %2377 = vmatprep.subr.mxu0 %v5776_v13 }
 0x7c5   :  { %2378 = vmatpush1.msra.mxu0 %v5782_v9 }
 0x7c6   :  { %2521 = vmatprep.subr.mxu0 %v5598_v6 }
 0x82d   :  { %v1820_v12 = vpop.f32.mrf.mxu0  ;;  %v1891_v13 = vpop.f32.mrf.mxu1 }
 0x82e   :  { %v1896_v5 = vadd.f32 %v1820_v12, %v6998_v53  ;;  %v1898_v44 = vadd.f32 %v1891_v13, %v7000_v8  ;;  %v7008_v8 = vld [vmem:[#allocation56_spill] sm:$0xff] }
 0x82f   :  { %v1822_v14 = vpop.f32.mrf.mxu0  ;;  %v1893_v9 = vpop.f32.mrf.mxu1 }
 0x830   :  { %v3868_v10 = vmul.f32 -1.442695, %v1896_v5  ;;  %v1897_v46 = vadd.f32 %v1822_v14, %v6999_v54  ;;  %v3870_v43 = vmul.f32 -1.442695, %v1898_v44  ;;  %v1899_v42 = vadd.f32 %v1893_v9, %v7001_v23  ;;  %v7007_v9 = vld [vmem:[#allocation22_spill] sm:$0xff] }
 0x832   :  { %4075 = vpow2.f32 %v3868_v10  ;;  %v3869_v45 = vmul.f32 -1.442695, %v1897_v46 }
 0x834   :  { %4077 = vpow2.f32 %v3869_v45 }
 0x835   :  { %4079 = vpow2.f32 %v3870_v43  ;;  %v7006_v43 = vld [vmem:[#allocation21_spill] sm:$0xff] }
 0x836   :  { %4081 = vtanh.f32 %v1899_v42  ;;  %v7005_v42 = vld [vmem:[#allocation55_spill] sm:$0xff] }
 0x83f   :  { %v4076_v6 = vpop.eup %4075 }
 0x840   :  { %v1909_v41 = vadd.f32 1.0, %v4076_v6 }
 0x841   :  { %v4078_v7 = vpop.eup %4077 }
 0x842   :  { %4083 = vrcp.f32 %v1909_v41  ;;  %v1910_v12 = vadd.f32 1.0, %v4078_v7  ;;  %v4080_v5 = vpop.eup %4079  ;;  %v7003_v7 = vld [vmem:[#allocation54_spill] sm:$0xff]  ;;  %v7004_v41 = vld [vmem:[#allocation53_spill] sm:$0xff] }
 0x843   :  { %v4082_v54 = vpop.eup %4081  ;;  %v1911_v14 = vadd.f32 1.0, %v4080_v5  ;;  %v7010_v5 = vld [vmem:[#allocation57_spill] sm:$0xff] }
 0x844   :  { %4085 = vrcp.f32 %v1910_v12  ;;  %v7009_v12 = vld [vmem:[#allocation58_spill] sm:$0xff] }
 0x845   :  { %4087 = vrcp.f32 %v1911_v14  ;;  %v7015_v14 = vld [vmem:[#allocation62_spill] sm:$0xff] }
 0x84f   :  { %v4084_v10 = vpop.eup %4083 }
 0x850   :  { %v1920_v46 = vmul.f32 %v4084_v10, %v4082_v54  ;;  %v7011_v54 = vld [vmem:[#allocation59_spill] sm:$0xff]  ;;  %v7012_v10 = vld [vmem:[#allocation24_spill] sm:$0xff] }
 0x851   :  { %v4086_v45 = vpop.eup %4085 }
 0x852   :  { %v1919_v53 = vmul.f32 %v4086_v45, %v5561_v26  ;;  %v4088_v44 = vpop.eup %4087  ;;  %v7002_v26 = vld [vmem:[#allocation52_spill] sm:$0xff] }
 0x853   :  { %v7014_v45 = vld [vmem:[#allocation60_spill] sm:$0xff] }
 0x854   :  { %v1921_v13 = vadd.f32 %v1920_v46, %v1919_v53  ;;  %v7013_v46 = vld [vmem:[#allocation25_spill] sm:$0xff] }
 0x855   :  { %v7016_v53 = vld [vmem:[#allocation61_spill] sm:$0xff] }
 0x856   :  { %4089 = vtanh.f32 %v1921_v13  ;;  %v7017_v13 = vld [vmem:[#allocation63_spill] sm:$0xff] }
 0x863   :  { %v4090_v23 = vpop.eup %4089 }
 0x864   :  { %v1923_v6 = vmul.f32 %v4090_v23, %v4088_v44  ;;  %v7018_v44 = vld [vmem:[#allocation45_spill] sm:$0xff]  ;;  %v7019_v23 = vld [vmem:[#allocation47_spill] sm:$0xff] }
 0x866   :  { %2192 = vmatmul.mubr.f32.gmra.mxu0 %v1923_v6  ;;  %2305 = vmatmul.mubr.f32.gmra.mxu1 %v1923_v6  ;;  %v7020_v6 = vld [vmem:[#allocation43_spill] sm:$0xff] }
 0x867   :  { %2411 = vmatprep.mubr.f32.mxu0 %v6965_v30  ;;  %2482 = vmatprep.mubr.f32.mxu1 %v6965_v30 }
 0x86a   :  { %2412 = vmatmul.mubr.f32.vlgmr.msra.gmra.mxu0 %v6965_v30  ;;  %2483 = vmatmul.mubr.f32.vlgmr.msra.gmra.mxu1 %v6965_v30 }
 0x86b   :  { %2522 = vmatpush1.msra.mxu0 %v5604_v49  ;;  %2593 = vmatpush1.msra.mxu1 %v5606_v3 }
 0x86c   :  { %2523 = vmatprep.subr.mxu0 %v5610_v25  ;;  %2594 = vmatprep.subr.mxu1 %v5612_v62 }
 0x86d   :  { %2524 = vmatpush1.msra.mxu0 %v5616_v50  ;;  %2595 = vmatpush1.msra.mxu1 %v5618_v48 }
 0x86e   :  { %2525 = vmatprep.subr.mxu0 %v5622_v20  ;;  %2596 = vmatprep.subr.mxu1 %v5624_v60 }
 0x86f   :  { %2526 = vmatpush1.msra.mxu0 %v5628_v55  ;;  %2597 = vmatpush1.msra.mxu1 %v5630_v29 }
 0x870   :  { %2527 = vmatprep.subr.mxu0 %v5634_v58  ;;  %2598 = vmatprep.subr.mxu1 %v5636_v59 }
 0x871   :  { %2528 = vmatpush1.msra.mxu0 %v5640_v0  ;;  %2599 = vmatpush1.msra.mxu1 %v5642_v47 }
 0x872   :  { %2529 = vmatprep.subr.mxu0 %v5646_v4  ;;  %2600 = vmatprep.subr.mxu1 %v5648_v61 }
 0x873   :  { %2530 = vmatpush1.msra.mxu0 %v5652_v2  ;;  %2601 = vmatpush1.msra.mxu1 %v5654_v57 }
 0x874   :  { %2531 = vmatprep.subr.mxu0 %v5658_v52  ;;  %2602 = vmatprep.subr.mxu1 %v5660_v1 }
 0x875   :  { %2532 = vmatpush1.msra.mxu0 %v5664_v38  ;;  %2603 = vmatpush1.msra.mxu1 %v5666_v27 }
 0x876   :  { %2533 = vmatprep.subr.mxu0 %v5670_v28  ;;  %2604 = vmatprep.subr.mxu1 %v5672_v31 }
 0x877   :  { %2534 = vmatpush1.msra.mxu0 %v5676_v56  ;;  %2605 = vmatpush1.msra.mxu1 %v5678_v63 }
 0x878   :  { %2535 = vmatprep.subr.mxu0 %v5682_v51  ;;  %2606 = vmatprep.subr.mxu1 %v5684_v15 }
 0x879   :  { %2536 = vmatpush1.msra.mxu0 %v5688_v16  ;;  %2607 = vmatpush1.msra.mxu1 %v5690_v17 }
 0x87a   :  { %2537 = vmatprep.subr.mxu0 %v5694_v18  ;;  %2608 = vmatprep.subr.mxu1 %v5696_v19 }
 0x87b   :  { %2538 = vmatpush1.msra.mxu0 %v5700_v21  ;;  %2609 = vmatpush1.msra.mxu1 %v5702_v22 }
 0x87c   :  { %2539 = vmatprep.subr.mxu0 %v5706_v24  ;;  %2610 = vmatprep.subr.mxu1 %v5708_v11 }
 0x87d   :  { %2540 = vmatpush1.msra.mxu0 %v5712_v32  ;;  %2611 = vmatpush1.msra.mxu1 %v5714_v33 }
 0x87e   :  { %2541 = vmatprep.subr.mxu0 %v5718_v34  ;;  %2612 = vmatprep.subr.mxu1 %v5720_v35 }
 0x87f   :  { %2542 = vmatpush1.msra.mxu0 %v5724_v36  ;;  %2613 = vmatpush1.msra.mxu1 %v5726_v37 }
 0x880   :  { %2543 = vmatprep.subr.mxu0 %v5730_v39  ;;  %2614 = vmatprep.subr.mxu1 %v5732_v40 }
 0x881   :  { %2544 = vmatpush1.msra.mxu0 %v7002_v26  ;;  %2615 = vmatpush1.msra.mxu1 %v7003_v7 }
 0x882   :  { %2545 = vmatprep.subr.mxu0 %v7004_v41  ;;  %2616 = vmatprep.subr.mxu1 %v7005_v42 }
 0x883   :  { %2546 = vmatpush1.msra.mxu0 %v7006_v43  ;;  %2617 = vmatpush1.msra.mxu1 %v7007_v9 }
 0x884   :  { %2547 = vmatprep.subr.mxu0 %v7008_v8  ;;  %2618 = vmatprep.subr.mxu1 %v7009_v12 }
 0x885   :  { %2548 = vmatpush1.msra.mxu0 %v7010_v5  ;;  %2619 = vmatpush1.msra.mxu1 %v7011_v54  ;;  %v2264_v54 = vpop.f32.mrf.mxu1 }
 0x886   :  { %2549 = vmatprep.subr.mxu0 %v7012_v10  ;;  %2620 = vmatprep.subr.mxu1 %v7013_v46  ;;  %v7021_v10 = vld [vmem:[#allocation48_spill] sm:$0xff]  ;;  %v2151_v46 = vpop.f32.mrf.mxu0 }
 0x887   :  { %2550 = vmatpush1.msra.mxu0 %v7014_v45  ;;  %2621 = vmatpush1.msra.mxu1 %v7015_v14 }
 0x888   :  { %2551 = vmatprep.subr.mxu0 %v7016_v53  ;;  %2622 = vmatprep.subr.mxu1 %v7017_v13  ;;  %v2153_v45 = vpop.f32.mrf.mxu0  ;;  %v2266_v53 = vpop.f32.mrf.mxu1 }
 0x889   :  { %2552 = vmatpush1.msra.mxu0 %v7018_v44  ;;  %2585 = vmatprep.mubr.f32.mxu0 %v6965_v30 }
 0x88a   :  { %2623 = vmatpush1.msra.mxu1 %v7019_v23  ;;  %2656 = vmatprep.mubr.f32.mxu1 %v6965_v30  ;;  %v5867_v14 = vpop.f32.mrf.mxu0  ;;  %v5871_v13 = vpop.f32.mrf.mxu1 }
 0x88b   :  { %2695 = vmatprep.subr.mxu0 %v7020_v6  ;;  %2766 = vmatprep.subr.mxu1 %v7021_v10  ;;  %7022 = vst [vmem:[#allocation27_spill] sm:$0xff] %v5867_v14  ;;  %7024 = vst [vmem:[#allocation29_spill] sm:$0xff] %v5871_v13 }
 0x88c   :  { %v5869_v5 = vpop.f32.mrf.mxu0  ;;  %v5875_v12 = vpop.f32.mrf.mxu1 }
 0x88d   :  { %7023 = vst [vmem:[#allocation28_spill] sm:$0xff] %v5869_v5  ;;  %7026 = vst [vmem:[#allocation31_spill] sm:$0xff] %v5875_v12 }
 0x88e   :  { %v5873_v44 = vpop.f32.mrf.mxu0  ;;  %v5879_v30 = vpop.f32.mrf.mxu1 }
 0x88f   :  { %7025 = vst [vmem:[#allocation30_spill] sm:$0xff] %v5873_v44  ;;  %7028 = vst [vmem:[#allocation33_spill] sm:$0xff] %v5879_v30 }
 0x890   :  { %v5877_v23 = vpop.f32.mrf.mxu0  ;;  %v5883_v10 = vpop.f32.mrf.mxu1 }
 0x891   :  { %7027 = vst [vmem:[#allocation32_spill] sm:$0xff] %v5877_v23  ;;  %7030 = vst [vmem:[#allocation35_spill] sm:$0xff] %v5883_v10 }
 0x892   :  { %v5881_v6 = vpop.f32.mrf.mxu0  ;;  %v5887_v14 = vpop.f32.mrf.mxu1 }
 0x893   :  { %7029 = vst [vmem:[#allocation34_spill] sm:$0xff] %v5881_v6  ;;  %7032 = vst [vmem:[#allocation37_spill] sm:$0xff] %v5887_v14  ;;  %v1991_v14 = vld [vmem:[#allocation12 + $0x4] sm:$0xf] }
 0x894   :  { %v5885_v8 = vpop.f32.mrf.mxu0  ;;  %v5891_v5 = vpop.f32.mrf.mxu1 }
 0x895   :  { %7031 = vst [vmem:[#allocation36_spill] sm:$0xff] %v5885_v8  ;;  %7034 = vst [vmem:[#allocation39_spill] sm:$0xff] %v5891_v5  ;;  %v7044_v5 = vld [vmem:[#allocation44_spill] sm:$0xff] }
 0x896   :  { %v5889_v9 = vpop.f32.mrf.mxu0  ;;  %v5895_v44 = vpop.f32.mrf.mxu1  ;;  %v7045_v43 = vsub.s32 0, %v7044_v5  ;;  %v7055_v40 = vsub.s32 2, %v7044_v5 }
 0x897   :  { %7033 = vst [vmem:[#allocation38_spill] sm:$0xff] %v5889_v9  ;;  %7036 = vst [vmem:[#allocation41_spill] sm:$0xff] %v5895_v44 }
 0x898   :  { %v5893_v13 = vpop.f32.mrf.mxu0  ;;  %v5899_v23 = vpop.f32.mrf.mxu1 }
 0x899   :  { %7035 = vst [vmem:[#allocation40_spill] sm:$0xff] %v5893_v13  ;;  %7038 = vst [vmem:[#allocation66_spill] sm:$0xff] %v5899_v23  ;;  %v5913_v13 = vrot.slane %v1991_v14, %v7045_v43  ;;  %v7049_v23 = vsub.s32 1, %v7044_v5 }
 0x89a   :  { %v5897_v12 = vpop.f32.mrf.mxu0  ;;  %v5903_v6 = vpop.f32.mrf.mxu1 }
 0x89b   :  { %7037 = vst [vmem:[#allocation64_spill] sm:$0xff] %v5897_v12  ;;  %7040 = vst [vmem:[#allocation67_spill] sm:$0xff] %v5903_v6 }
 0x89c   :  { %v5901_v30 = vpop.f32.mrf.mxu0  ;;  %v5907_v8 = vpop.f32.mrf.mxu1  ;;  %7046 = vst [vmem:[#allocation46_spill] sm:$0xff] %v5913_v13 }
 0x89d   :  { %7039 = vst [vmem:[#allocation65_spill] sm:$0xff] %v5901_v30  ;;  %7042 = vst [vmem:[#allocation23_spill] sm:$0xff] %v5907_v8  ;;  %v5921_v30 = vrot.slane %v1991_v14, %v7049_v23 }
 0x89e   :  { %v5905_v10 = vpop.f32.mrf.mxu0  ;;  %v5915_v44 = vpop.f32.mrf.mxu1 }
 0x89f   :  { %7041 = vst [vmem:[#allocation72_spill] sm:$0xff] %v5905_v10  ;;  %7047 = vst [vmem:[#allocation42_spill] sm:$0xff] %v5915_v44  ;;  %v2152_v10 = vadd.f32 %v2151_v46, %v5913_v13 }
 0x8a0   :  { %v5909_v9 = vpop.f32.mrf.mxu0  ;;  %7050 = vst [vmem:[#allocation70_spill] sm:$0xff] %v5921_v30  ;;  %v5926_v8 = vpop.f32.mrf.mxu1 }
 0x8a1   :  { %7043 = vst [vmem:[#allocation26_spill] sm:$0xff] %v5909_v9  ;;  %7052 = vst [vmem:[#allocation71_spill] sm:$0xff] %v5926_v8  ;;  %v2154_v9 = vadd.f32 %v2153_v45, %v5921_v30  ;;  %v7056_v45 = vsub.s32 3, %v7044_v5 }
 0x8a3   :  { %v5940_v30 = vrot.slane %v1991_v14, %v7056_v45 }
 0x926   :  { %v5917_v12 = vpop.f32.mrf.mxu0  ;;  %v5929_v41 = vpop.f32.mrf.mxu1 }
 0x927   :  { %7048 = vst [vmem:[#allocation68_spill] sm:$0xff] %v5917_v12  ;;  %7053 = vst [vmem:[#allocation44_spill] sm:$0xff] %v5929_v41 }
 0x928   :  { %v5923_v6 = vpop.f32.mrf.mxu0  ;;  %v5931_v12 = vpop.f32.mrf.mxu1 }
 0x929   :  { %7051 = vst [vmem:[#allocation69_spill] sm:$0xff] %v5923_v6  ;;  %7054 = vst [vmem:[#allocation73_spill] sm:$0xff] %v5931_v12  ;;  %v5935_v6 = vrot.slane %v1991_v14, %v7055_v40 }
 0x92a   :  { %v2413_v42 = vpop.f32.mrf.mxu0  ;;  %v2484_v46 = vpop.f32.mrf.mxu1 }
 0x92b   :  { %v2489_v43 = vadd.f32 %v2413_v42, %v2152_v10  ;;  %v2265_v8 = vadd.f32 %v2264_v54, %v5935_v6 }
 0x92c   :  { %v2415_v7 = vpop.f32.mrf.mxu0  ;;  %v2486_v10 = vpop.f32.mrf.mxu1 }
 0x92d   :  { %v3871_v44 = vmul.f32 -1.442695, %v2489_v43  ;;  %v2490_v26 = vadd.f32 %v2415_v7, %v2154_v9  ;;  %v2491_v42 = vadd.f32 %v2484_v46, %v2265_v8  ;;  %v2267_v7 = vadd.f32 %v2266_v53, %v5940_v30 }
 0x92f   :  { %4091 = vpow2.f32 %v3871_v44  ;;  %v3872_v23 = vmul.f32 -1.442695, %v2490_v26  ;;  %v3873_v9 = vmul.f32 -1.442695, %v2491_v42  ;;  %v2492_v44 = vadd.f32 %v2486_v10, %v2267_v7  ;;  %v7059_v7 = vld [vmem:[#allocation54_spill] sm:$0xff] }
 0x931   :  { %4093 = vpow2.f32 %v3872_v23 }
 0x932   :  { %4095 = vpow2.f32 %v3873_v9  ;;  %v7060_v9 = vld [vmem:[#allocation53_spill] sm:$0xff] }
 0x93c   :  { %v4092_v43 = vpop.eup %4091 }
 0x93d   :  { %v2502_v26 = vadd.f32 1.0, %v4092_v43  ;;  %v7061_v43 = vld [vmem:[#allocation55_spill] sm:$0xff] }
 0x93e   :  { %v4094_v12 = vpop.eup %4093 }
 0x93f   :  { %4097 = vrcp.f32 %v2502_v26  ;;  %v2503_v40 = vadd.f32 1.0, %v4094_v12  ;;  %v4096_v23 = vpop.eup %4095  ;;  %v7058_v12 = vld [vmem:[#allocation52_spill] sm:$0xff]  ;;  %v7063_v26 = vld [vmem:[#allocation22_spill] sm:$0xff] }
 0x940   :  { %4099 = vtanh.f32 %v2492_v44  ;;  %v2504_v14 = vadd.f32 1.0, %v4096_v23  ;;  %v7062_v44 = vld [vmem:[#allocation21_spill] sm:$0xff]  ;;  %v7065_v23 = vld [vmem:[#allocation58_spill] sm:$0xff] }
 0x941   :  { %4101 = vrcp.f32 %v2503_v40  ;;  %v7064_v40 = vld [vmem:[#allocation56_spill] sm:$0xff] }
 0x942   :  { %4103 = vrcp.f32 %v2504_v14  ;;  %v7068_v14 = vld [vmem:[#allocation24_spill] sm:$0xff] }
 0x94c   :  { %v4098_v54 = vpop.eup %4097 }
 0x94d   :  { %v4100_v41 = vpop.eup %4099 }
 0x94e   :  { %v4102_v5 = vpop.eup %4101  ;;  %v2513_v8 = vmul.f32 %v4100_v41, %v4098_v54  ;;  %v7057_v41 = vld [vmem:[#allocation51_spill] sm:$0xff]  ;;  %v7066_v54 = vld [vmem:[#allocation57_spill] sm:$0xff] }
 0x94f   :  { %v2512_v45 = vmul.f32 0.0, %v4102_v5  ;;  %v4104_v53 = vpop.eup %4103  ;;  %v7067_v5 = vld [vmem:[#allocation59_spill] sm:$0xff] }
 0x951   :  { %v5943_v46 = vadd.f32 %v2513_v8, %v2512_v45  ;;  %v7069_v45 = vld [vmem:[#allocation25_spill] sm:$0xff]  ;;  %v7070_v8 = vld [vmem:[#allocation60_spill] sm:$0xff] }
 0x953   :  { %4105 = vtanh.f32 %v5943_v46 }
 0x960   :  { %v4106_v42 = vpop.eup %4105 }
 0x961   :  { %v2516_v10 = vmul.f32 %v4106_v42, %v4104_v53  ;;  %v7071_v53 = vld [vmem:[#allocation62_spill] sm:$0xff]  ;;  %v7072_v42 = vld [vmem:[#allocation61_spill] sm:$0xff] }
 0x963   :  { %2586 = vmatmul.mubr.f32.vlgmr.msra.gmra.mxu0 %v2516_v10  ;;  %2657 = vmatmul.mubr.f32.vlgmr.msra.gmra.mxu1 %v2516_v10  ;;  %v7073_v10 = vld [vmem:[#allocation63_spill] sm:$0xff] }
 0x964   :  { %2696 = vmatpush1.msra.mxu0 %v5604_v49  ;;  %2767 = vmatpush1.msra.mxu1 %v5606_v3 }
 0x965   :  { %2697 = vmatprep.subr.mxu0 %v5610_v25  ;;  %2768 = vmatprep.subr.mxu1 %v5612_v62 }
 0x966   :  { %2698 = vmatpush1.msra.mxu0 %v5616_v50  ;;  %2769 = vmatpush1.msra.mxu1 %v5618_v48 }
 0x967   :  { %2699 = vmatprep.subr.mxu0 %v5622_v20  ;;  %2770 = vmatprep.subr.mxu1 %v5624_v60 }
 0x968   :  { %2700 = vmatpush1.msra.mxu0 %v5628_v55  ;;  %2771 = vmatpush1.msra.mxu1 %v5630_v29 }
 0x969   :  { %2701 = vmatprep.subr.mxu0 %v5634_v58  ;;  %2772 = vmatprep.subr.mxu1 %v5636_v59 }
 0x96a   :  { %2702 = vmatpush1.msra.mxu0 %v5640_v0  ;;  %2773 = vmatpush1.msra.mxu1 %v5642_v47 }
 0x96b   :  { %2703 = vmatprep.subr.mxu0 %v5646_v4  ;;  %2774 = vmatprep.subr.mxu1 %v5648_v61 }
 0x96c   :  { %2704 = vmatpush1.msra.mxu0 %v5652_v2  ;;  %2775 = vmatpush1.msra.mxu1 %v5654_v57 }
 0x96d   :  { %2705 = vmatprep.subr.mxu0 %v5658_v52  ;;  %2776 = vmatprep.subr.mxu1 %v5660_v1 }
 0x96e   :  { %2706 = vmatpush1.msra.mxu0 %v5664_v38  ;;  %2777 = vmatpush1.msra.mxu1 %v5666_v27 }
 0x96f   :  { %2707 = vmatprep.subr.mxu0 %v5670_v28  ;;  %2778 = vmatprep.subr.mxu1 %v5672_v31 }
 0x970   :  { %2708 = vmatpush1.msra.mxu0 %v5676_v56  ;;  %2779 = vmatpush1.msra.mxu1 %v5678_v63 }
 0x971   :  { %2709 = vmatprep.subr.mxu0 %v5682_v51  ;;  %2780 = vmatprep.subr.mxu1 %v5684_v15 }
 0x972   :  { %2710 = vmatpush1.msra.mxu0 %v5688_v16  ;;  %2781 = vmatpush1.msra.mxu1 %v5690_v17 }
 0x973   :  { %2711 = vmatprep.subr.mxu0 %v5694_v18  ;;  %2782 = vmatprep.subr.mxu1 %v5696_v19 }
 0x974   :  { %2712 = vmatpush1.msra.mxu0 %v5700_v21  ;;  %2783 = vmatpush1.msra.mxu1 %v5702_v22 }
 0x975   :  { %2713 = vmatprep.subr.mxu0 %v5706_v24  ;;  %2784 = vmatprep.subr.mxu1 %v5708_v11 }
 0x976   :  { %2714 = vmatpush1.msra.mxu0 %v5712_v32  ;;  %2785 = vmatpush1.msra.mxu1 %v5714_v33 }
 0x977   :  { %2715 = vmatprep.subr.mxu0 %v5718_v34  ;;  %2786 = vmatprep.subr.mxu1 %v5720_v35 }
 0x978   :  { %2716 = vmatpush1.msra.mxu0 %v5724_v36  ;;  %2787 = vmatpush1.msra.mxu1 %v5726_v37 }
 0x979   :  { %2717 = vmatprep.subr.mxu0 %v5730_v39  ;;  %2788 = vmatprep.subr.mxu1 %v7057_v41  ;;  %v7083_v41 = vld [vmem:[#allocation31_spill] sm:$0xff] }
 0x97a   :  { %2718 = vmatpush1.msra.mxu0 %v7058_v12  ;;  %2789 = vmatpush1.msra.mxu1 %v7059_v7 }
 0x97b   :  { %2719 = vmatprep.subr.mxu0 %v7060_v9  ;;  %2790 = vmatprep.subr.mxu1 %v7061_v43 }
 0x97c   :  { %2720 = vmatpush1.msra.mxu0 %v7062_v44  ;;  %2791 = vmatpush1.msra.mxu1 %v7063_v26  ;;  %v7074_v26 = vld [vmem:[#allocation45_spill] sm:$0xff] }
 0x97d   :  { %2721 = vmatprep.subr.mxu0 %v7064_v40  ;;  %2792 = vmatprep.subr.mxu1 %v7065_v23  ;;  %v7075_v40 = vmov 0.0   ;;  %v7076_v23 = vld [vmem:[#allocation47_spill] sm:$0xff] }
 0x97e   :  { %2722 = vmatpush1.msra.mxu0 %v7066_v54  ;;  %2793 = vmatpush1.msra.mxu1 %v7067_v5  ;;  %v7077_v5 = vld [vmem:[#allocation43_spill] sm:$0xff]  ;;  %v7080_v54 = vld [vmem:[#allocation70_spill] sm:$0xff] }
 0x97f   :  { %2723 = vmatprep.subr.mxu0 %v7068_v14  ;;  %2794 = vmatprep.subr.mxu1 %v7069_v45  ;;  %v7078_v14 = vld [vmem:[#allocation48_spill] sm:$0xff] }
 0x980   :  { %2724 = vmatpush1.msra.mxu0 %v7070_v8  ;;  %2795 = vmatpush1.msra.mxu1 %v7071_v53  ;;  %v7079_v8 = vld [vmem:[#allocation27_spill] sm:$0xff] }
 0x981   :  { %2725 = vmatprep.subr.mxu0 %v7072_v42  ;;  %2796 = vmatprep.subr.mxu1 %v7073_v10  ;;  %v2158_v45 = vadd.f32 %v7079_v8, %v5913_v13  ;;  %v7081_v42 = vld [vmem:[#allocation28_spill] sm:$0xff]  ;;  %v2273_v8 = vadd.f32 %v7083_v41, %v5940_v30 }
 0x982   :  { %2726 = vmatpush1.msra.mxu0 %v7074_v26  ;;  %2759 = vmatprep.mubr.f32.mxu0 %v7075_v40  ;;  %v2160_v44 = vadd.f32 %v7081_v42, %v7080_v54 }
 0x983   :  { %2797 = vmatpush1.msra.mxu1 %v7076_v23  ;;  %2830 = vmatprep.mubr.f32.mxu1 %v7075_v40  ;;  %v7082_v40 = vld [vmem:[#allocation29_spill] sm:$0xff] }
 0x984   :  { %2869 = vmatprep.subr.mxu0 %v7077_v5  ;;  %2940 = vmatprep.subr.mxu1 %v7078_v14  ;;  %v2271_v5 = vadd.f32 %v7082_v40, %v5935_v6 }
 0xa23   :  { %v2587_v53 = vpop.f32.mrf.mxu0  ;;  %v2658_v23 = vpop.f32.mrf.mxu1 }
 0xa24   :  { %v2663_v10 = vadd.f32 %v2587_v53, %v2158_v45  ;;  %v2665_v12 = vadd.f32 %v2658_v23, %v2271_v5 }
 0xa25   :  { %v2589_v43 = vpop.f32.mrf.mxu0  ;;  %v2660_v14 = vpop.f32.mrf.mxu1 }
 0xa26   :  { %v3874_v26 = vmul.f32 -1.442695, %v2663_v10  ;;  %v2664_v9 = vadd.f32 %v2589_v43, %v2160_v44  ;;  %v3876_v13 = vmul.f32 -1.442695, %v2665_v12  ;;  %v2666_v39 = vadd.f32 %v2660_v14, %v2273_v8  ;;  %v7096_v12 = vld [vmem:[#allocation59_spill] sm:$0xff]  ;;  %v7097_v14 = vld [vmem:[#allocation24_spill] sm:$0xff] }
 0xa27   :  { %v7098_v10 = vld [vmem:[#allocation25_spill] sm:$0xff]  ;;  %v7099_v8 = vld [vmem:[#allocation60_spill] sm:$0xff] }
 0xa28   :  { %4107 = vpow2.f32 %v3874_v26  ;;  %v3875_v7 = vmul.f32 -1.442695, %v2664_v9 }
 0xa2a   :  { %4109 = vpow2.f32 %v3875_v7 }
 0xa2b   :  { %4111 = vpow2.f32 %v3876_v13 }
 0xa2c   :  { %4113 = vtanh.f32 %v2666_v39  ;;  %v7094_v39 = vld [vmem:[#allocation58_spill] sm:$0xff] }
 0xa35   :  { %v4108_v37 = vpop.eup %4107 }
 0xa36   :  { %v2676_v42 = vadd.f32 1.0, %v4108_v37 }
 0xa37   :  { %v4110_v45 = vpop.eup %4109 }
 0xa38   :  { %4115 = vrcp.f32 %v2676_v42  ;;  %v2677_v43 = vadd.f32 1.0, %v4110_v45  ;;  %v4112_v7 = vpop.eup %4111  ;;  %v7100_v42 = vld [vmem:[#allocation62_spill] sm:$0xff]  ;;  %v7101_v45 = vld [vmem:[#allocation61_spill] sm:$0xff] }
 0xa39   :  { %v4114_v9 = vpop.eup %4113  ;;  %v2678_v23 = vadd.f32 1.0, %v4112_v7  ;;  %v7103_v7 = vld [vmem:[#allocation45_spill] sm:$0xff] }
 0xa3a   :  { %4117 = vrcp.f32 %v2677_v43  ;;  %v7102_v43 = vld [vmem:[#allocation63_spill] sm:$0xff] }
 0xa3b   :  { %4119 = vrcp.f32 %v2678_v23  ;;  %v7108_v23 = vld [vmem:[#allocation46_spill] sm:$0xff] }
 0xa45   :  { %v4116_v44 = vpop.eup %4115 }
 0xa46   :  { %v2687_v26 = vmul.f32 %v4116_v44, %v4114_v9  ;;  %v7104_v9 = vmov 0.0   ;;  %v7105_v44 = vld [vmem:[#allocation47_spill] sm:$0xff] }
 0xa47   :  { %v4118_v40 = vpop.eup %4117 }
 0xa48   :  { %v2686_v5 = vmul.f32 %v4118_v40, %v5943_v46  ;;  %v4120_v37 = vpop.eup %4119  ;;  %v7095_v46 = vld [vmem:[#allocation57_spill] sm:$0xff]  ;;  %v7107_v40 = vld [vmem:[#allocation48_spill] sm:$0xff] }
 0xa4a   :  { %v6021_v53 = vadd.f32 %v2687_v26, %v2686_v5  ;;  %v7106_v26 = vld [vmem:[#allocation43_spill] sm:$0xff]  ;;  %v7109_v5 = vld [vmem:[#allocation30_spill] sm:$0xff] }
 0xa4c   :  { %4121 = vtanh.f32 %v6021_v53 }
 0xa59   :  { %v4122_v13 = vpop.eup %4121 }
 0xa5a   :  { %v2690_v41 = vmul.f32 %v4122_v13, %v4120_v37  ;;  %v2164_v37 = vadd.f32 %v7109_v5, %v7108_v23 }
 0xa5c   :  { %2760 = vmatmul.mubr.f32.vlgmr.msra.gmra.mxu0 %v2690_v41  ;;  %2831 = vmatmul.mubr.f32.vlgmr.msra.gmra.mxu1 %v2690_v41  ;;  %v7110_v41 = vld [vmem:[#allocation32_spill] sm:$0xff] }
 0xa5d   :  { %2870 = vmatpush1.msra.mxu0 %v5604_v49  ;;  %2941 = vmatpush1.msra.mxu1 %v5606_v3  ;;  %v7084_v49 = vld [vmem:[#allocation50_spill] sm:$0xff]  ;;  %v7085_v3 = vld [vmem:[#allocation49_spill] sm:$0xff] }
 0xa5e   :  { %2871 = vmatprep.subr.mxu0 %v5610_v25  ;;  %2942 = vmatprep.subr.mxu1 %v5612_v62  ;;  %v7086_v25 = vld [vmem:[#allocation51_spill] sm:$0xff]  ;;  %v7087_v62 = vld [vmem:[#allocation52_spill] sm:$0xff] }
 0xa5f   :  { %2872 = vmatpush1.msra.mxu0 %v5616_v50  ;;  %2943 = vmatpush1.msra.mxu1 %v5618_v48  ;;  %v7088_v50 = vld [vmem:[#allocation54_spill] sm:$0xff]  ;;  %v7089_v48 = vld [vmem:[#allocation53_spill] sm:$0xff] }
 0xa60   :  { %2873 = vmatprep.subr.mxu0 %v5622_v20  ;;  %2944 = vmatprep.subr.mxu1 %v5624_v60  ;;  %v7090_v20 = vld [vmem:[#allocation55_spill] sm:$0xff]  ;;  %v7091_v60 = vld [vmem:[#allocation21_spill] sm:$0xff] }
 0xa61   :  { %2874 = vmatpush1.msra.mxu0 %v5628_v55  ;;  %2945 = vmatpush1.msra.mxu1 %v5630_v29  ;;  %v7092_v55 = vld [vmem:[#allocation22_spill] sm:$0xff]  ;;  %v7093_v29 = vld [vmem:[#allocation56_spill] sm:$0xff] }
 0xa62   :  { %2875 = vmatprep.subr.mxu0 %v5634_v58  ;;  %2946 = vmatprep.subr.mxu1 %v5636_v59 }
 0xa63   :  { %2876 = vmatpush1.msra.mxu0 %v5640_v0  ;;  %2947 = vmatpush1.msra.mxu1 %v5642_v47 }
 0xa64   :  { %2877 = vmatprep.subr.mxu0 %v5646_v4  ;;  %2948 = vmatprep.subr.mxu1 %v5648_v61 }
 0xa65   :  { %2878 = vmatpush1.msra.mxu0 %v5652_v2  ;;  %2949 = vmatpush1.msra.mxu1 %v5654_v57 }
 0xa66   :  { %2879 = vmatprep.subr.mxu0 %v5658_v52  ;;  %2950 = vmatprep.subr.mxu1 %v5660_v1 }
 0xa67   :  { %2880 = vmatpush1.msra.mxu0 %v5664_v38  ;;  %2951 = vmatpush1.msra.mxu1 %v5666_v27 }
 0xa68   :  { %2881 = vmatprep.subr.mxu0 %v5670_v28  ;;  %2952 = vmatprep.subr.mxu1 %v5672_v31 }
 0xa69   :  { %2882 = vmatpush1.msra.mxu0 %v5676_v56  ;;  %2953 = vmatpush1.msra.mxu1 %v5678_v63 }
 0xa6a   :  { %2883 = vmatprep.subr.mxu0 %v5682_v51  ;;  %2954 = vmatprep.subr.mxu1 %v5684_v15 }
 0xa6b   :  { %2884 = vmatpush1.msra.mxu0 %v5688_v16  ;;  %2955 = vmatpush1.msra.mxu1 %v5690_v17 }
 0xa6c   :  { %2885 = vmatprep.subr.mxu0 %v5694_v18  ;;  %2956 = vmatprep.subr.mxu1 %v5696_v19 }
 0xa6d   :  { %2886 = vmatpush1.msra.mxu0 %v5700_v21  ;;  %2957 = vmatpush1.msra.mxu1 %v5702_v22 }
 0xa6e   :  { %2887 = vmatprep.subr.mxu0 %v5706_v24  ;;  %2958 = vmatprep.subr.mxu1 %v5708_v11 }
 0xa6f   :  { %2888 = vmatpush1.msra.mxu0 %v5712_v32  ;;  %2959 = vmatpush1.msra.mxu1 %v5714_v33 }
 0xa70   :  { %2889 = vmatprep.subr.mxu0 %v5718_v34  ;;  %2960 = vmatprep.subr.mxu1 %v5720_v35 }
 0xa71   :  { %2890 = vmatpush1.msra.mxu0 %v5724_v36  ;;  %2961 = vmatpush1.msra.mxu1 %v7084_v49 }
 0xa72   :  { %2891 = vmatprep.subr.mxu0 %v7085_v3  ;;  %2962 = vmatprep.subr.mxu1 %v7086_v25 }
 0xa73   :  { %2892 = vmatpush1.msra.mxu0 %v7087_v62  ;;  %2963 = vmatpush1.msra.mxu1 %v7088_v50 }
 0xa74   :  { %2893 = vmatprep.subr.mxu0 %v7089_v48  ;;  %2964 = vmatprep.subr.mxu1 %v7090_v20 }
 0xa75   :  { %2894 = vmatpush1.msra.mxu0 %v7091_v60  ;;  %2965 = vmatpush1.msra.mxu1 %v7092_v55 }
 0xa76   :  { %2895 = vmatprep.subr.mxu0 %v7093_v29  ;;  %2966 = vmatprep.subr.mxu1 %v7094_v39 }
 0xa77   :  { %2896 = vmatpush1.msra.mxu0 %v7095_v46  ;;  %2967 = vmatpush1.msra.mxu1 %v7096_v12  ;;  %v7112_v12 = vld [vmem:[#allocation35_spill] sm:$0xff] }
 0xa78   :  { %2897 = vmatprep.subr.mxu0 %v7097_v14  ;;  %2968 = vmatprep.subr.mxu1 %v7098_v10  ;;  %v2279_v5 = vadd.f32 %v7112_v12, %v5940_v30 }
 0xa79   :  { %2898 = vmatpush1.msra.mxu0 %v7099_v8  ;;  %2969 = vmatpush1.msra.mxu1 %v7100_v42 }
 0xa7a   :  { %2899 = vmatprep.subr.mxu0 %v7101_v45  ;;  %2970 = vmatprep.subr.mxu1 %v7102_v43  ;;  %v2166_v45 = vadd.f32 %v7110_v41, %v7080_v54 }
 0xa7b   :  { %2900 = vmatpush1.msra.mxu0 %v7103_v7  ;;  %2933 = vmatprep.mubr.f32.mxu0 %v7104_v9 }
 0xa7c   :  { %2971 = vmatpush1.msra.mxu1 %v7105_v44  ;;  %3004 = vmatprep.mubr.f32.mxu1 %v7104_v9  ;;  %v7111_v9 = vld [vmem:[#allocation33_spill] sm:$0xff] }
 0xa7d   :  { %3043 = vmatprep.subr.mxu0 %v7106_v26  ;;  %3114 = vmatprep.subr.mxu1 %v7107_v40  ;;  %v2277_v26 = vadd.f32 %v7111_v9, %v5935_v6 }
 0xb1c   :  { %v2761_v13 = vpop.f32.mrf.mxu0  ;;  %v2832_v44 = vpop.f32.mrf.mxu1 }
 0xb1d   :  { %v2837_v43 = vadd.f32 %v2761_v13, %v2164_v37  ;;  %v2839_v14 = vadd.f32 %v2832_v44, %v2277_v26  ;;  %v6108_v26 = vld [vmem:[#allocation10 + $0x3c8] sm:$0xff] }
 0xb1e   :  { %v2763_v42 = vpop.f32.mrf.mxu0  ;;  %v2834_v40 = vpop.f32.mrf.mxu1 }
 0xb1f   :  { %v3877_v7 = vmul.f32 -1.442695, %v2837_v43  ;;  %v2838_v8 = vadd.f32 %v2763_v42, %v2166_v45  ;;  %v3879_v23 = vmul.f32 -1.442695, %v2839_v14  ;;  %v2840_v46 = vadd.f32 %v2834_v40, %v2279_v5  ;;  %v6114_v40 = vld [vmem:[#allocation10 + $0x3c0] sm:$0xff]  ;;  %v6117_v5 = vld [vmem:[#allocation10 + $0x3d0] sm:$0xff] }
 0xb21   :  { %4123 = vpow2.f32 %v3877_v7  ;;  %v3878_v10 = vmul.f32 -1.442695, %v2838_v8 }
 0xb23   :  { %4125 = vpow2.f32 %v3878_v10 }
 0xb24   :  { %4127 = vpow2.f32 %v3879_v23  ;;  %v6105_v23 = vld [vmem:[#allocation10 + $0x3f0] sm:$0xff] }
 0xb25   :  { %4129 = vtanh.f32 %v2840_v46  ;;  %v6102_v46 = vld [vmem:[#allocation10 + $0x3e0] sm:$0xff] }
 0xb2e   :  { %v4124_v39 = vpop.eup %4123 }
 0xb2f   :  { %v2850_v41 = vadd.f32 1.0, %v4124_v39 }
 0xb30   :  { %v4126_v37 = vpop.eup %4125 }
 0xb31   :  { %4131 = vrcp.f32 %v2850_v41  ;;  %v2851_v42 = vadd.f32 1.0, %v4126_v37  ;;  %v4128_v10 = vpop.eup %4127  ;;  %v6120_v41 = vld [vmem:[#allocation10 + $0x3a8] sm:$0xff]  ;;  %v6123_v37 = vld [vmem:[#allocation10 + $0x3b8] sm:$0xff] }
 0xb32   :  { %v4130_v8 = vpop.eup %4129  ;;  %v2852_v9 = vadd.f32 1.0, %v4128_v10  ;;  %v6129_v10 = vld [vmem:[#allocation10 + $0x3b0] sm:$0xff] }
 0xb33   :  { %4133 = vrcp.f32 %v2851_v42  ;;  %v6126_v42 = vld [vmem:[#allocation10 + $0x3a0] sm:$0xff] }
 0xb34   :  { %4135 = vrcp.f32 %v2852_v9 }
 0xb3e   :  { %v4132_v45 = vpop.eup %4131 }
 0xb3f   :  { %v2861_v43 = vmul.f32 %v4132_v45, %v4130_v8 }
 0xb40   :  { %v4134_v7 = vpop.eup %4133 }
 0xb41   :  { %v2860_v44 = vmul.f32 %v4134_v7, %v6021_v53  ;;  %v4136_v39 = vpop.eup %4135  ;;  %v6111_v53 = vld [vmem:[#allocation10 + $0x3d8] sm:$0xff] }
 0xb43   :  { %v6099_v13 = vadd.f32 %v2861_v43, %v2860_v44 }
 0xb45   :  { %4137 = vtanh.f32 %v6099_v13 }
 0xb52   :  { %v4138_v12 = vpop.eup %4137 }
 0xb53   :  { %v2864_v14 = vmul.f32 %v4138_v12, %v4136_v39 }
 0xb55   :  { %2934 = vmatmul.mubr.f32.vlgmr.msra.gmra.mxu0 %v2864_v14  ;;  %3005 = vmatmul.mubr.f32.vlgmr.msra.gmra.mxu1 %v2864_v14  ;;  %v6217_v14 = vld [vmem:[#allocation10 + $0x398] sm:$0xff] }
 0xb56   :  { %3044 = vmatpush1.msra.mxu0 %v6102_v46  ;;  %3115 = vmatpush1.msra.mxu1 %v6105_v23 }
 0xb57   :  { %3045 = vmatprep.subr.mxu0 %v6108_v26  ;;  %3116 = vmatprep.subr.mxu1 %v6111_v53 }
 0xb58   :  { %3046 = vmatpush1.msra.mxu0 %v6114_v40  ;;  %3117 = vmatpush1.msra.mxu1 %v6117_v5 }
 0xb59   :  { %3047 = vmatprep.subr.mxu0 %v6120_v41  ;;  %3118 = vmatprep.subr.mxu1 %v6123_v37 }
 0xb5a   :  { %3048 = vmatpush1.msra.mxu0 %v6126_v42  ;;  %3119 = vmatpush1.msra.mxu1 %v6129_v10 }
 0xb5b   :  { %3049 = vmatprep.subr.mxu0 %v5634_v58  ;;  %3120 = vmatprep.subr.mxu1 %v5636_v59  ;;  %v7113_v58 = vld [vmem:[#allocation58_spill] sm:$0xff]  ;;  %v7114_v59 = vld [vmem:[#allocation57_spill] sm:$0xff] }
 0xb5c   :  { %3050 = vmatpush1.msra.mxu0 %v5640_v0  ;;  %3121 = vmatpush1.msra.mxu1 %v5642_v47  ;;  %v7115_v0 = vld [vmem:[#allocation59_spill] sm:$0xff]  ;;  %v7116_v47 = vld [vmem:[#allocation24_spill] sm:$0xff] }
 0xb5d   :  { %3051 = vmatprep.subr.mxu0 %v5646_v4  ;;  %3122 = vmatprep.subr.mxu1 %v5648_v61  ;;  %v7117_v4 = vld [vmem:[#allocation25_spill] sm:$0xff]  ;;  %v7118_v61 = vld [vmem:[#allocation60_spill] sm:$0xff] }
 0xb5e   :  { %3052 = vmatpush1.msra.mxu0 %v5652_v2  ;;  %3123 = vmatpush1.msra.mxu1 %v5654_v57  ;;  %v7119_v2 = vld [vmem:[#allocation62_spill] sm:$0xff]  ;;  %v7120_v57 = vld [vmem:[#allocation61_spill] sm:$0xff] }
 0xb5f   :  { %3053 = vmatprep.subr.mxu0 %v5658_v52  ;;  %3124 = vmatprep.subr.mxu1 %v5660_v1  ;;  %v7121_v52 = vld [vmem:[#allocation63_spill] sm:$0xff]  ;;  %v7122_v1 = vld [vmem:[#allocation45_spill] sm:$0xff] }
 0xb60   :  { %3054 = vmatpush1.msra.mxu0 %v5664_v38  ;;  %3125 = vmatpush1.msra.mxu1 %v5666_v27  ;;  %v7123_v38 = vmov 0.0   ;;  %v7124_v27 = vld [vmem:[#allocation47_spill] sm:$0xff] }
 0xb61   :  { %3055 = vmatprep.subr.mxu0 %v5670_v28  ;;  %3126 = vmatprep.subr.mxu1 %v5672_v31  ;;  %v6186_v28 = vld [vmem:[#allocation10 + $0x3e8] sm:$0xff]  ;;  %v6189_v31 = vld [vmem:[#allocation10 + $0x3f8] sm:$0xff] }
 0xb62   :  { %3056 = vmatpush1.msra.mxu0 %v5676_v56  ;;  %3127 = vmatpush1.msra.mxu1 %v5678_v63  ;;  %7125 = vst [vmem:[#allocation27_spill] sm:$0xff] %v6186_v28  ;;  %7126 = vst [vmem:[#allocation70_spill] sm:$0xff] %v6189_v31  ;;  %v7127_v56 = vld [vmem:[#allocation46_spill] sm:$0xff] }
 0xb63   :  { %3057 = vmatprep.subr.mxu0 %v5682_v51  ;;  %3128 = vmatprep.subr.mxu1 %v5684_v15  ;;  %v7128_v63 = vld [vmem:[#allocation34_spill] sm:$0xff] }
 0xb64   :  { %3058 = vmatpush1.msra.mxu0 %v5688_v16  ;;  %3129 = vmatpush1.msra.mxu1 %v5690_v17  ;;  %v2170_v51 = vadd.f32 %v7128_v63, %v7127_v56  ;;  %v7129_v16 = vld [vmem:[#allocation36_spill] sm:$0xff]  ;;  %v6253_v63 = vld [vmem:[#allocation10 + $0x338] sm:$0xff] }
 0xb65   :  { %3059 = vmatprep.subr.mxu0 %v5694_v18  ;;  %3130 = vmatprep.subr.mxu1 %v5696_v19  ;;  %v2172_v17 = vadd.f32 %v7129_v16, %v7080_v54  ;;  %v6262_v16 = vld [vmem:[#allocation10 + $0x308] sm:$0xff] }
 0xb66   :  { %3060 = vmatpush1.msra.mxu0 %v5700_v21  ;;  %3131 = vmatpush1.msra.mxu1 %v5702_v22 }
 0xb67   :  { %3061 = vmatprep.subr.mxu0 %v5706_v24  ;;  %3132 = vmatprep.subr.mxu1 %v5708_v11 }
 0xb68   :  { %3062 = vmatpush1.msra.mxu0 %v5712_v32  ;;  %3133 = vmatpush1.msra.mxu1 %v5714_v33  ;;  %v7130_v32 = vld [vmem:[#allocation37_spill] sm:$0xff] }
 0xb69   :  { %3063 = vmatprep.subr.mxu0 %v5718_v34  ;;  %3134 = vmatprep.subr.mxu1 %v5720_v35  ;;  %v2283_v33 = vadd.f32 %v7130_v32, %v5935_v6  ;;  %v6286_v32 = vld [vmem:[#allocation10 + $0x2c8] sm:$0xff] }
 0xb6a   :  { %3064 = vmatpush1.msra.mxu0 %v5724_v36  ;;  %3135 = vmatpush1.msra.mxu1 %v7084_v49  ;;  %v7131_v36 = vld [vmem:[#allocation39_spill] sm:$0xff] }
 0xb6b   :  { %3065 = vmatprep.subr.mxu0 %v7085_v3  ;;  %3136 = vmatprep.subr.mxu1 %v7086_v25  ;;  %v2285_v49 = vadd.f32 %v7131_v36, %v5940_v30  ;;  %v6298_v36 = vld [vmem:[#allocation10 + $0x2a8] sm:$0xff] }
 0xb6c   :  { %3066 = vmatpush1.msra.mxu0 %v7087_v62  ;;  %3137 = vmatpush1.msra.mxu1 %v7088_v50 }
 0xb6d   :  { %3067 = vmatprep.subr.mxu0 %v7089_v48  ;;  %3138 = vmatprep.subr.mxu1 %v7090_v20 }
 0xb6e   :  { %3068 = vmatpush1.msra.mxu0 %v7091_v60  ;;  %3139 = vmatpush1.msra.mxu1 %v7092_v55 }
 0xb6f   :  { %3069 = vmatprep.subr.mxu0 %v7093_v29  ;;  %3140 = vmatprep.subr.mxu1 %v7113_v58  ;;  %v6220_v58 = vld [vmem:[#allocation10 + $0x380] sm:$0xff] }
 0xb70   :  { %3070 = vmatpush1.msra.mxu0 %v7114_v59  ;;  %3141 = vmatpush1.msra.mxu1 %v7115_v0  ;;  %v6223_v59 = vld [vmem:[#allocation10 + $0x390] sm:$0xff]  ;;  %v6226_v0 = vld [vmem:[#allocation10 + $0x368] sm:$0xff] }
 0xb71   :  { %3071 = vmatprep.subr.mxu0 %v7116_v47  ;;  %3142 = vmatprep.subr.mxu1 %v7117_v4  ;;  %v6229_v47 = vld [vmem:[#allocation10 + $0x378] sm:$0xff]  ;;  %v6232_v4 = vld [vmem:[#allocation10 + $0x360] sm:$0xff] }
 0xb72   :  { %3072 = vmatpush1.msra.mxu0 %v7118_v61  ;;  %3143 = vmatpush1.msra.mxu1 %v7119_v2  ;;  %v6235_v61 = vld [vmem:[#allocation10 + $0x370] sm:$0xff]  ;;  %v6238_v2 = vld [vmem:[#allocation10 + $0x348] sm:$0xff] }
 0xb73   :  { %3073 = vmatprep.subr.mxu0 %v7120_v57  ;;  %3144 = vmatprep.subr.mxu1 %v7121_v52  ;;  %v6241_v57 = vld [vmem:[#allocation10 + $0x358] sm:$0xff]  ;;  %v6244_v52 = vld [vmem:[#allocation10 + $0x340] sm:$0xff] }
 0xb74   :  { %3074 = vmatpush1.msra.mxu0 %v7122_v1  ;;  %3107 = vmatprep.mubr.f32.mxu0 %v7123_v38  ;;  %v6247_v1 = vld [vmem:[#allocation10 + $0x350] sm:$0xff] }
 0xb75   :  { %3145 = vmatpush1.msra.mxu1 %v7124_v27  ;;  %3178 = vmatprep.mubr.f32.mxu1 %v7123_v38  ;;  %v6250_v27 = vld [vmem:[#allocation10 + $0x328] sm:$0xff] }
 0xb76   :  { %3217 = vmatprep.subr.mxu0 %v6186_v28  ;;  %3288 = vmatprep.subr.mxu1 %v6189_v31 }
 0xc15   :  { %v2935_v15 = vpop.f32.mrf.mxu0  ;;  %v3006_v11 = vpop.f32.mrf.mxu1 }
 0xc16   :  { %v3011_v18 = vadd.f32 %v2935_v15, %v2170_v51  ;;  %v3013_v34 = vadd.f32 %v3006_v11, %v2283_v33  ;;  %v6256_v51 = vld [vmem:[#allocation10 + $0x320] sm:$0xff]  ;;  %v6259_v15 = vld [vmem:[#allocation10 + $0x330] sm:$0xff]  ;;  %v6289_v33 = vld [vmem:[#allocation10 + $0x2d8] sm:$0xff] }
 0xc17   :  { %v2937_v19 = vpop.f32.mrf.mxu0  ;;  %v3008_v35 = vpop.f32.mrf.mxu1  ;;  %v6283_v11 = vld [vmem:[#allocation10 + $0x2f0] sm:$0xff] }
 0xc18   :  { %v3880_v21 = vmul.f32 -1.442695, %v3011_v18  ;;  %v3012_v22 = vadd.f32 %v2937_v19, %v2172_v17  ;;  %v3882_v3 = vmul.f32 -1.442695, %v3013_v34  ;;  %v3014_v25 = vadd.f32 %v3008_v35, %v2285_v49  ;;  %v6265_v17 = vld [vmem:[#allocation10 + $0x318] sm:$0xff]  ;;  %v6268_v18 = vld [vmem:[#allocation10 + $0x300] sm:$0xff] }
 0xc19   :  { %v6271_v19 = vld [vmem:[#allocation10 + $0x310] sm:$0xff]  ;;  %v6292_v34 = vld [vmem:[#allocation10 + $0x2c0] sm:$0xff]  ;;  %v6301_v49 = vld [vmem:[#allocation10 + $0x2b8] sm:$0xff] }
 0xc1a   :  { %4139 = vpow2.f32 %v3880_v21  ;;  %v3881_v24 = vmul.f32 -1.442695, %v3012_v22  ;;  %v6274_v21 = vld [vmem:[#allocation10 + $0x2e8] sm:$0xff]  ;;  %v6277_v22 = vld [vmem:[#allocation10 + $0x2f8] sm:$0xff]  ;;  %v6295_v35 = vld [vmem:[#allocation10 + $0x2d0] sm:$0xff] }
 0xc1c   :  { %4141 = vpow2.f32 %v3881_v24  ;;  %v6280_v24 = vld [vmem:[#allocation10 + $0x2e0] sm:$0xff] }
 0xc1d   :  { %4143 = vpow2.f32 %v3882_v3  ;;  %v6304_v3 = vld [vmem:[#allocation10 + $0x2a0] sm:$0xff] }
 0xc1e   :  { %4145 = vtanh.f32 %v3014_v25  ;;  %v6307_v25 = vld [vmem:[#allocation10 + $0x2b0] sm:$0xff] }
 0xc1f   :  { %7132 = vst [vmem:[#allocation28_spill] sm:$0xff] %v6307_v25 }
 0xc27   :  { %v4140_v62 = vpop.eup %4139 }
 0xc28   :  { %v3024_v50 = vadd.f32 1.0, %v4140_v62  ;;  %v6310_v62 = vld [vmem:[#allocation10 + $0x288] sm:$0xff] }
 0xc29   :  { %v4142_v48 = vpop.eup %4141  ;;  %7133 = vst [vmem:[#allocation29_spill] sm:$0xff] %v6310_v62 }
 0xc2a   :  { %4147 = vrcp.f32 %v3024_v50  ;;  %v3025_v20 = vadd.f32 1.0, %v4142_v48  ;;  %v4144_v60 = vpop.eup %4143  ;;  %v6313_v50 = vld [vmem:[#allocation10 + $0x298] sm:$0xff]  ;;  %v6316_v48 = vld [vmem:[#allocation10 + $0x280] sm:$0xff] }
 0xc2b   :  { %v4146_v55 = vpop.eup %4145  ;;  %v3026_v43 = vadd.f32 1.0, %v4144_v60  ;;  %7134 = vst [vmem:[#allocation31_spill] sm:$0xff] %v6313_v50  ;;  %7135 = vst [vmem:[#allocation50_spill] sm:$0xff] %v6316_v48  ;;  %v6322_v60 = vld [vmem:[#allocation10 + $0x268] sm:$0xff] }
 0xc2c   :  { %4149 = vrcp.f32 %v3025_v20  ;;  %v6319_v20 = vld [vmem:[#allocation10 + $0x290] sm:$0xff]  ;;  %7137 = vst [vmem:[#allocation51_spill] sm:$0xff] %v6322_v60 }
 0xc2d   :  { %4151 = vrcp.f32 %v3026_v43  ;;  %7136 = vst [vmem:[#allocation49_spill] sm:$0xff] %v6319_v20  ;;  %v6337_v43 = vld [vmem:[#allocation10 + $0x258] sm:$0xff] }
 0xc2e   :  { %7142 = vst [vmem:[#allocation21_spill] sm:$0xff] %v6337_v43 }
 0xc37   :  { %v4148_v29 = vpop.eup %4147 }
 0xc38   :  { %v3035_v8 = vmul.f32 %v4148_v29, %v4146_v55  ;;  %v6325_v55 = vld [vmem:[#allocation10 + $0x278] sm:$0xff]  ;;  %v6328_v29 = vld [vmem:[#allocation10 + $0x260] sm:$0xff] }
 0xc39   :  { %v4150_v45 = vpop.eup %4149  ;;  %7138 = vst [vmem:[#allocation52_spill] sm:$0xff] %v6325_v55  ;;  %7139 = vst [vmem:[#allocation54_spill] sm:$0xff] %v6328_v29 }
 0xc3a   :  { %v3034_v7 = vmul.f32 %v4150_v45, %v6099_v13  ;;  %v4152_v44 = vpop.eup %4151  ;;  %v6214_v13 = vld [vmem:[#allocation10 + $0x388] sm:$0xff] }
 0xc3b   :  { %v6334_v45 = vld [vmem:[#allocation10 + $0x248] sm:$0xff] }
 0xc3c   :  { %v6201_v9 = vadd.f32 %v3035_v8, %v3034_v7  ;;  %v6331_v8 = vld [vmem:[#allocation10 + $0x270] sm:$0xff]  ;;  %7141 = vst [vmem:[#allocation55_spill] sm:$0xff] %v6334_v45  ;;  %v6340_v7 = vld [vmem:[#allocation10 + $0x240] sm:$0xff] }
 0xc3d   :  { %7140 = vst [vmem:[#allocation53_spill] sm:$0xff] %v6331_v8  ;;  %7143 = vst [vmem:[#allocation22_spill] sm:$0xff] %v6340_v7 }
 0xc3e   :  { %4153 = vtanh.f32 %v6201_v9 }
 0xc4b   :  { %v4154_v39 = vpop.eup %4153 }
 0xc4c   :  { %v3038_v12 = vmul.f32 %v4154_v39, %v4152_v44  ;;  %v6343_v44 = vld [vmem:[#allocation10 + $0x250] sm:$0xff]  ;;  %v6346_v39 = vld [vmem:[#allocation10 + $0x228] sm:$0xff] }
 0xc4d   :  { %7144 = vst [vmem:[#allocation56_spill] sm:$0xff] %v6343_v44  ;;  %7145 = vst [vmem:[#allocation43_spill] sm:$0xff] %v6346_v39 }
 0xc4e   :  { %3108 = vmatmul.mubr.f32.vlgmr.msra.gmra.mxu0 %v3038_v12  ;;  %3179 = vmatmul.mubr.f32.vlgmr.msra.gmra.mxu1 %v3038_v12  ;;  %v6349_v12 = vld [vmem:[#allocation10 + $0x238] sm:$0xff] }
 0xc4f   :  { %3218 = vmatpush1.msra.mxu0 %v6102_v46  ;;  %3289 = vmatpush1.msra.mxu1 %v6105_v23  ;;  %7146 = vst [vmem:[#allocation48_spill] sm:$0xff] %v6349_v12 }
 0xc50   :  { %3219 = vmatprep.subr.mxu0 %v6108_v26  ;;  %3290 = vmatprep.subr.mxu1 %v6111_v53 }
 0xc51   :  { %3220 = vmatpush1.msra.mxu0 %v6114_v40  ;;  %3291 = vmatpush1.msra.mxu1 %v6117_v5 }
 0xc52   :  { %3221 = vmatprep.subr.mxu0 %v6120_v41  ;;  %3292 = vmatprep.subr.mxu1 %v6123_v37 }
 0xc53   :  { %3222 = vmatpush1.msra.mxu0 %v6126_v42  ;;  %3293 = vmatpush1.msra.mxu1 %v6129_v10 }
 0xc54   :  { %3223 = vmatprep.subr.mxu0 %v6214_v13  ;;  %3294 = vmatprep.subr.mxu1 %v6217_v14 }
 0xc55   :  { %3224 = vmatpush1.msra.mxu0 %v6220_v58  ;;  %3295 = vmatpush1.msra.mxu1 %v6223_v59 }
 0xc56   :  { %3225 = vmatprep.subr.mxu0 %v6226_v0  ;;  %3296 = vmatprep.subr.mxu1 %v6229_v47 }
 0xc57   :  { %3226 = vmatpush1.msra.mxu0 %v6232_v4  ;;  %3297 = vmatpush1.msra.mxu1 %v6235_v61 }
 0xc58   :  { %3227 = vmatprep.subr.mxu0 %v6238_v2  ;;  %3298 = vmatprep.subr.mxu1 %v6241_v57 }
 0xc59   :  { %3228 = vmatpush1.msra.mxu0 %v6244_v52  ;;  %3299 = vmatpush1.msra.mxu1 %v6247_v1 }
 0xc5a   :  { %3229 = vmatprep.subr.mxu0 %v6250_v27  ;;  %3300 = vmatprep.subr.mxu1 %v6253_v63 }
 0xc5b   :  { %3230 = vmatpush1.msra.mxu0 %v6256_v51  ;;  %3301 = vmatpush1.msra.mxu1 %v6259_v15 }
 0xc5c   :  { %3231 = vmatprep.subr.mxu0 %v6262_v16  ;;  %3302 = vmatprep.subr.mxu1 %v6265_v17 }
 0xc5d   :  { %3232 = vmatpush1.msra.mxu0 %v6268_v18  ;;  %3303 = vmatpush1.msra.mxu1 %v6271_v19 }
 0xc5e   :  { %3233 = vmatprep.subr.mxu0 %v6274_v21  ;;  %3304 = vmatprep.subr.mxu1 %v6277_v22 }
 0xc5f   :  { %3234 = vmatpush1.msra.mxu0 %v6280_v24  ;;  %3305 = vmatpush1.msra.mxu1 %v6283_v11 }
 0xc60   :  { %3235 = vmatprep.subr.mxu0 %v6286_v32  ;;  %3306 = vmatprep.subr.mxu1 %v6289_v33 }
 0xc61   :  { %3236 = vmatpush1.msra.mxu0 %v6292_v34  ;;  %3307 = vmatpush1.msra.mxu1 %v6295_v35 }
 0xc62   :  { %3237 = vmatprep.subr.mxu0 %v6298_v36  ;;  %3308 = vmatprep.subr.mxu1 %v6301_v49 }
 0xc63   :  { %3238 = vmatpush1.msra.mxu0 %v6304_v3  ;;  %3309 = vmatpush1.msra.mxu1 %v6307_v25 }
 0xc64   :  { %3239 = vmatprep.subr.mxu0 %v6310_v62  ;;  %3310 = vmatprep.subr.mxu1 %v6313_v50  ;;  %v7156_v50 = vld [vmem:[#allocation66_spill] sm:$0xff] }
 0xc65   :  { %3240 = vmatpush1.msra.mxu0 %v6316_v48  ;;  %3311 = vmatpush1.msra.mxu1 %v6319_v20 }
 0xc66   :  { %3241 = vmatprep.subr.mxu0 %v6322_v60  ;;  %3312 = vmatprep.subr.mxu1 %v6325_v55 }
 0xc67   :  { %3242 = vmatpush1.msra.mxu0 %v6328_v29  ;;  %3313 = vmatpush1.msra.mxu1 %v6331_v8 }
 0xc68   :  { %3243 = vmatprep.subr.mxu0 %v6334_v45  ;;  %3314 = vmatprep.subr.mxu1 %v6337_v43  ;;  %v6352_v45 = vld [vmem:[#allocation10 + $0x220] sm:$0xff]  ;;  %v6355_v43 = vld [vmem:[#allocation10 + $0x230] sm:$0xff] }
 0xc69   :  { %3244 = vmatpush1.msra.mxu0 %v6340_v7  ;;  %3315 = vmatpush1.msra.mxu1 %v6343_v44  ;;  %7147 = vst [vmem:[#allocation30_spill] sm:$0xff] %v6352_v45  ;;  %7148 = vst [vmem:[#allocation32_spill] sm:$0xff] %v6355_v43  ;;  %v6358_v7 = vld [vmem:[#allocation10 + $0x208] sm:$0xff]  ;;  %v6361_v44 = vld [vmem:[#allocation10 + $0x218] sm:$0xff] }
 0xc6a   :  { %3245 = vmatprep.subr.mxu0 %v6346_v39  ;;  %3316 = vmatprep.subr.mxu1 %v6349_v12  ;;  %7149 = vst [vmem:[#allocation33_spill] sm:$0xff] %v6358_v7  ;;  %7150 = vst [vmem:[#allocation35_spill] sm:$0xff] %v6361_v44  ;;  %v6364_v39 = vld [vmem:[#allocation10 + $0x200] sm:$0xff]  ;;  %v6368_v12 = vld [vmem:[#allocation10 + $0x210] sm:$0xff] }
 0xc6b   :  { %3246 = vmatpush1.msra.mxu0 %v6352_v45  ;;  %3317 = vmatpush1.msra.mxu1 %v6355_v43  ;;  %7151 = vst [vmem:[#allocation58_spill] sm:$0xff] %v6364_v39  ;;  %7152 = vst [vmem:[#allocation57_spill] sm:$0xff] %v6368_v12  ;;  %v7154_v45 = vld [vmem:[#allocation40_spill] sm:$0xff] }
 0xc6c   :  { %3247 = vmatprep.subr.mxu0 %v6358_v7  ;;  %3318 = vmatprep.subr.mxu1 %v6361_v44  ;;  %v7153_v7 = vld [vmem:[#allocation38_spill] sm:$0xff]  ;;  %v2178_v8 = vadd.f32 %v7154_v45, %v7080_v54 }
 0xc6d   :  { %3248 = vmatpush1.msra.mxu0 %v6364_v39  ;;  %3281 = vmatprep.mubr.f32.mxu0 %v7123_v38  ;;  %v2176_v43 = vadd.f32 %v7153_v7, %v7127_v56  ;;  %v2291_v7 = vadd.f32 %v7156_v50, %v5940_v30  ;;  %v7159_v50 = vld [vmem:[#allocation31_spill] sm:$0xff] }
 0xc6e   :  { %3319 = vmatpush1.msra.mxu1 %v6368_v12  ;;  %3352 = vmatprep.mubr.f32.mxu1 %v7123_v38  ;;  %v7155_v38 = vld [vmem:[#allocation41_spill] sm:$0xff] }
 0xc6f   :  { %3391 = vmatprep.subr.mxu0 %v6186_v28  ;;  %3462 = vmatprep.subr.mxu1 %v6189_v31  ;;  %v2289_v28 = vadd.f32 %v7155_v38, %v5935_v6 }
 0xd0e   :  { %v3109_v44 = vpop.f32.mrf.mxu0  ;;  %v3180_v12 = vpop.f32.mrf.mxu1 }
 0xd0f   :  { %v3185_v39 = vadd.f32 %v3109_v44, %v2176_v43  ;;  %v3187_v48 = vadd.f32 %v3180_v12, %v2289_v28  ;;  %v7161_v12 = vld [vmem:[#allocation49_spill] sm:$0xff] }
 0xd10   :  { %v3111_v29 = vpop.f32.mrf.mxu0  ;;  %v3182_v31 = vpop.f32.mrf.mxu1 }
 0xd11   :  { %v3883_v55 = vmul.f32 -1.442695, %v3185_v39  ;;  %v3186_v60 = vadd.f32 %v3111_v29, %v2178_v8  ;;  %v3885_v56 = vmul.f32 -1.442695, %v3187_v48  ;;  %v3188_v62 = vadd.f32 %v3182_v31, %v2291_v7  ;;  %v7160_v48 = vld [vmem:[#allocation50_spill] sm:$0xff]  ;;  %v7162_v7 = vld [vmem:[#allocation51_spill] sm:$0xff] }
 0xd13   :  { %4155 = vpow2.f32 %v3883_v55  ;;  %v3884_v20 = vmul.f32 -1.442695, %v3186_v60 }
 0xd15   :  { %4157 = vpow2.f32 %v3884_v20 }
 0xd16   :  { %4159 = vpow2.f32 %v3885_v56 }
 0xd17   :  { %4161 = vtanh.f32 %v3188_v62  ;;  %v7158_v62 = vld [vmem:[#allocation29_spill] sm:$0xff] }
 0xd20   :  { %v4156_v25 = vpop.eup %4155 }
 0xd21   :  { %v3198_v45 = vadd.f32 1.0, %v4156_v25 }
 0xd22   :  { %v4158_v43 = vpop.eup %4157 }
 0xd23   :  { %4163 = vrcp.f32 %v3198_v45  ;;  %v3199_v55 = vadd.f32 1.0, %v4158_v43  ;;  %v4160_v20 = vpop.eup %4159  ;;  %v7163_v45 = vld [vmem:[#allocation52_spill] sm:$0xff]  ;;  %v7164_v43 = vld [vmem:[#allocation54_spill] sm:$0xff] }
 0xd24   :  { %v4162_v60 = vpop.eup %4161  ;;  %v3200_v28 = vadd.f32 1.0, %v4160_v20  ;;  %v7166_v20 = vld [vmem:[#allocation55_spill] sm:$0xff] }
 0xd25   :  { %4165 = vrcp.f32 %v3199_v55  ;;  %v7165_v55 = vld [vmem:[#allocation53_spill] sm:$0xff] }
 0xd26   :  { %4167 = vrcp.f32 %v3200_v28  ;;  %v7171_v28 = vld [vmem:[#allocation48_spill] sm:$0xff] }
 0xd30   :  { %v4164_v29 = vpop.eup %4163 }
 0xd31   :  { %v3209_v8 = vmul.f32 %v4164_v29, %v4162_v60  ;;  %v7167_v60 = vld [vmem:[#allocation21_spill] sm:$0xff]  ;;  %v7168_v29 = vld [vmem:[#allocation22_spill] sm:$0xff] }
 0xd32   :  { %v4166_v38 = vpop.eup %4165 }
 0xd33   :  { %v3208_v44 = vmul.f32 %v4166_v38, %v6201_v9  ;;  %v4168_v31 = vpop.eup %4167  ;;  %v7157_v9 = vld [vmem:[#allocation28_spill] sm:$0xff]  ;;  %v7170_v38 = vld [vmem:[#allocation43_spill] sm:$0xff] }
 0xd35   :  { %v6383_v39 = vadd.f32 %v3209_v8, %v3208_v44  ;;  %v7169_v8 = vld [vmem:[#allocation56_spill] sm:$0xff]  ;;  %v7172_v44 = vld [vmem:[#allocation30_spill] sm:$0xff] }
 0xd37   :  { %4169 = vtanh.f32 %v6383_v39 }
 0xd44   :  { %v4170_v56 = vpop.eup %4169 }
 0xd45   :  { %v3212_v25 = vmul.f32 %v4170_v56, %v4168_v31  ;;  %v7173_v31 = vld [vmem:[#allocation32_spill] sm:$0xff]  ;;  %v7174_v56 = vld [vmem:[#allocation33_spill] sm:$0xff] }
 0xd47   :  { %3282 = vmatmul.mubr.f32.vlgmr.msra.gmra.mxu0 %v3212_v25  ;;  %3353 = vmatmul.mubr.f32.vlgmr.msra.gmra.mxu1 %v3212_v25  ;;  %v7175_v25 = vld [vmem:[#allocation35_spill] sm:$0xff] }
 0xd48   :  { %3392 = vmatpush1.msra.mxu0 %v6102_v46  ;;  %3463 = vmatpush1.msra.mxu1 %v6105_v23 }
 0xd49   :  { %3393 = vmatprep.subr.mxu0 %v6108_v26  ;;  %3464 = vmatprep.subr.mxu1 %v6111_v53 }
 0xd4a   :  { %3394 = vmatpush1.msra.mxu0 %v6114_v40  ;;  %3465 = vmatpush1.msra.mxu1 %v6117_v5 }
 0xd4b   :  { %3395 = vmatprep.subr.mxu0 %v6120_v41  ;;  %3466 = vmatprep.subr.mxu1 %v6123_v37 }
 0xd4c   :  { %3396 = vmatpush1.msra.mxu0 %v6126_v42  ;;  %3467 = vmatpush1.msra.mxu1 %v6129_v10 }
 0xd4d   :  { %3397 = vmatprep.subr.mxu0 %v6214_v13  ;;  %3468 = vmatprep.subr.mxu1 %v6217_v14 }
 0xd4e   :  { %3398 = vmatpush1.msra.mxu0 %v6220_v58  ;;  %3469 = vmatpush1.msra.mxu1 %v6223_v59 }
 0xd4f   :  { %3399 = vmatprep.subr.mxu0 %v6226_v0  ;;  %3470 = vmatprep.subr.mxu1 %v6229_v47 }
 0xd50   :  { %3400 = vmatpush1.msra.mxu0 %v6232_v4  ;;  %3471 = vmatpush1.msra.mxu1 %v6235_v61 }
 0xd51   :  { %3401 = vmatprep.subr.mxu0 %v6238_v2  ;;  %3472 = vmatprep.subr.mxu1 %v6241_v57 }
 0xd52   :  { %3402 = vmatpush1.msra.mxu0 %v6244_v52  ;;  %3473 = vmatpush1.msra.mxu1 %v6247_v1 }
 0xd53   :  { %3403 = vmatprep.subr.mxu0 %v6250_v27  ;;  %3474 = vmatprep.subr.mxu1 %v6253_v63 }
 0xd54   :  { %3404 = vmatpush1.msra.mxu0 %v6256_v51  ;;  %3475 = vmatpush1.msra.mxu1 %v6259_v15 }
 0xd55   :  { %3405 = vmatprep.subr.mxu0 %v6262_v16  ;;  %3476 = vmatprep.subr.mxu1 %v6265_v17 }
 0xd56   :  { %3406 = vmatpush1.msra.mxu0 %v6268_v18  ;;  %3477 = vmatpush1.msra.mxu1 %v6271_v19 }
 0xd57   :  { %3407 = vmatprep.subr.mxu0 %v6274_v21  ;;  %3478 = vmatprep.subr.mxu1 %v6277_v22 }
 0xd58   :  { %3408 = vmatpush1.msra.mxu0 %v6280_v24  ;;  %3479 = vmatpush1.msra.mxu1 %v6283_v11 }
 0xd59   :  { %3409 = vmatprep.subr.mxu0 %v6286_v32  ;;  %3480 = vmatprep.subr.mxu1 %v6289_v33 }
 0xd5a   :  { %3410 = vmatpush1.msra.mxu0 %v6292_v34  ;;  %3481 = vmatpush1.msra.mxu1 %v6295_v35 }
 0xd5b   :  { %3411 = vmatprep.subr.mxu0 %v6298_v36  ;;  %3482 = vmatprep.subr.mxu1 %v6301_v49 }
 0xd5c   :  { %3412 = vmatpush1.msra.mxu0 %v6304_v3  ;;  %3483 = vmatpush1.msra.mxu1 %v7157_v9 }
 0xd5d   :  { %3413 = vmatprep.subr.mxu0 %v7158_v62  ;;  %3484 = vmatprep.subr.mxu1 %v7159_v50  ;;  %v7185_v50 = vld [vmem:[#allocation23_spill] sm:$0xff] }
 0xd5e   :  { %3414 = vmatpush1.msra.mxu0 %v7160_v48  ;;  %3485 = vmatpush1.msra.mxu1 %v7161_v12 }
 0xd5f   :  { %3415 = vmatprep.subr.mxu0 %v7162_v7  ;;  %3486 = vmatprep.subr.mxu1 %v7163_v45 }
 0xd60   :  { %3416 = vmatpush1.msra.mxu0 %v7164_v43  ;;  %3487 = vmatpush1.msra.mxu1 %v7165_v55  ;;  %v7176_v55 = vld [vmem:[#allocation58_spill] sm:$0xff] }
 0xd61   :  { %3417 = vmatprep.subr.mxu0 %v7166_v20  ;;  %3488 = vmatprep.subr.mxu1 %v7167_v60  ;;  %v7177_v20 = vmov 0.0   ;;  %v7178_v60 = vld [vmem:[#allocation57_spill] sm:$0xff] }
 0xd62   :  { %3418 = vmatpush1.msra.mxu0 %v7168_v29  ;;  %3489 = vmatpush1.msra.mxu1 %v7169_v8  ;;  %v7179_v8 = vld [vmem:[#allocation27_spill] sm:$0xff] }
 0xd63   :  { %3419 = vmatprep.subr.mxu0 %v7170_v38  ;;  %3490 = vmatprep.subr.mxu1 %v7171_v28  ;;  %v7180_v38 = vld [vmem:[#allocation70_spill] sm:$0xff] }
 0xd64   :  { %3420 = vmatpush1.msra.mxu0 %v7172_v44  ;;  %3491 = vmatpush1.msra.mxu1 %v7173_v31  ;;  %v7181_v28 = vld [vmem:[#allocation46_spill] sm:$0xff]  ;;  %v7182_v44 = vld [vmem:[#allocation64_spill] sm:$0xff] }
 0xd65   :  { %3421 = vmatprep.subr.mxu0 %v7174_v56  ;;  %3492 = vmatprep.subr.mxu1 %v7175_v25  ;;  %v2182_v29 = vadd.f32 %v7182_v44, %v7181_v28  ;;  %v7183_v56 = vld [vmem:[#allocation65_spill] sm:$0xff]  ;;  %v2297_v44 = vadd.f32 %v7185_v50, %v5940_v30 }
 0xd66   :  { %3422 = vmatpush1.msra.mxu0 %v7176_v55  ;;  %3455 = vmatprep.mubr.f32.mxu0 %v7177_v20  ;;  %v2184_v43 = vadd.f32 %v7183_v56, %v7080_v54 }
 0xd67   :  { %3493 = vmatpush1.msra.mxu1 %v7178_v60  ;;  %3526 = vmatprep.mubr.f32.mxu1 %v7177_v20  ;;  %v7184_v20 = vld [vmem:[#allocation67_spill] sm:$0xff] }
 0xd68   :  { %3565 = vmatprep.subr.mxu0 %v7179_v8  ;;  %3636 = vmatprep.subr.mxu1 %v7180_v38  ;;  %v2295_v8 = vadd.f32 %v7184_v20, %v5935_v6 }
 0xe07   :  { %v3283_v31 = vpop.f32.mrf.mxu0  ;;  %v3354_v60 = vpop.f32.mrf.mxu1 }
 0xe08   :  { %v3359_v25 = vadd.f32 %v3283_v31, %v2182_v29  ;;  %v3361_v48 = vadd.f32 %v3354_v60, %v2295_v8 }
 0xe09   :  { %v3285_v45 = vpop.f32.mrf.mxu0  ;;  %v3356_v38 = vpop.f32.mrf.mxu1 }
 0xe0a   :  { %v3886_v55 = vmul.f32 -1.442695, %v3359_v25  ;;  %v3360_v7 = vadd.f32 %v3285_v45, %v2184_v43  ;;  %v3888_v28 = vmul.f32 -1.442695, %v3361_v48  ;;  %v3362_v62 = vadd.f32 %v3356_v38, %v2297_v44 }
 0xe0c   :  { %4171 = vpow2.f32 %v3886_v55  ;;  %v3887_v12 = vmul.f32 -1.442695, %v3360_v7 }
 0xe0e   :  { %4173 = vpow2.f32 %v3887_v12 }
 0xe0f   :  { %4175 = vpow2.f32 %v3888_v28 }
 0xe10   :  { %4177 = vtanh.f32 %v3362_v62 }
 0xe19   :  { %v4172_v9 = vpop.eup %4171 }
 0xe1a   :  { %v3372_v56 = vadd.f32 1.0, %v4172_v9 }
 0xe1b   :  { %v4174_v29 = vpop.eup %4173 }
 0xe1c   :  { %4179 = vrcp.f32 %v3372_v56  ;;  %v3373_v45 = vadd.f32 1.0, %v4174_v29  ;;  %v4176_v12 = vpop.eup %4175 }
 0xe1d   :  { %v4178_v7 = vpop.eup %4177  ;;  %v3374_v60 = vadd.f32 1.0, %v4176_v12 }
 0xe1e   :  { %4181 = vrcp.f32 %v3373_v45 }
 0xe1f   :  { %4183 = vrcp.f32 %v3374_v60 }
 0xe29   :  { %v4180_v43 = vpop.eup %4179 }
 0xe2a   :  { %v3383_v55 = vmul.f32 %v4180_v43, %v4178_v7 }
 0xe2b   :  { %v4182_v20 = vpop.eup %4181 }
 0xe2c   :  { %v3382_v31 = vmul.f32 %v4182_v20, %v6383_v39  ;;  %v4184_v9 = vpop.eup %4183 }
 0xe2e   :  { %v6461_v25 = vadd.f32 %v3383_v55, %v3382_v31 }
 0xe30   :  { %4185 = vtanh.f32 %v6461_v25 }
 0xe3d   :  { %v4186_v50 = vpop.eup %4185 }
 0xe3e   :  { %v3386_v48 = vmul.f32 %v4186_v50, %v4184_v9  ;;  %v3750_v9 = vld [vmem:[#allocation13 + $0x78] sm:$0xff]  ;;  %v3749_v50 = vld [vmem:[#allocation13 + $0x70] sm:$0xff] }
 0xe40   :  { %3456 = vmatmul.mubr.f32.vlgmr.msra.gmra.mxu0 %v3386_v48  ;;  %3527 = vmatmul.mubr.f32.vlgmr.msra.gmra.mxu1 %v3386_v48  ;;  %v3747_v48 = vld [vmem:[#allocation13 + $0x60] sm:$0xff] }
 0xe41   :  { %3566 = vmatpush1.msra.mxu0 %v6102_v46  ;;  %3637 = vmatpush1.msra.mxu1 %v6105_v23  ;;  %v7186_v46 = vld [vmem:[#allocation28_spill] sm:$0xff]  ;;  %v7187_v23 = vld [vmem:[#allocation29_spill] sm:$0xff] }
 0xe42   :  { %3567 = vmatprep.subr.mxu0 %v6108_v26  ;;  %3638 = vmatprep.subr.mxu1 %v6111_v53  ;;  %v7188_v26 = vld [vmem:[#allocation31_spill] sm:$0xff]  ;;  %v7189_v53 = vld [vmem:[#allocation50_spill] sm:$0xff] }
 0xe43   :  { %3568 = vmatpush1.msra.mxu0 %v6114_v40  ;;  %3639 = vmatpush1.msra.mxu1 %v6117_v5  ;;  %v7190_v40 = vld [vmem:[#allocation49_spill] sm:$0xff]  ;;  %v7191_v5 = vld [vmem:[#allocation51_spill] sm:$0xff] }
 0xe44   :  { %3569 = vmatprep.subr.mxu0 %v6120_v41  ;;  %3640 = vmatprep.subr.mxu1 %v6123_v37  ;;  %v7192_v41 = vld [vmem:[#allocation52_spill] sm:$0xff]  ;;  %v7193_v37 = vld [vmem:[#allocation54_spill] sm:$0xff] }
 0xe45   :  { %3570 = vmatpush1.msra.mxu0 %v6126_v42  ;;  %3641 = vmatpush1.msra.mxu1 %v6129_v10  ;;  %v7194_v42 = vld [vmem:[#allocation53_spill] sm:$0xff]  ;;  %v7195_v10 = vld [vmem:[#allocation55_spill] sm:$0xff] }
 0xe46   :  { %3571 = vmatprep.subr.mxu0 %v6214_v13  ;;  %3642 = vmatprep.subr.mxu1 %v6217_v14  ;;  %v7196_v13 = vld [vmem:[#allocation21_spill] sm:$0xff]  ;;  %v7197_v14 = vld [vmem:[#allocation22_spill] sm:$0xff] }
 0xe47   :  { %3572 = vmatpush1.msra.mxu0 %v6220_v58  ;;  %3643 = vmatpush1.msra.mxu1 %v6223_v59  ;;  %v7198_v58 = vld [vmem:[#allocation56_spill] sm:$0xff]  ;;  %v7199_v59 = vld [vmem:[#allocation43_spill] sm:$0xff] }
 0xe48   :  { %3573 = vmatprep.subr.mxu0 %v6226_v0  ;;  %3644 = vmatprep.subr.mxu1 %v6229_v47  ;;  %v7200_v0 = vld [vmem:[#allocation48_spill] sm:$0xff]  ;;  %v7201_v47 = vld [vmem:[#allocation30_spill] sm:$0xff] }
 0xe49   :  { %3574 = vmatpush1.msra.mxu0 %v6232_v4  ;;  %3645 = vmatpush1.msra.mxu1 %v6235_v61  ;;  %v7202_v4 = vld [vmem:[#allocation32_spill] sm:$0xff]  ;;  %v7203_v61 = vld [vmem:[#allocation33_spill] sm:$0xff] }
 0xe4a   :  { %3575 = vmatprep.subr.mxu0 %v6238_v2  ;;  %3646 = vmatprep.subr.mxu1 %v6241_v57  ;;  %v7204_v2 = vld [vmem:[#allocation35_spill] sm:$0xff]  ;;  %v7205_v57 = vld [vmem:[#allocation58_spill] sm:$0xff] }
 0xe4b   :  { %3576 = vmatpush1.msra.mxu0 %v6244_v52  ;;  %3647 = vmatpush1.msra.mxu1 %v6247_v1  ;;  %v7206_v52 = vmov 0.0   ;;  %v7207_v1 = vld [vmem:[#allocation57_spill] sm:$0xff] }
 0xe4c   :  { %3577 = vmatprep.subr.mxu0 %v6250_v27  ;;  %3648 = vmatprep.subr.mxu1 %v6253_v63  ;;  %v7208_v27 = vld [vmem:[#allocation46_spill] sm:$0xff]  ;;  %v7209_v63 = vld [vmem:[#allocation72_spill] sm:$0xff] }
 0xe4d   :  { %3578 = vmatpush1.msra.mxu0 %v6256_v51  ;;  %3649 = vmatpush1.msra.mxu1 %v6259_v15  ;;  %v2188_v51 = vadd.f32 %v7209_v63, %v7208_v27 }
 0xe4e   :  { %3579 = vmatprep.subr.mxu0 %v6262_v16  ;;  %3650 = vmatprep.subr.mxu1 %v6265_v17  ;;  %v7210_v16 = vld [vmem:[#allocation26_spill] sm:$0xff] }
 0xe4f   :  { %3580 = vmatpush1.msra.mxu0 %v6268_v18  ;;  %3651 = vmatpush1.msra.mxu1 %v6271_v19  ;;  %v2190_v17 = vadd.f32 %v7210_v16, %v7080_v54 }
 0xe50   :  { %3581 = vmatprep.subr.mxu0 %v6274_v21  ;;  %3652 = vmatprep.subr.mxu1 %v6277_v22 }
 0xe51   :  { %3582 = vmatpush1.msra.mxu0 %v6280_v24  ;;  %3653 = vmatpush1.msra.mxu1 %v6283_v11 }
 0xe52   :  { %3583 = vmatprep.subr.mxu0 %v6286_v32  ;;  %3654 = vmatprep.subr.mxu1 %v6289_v33  ;;  %v7211_v32 = vld [vmem:[#allocation42_spill] sm:$0xff] }
 0xe53   :  { %3584 = vmatpush1.msra.mxu0 %v6292_v34  ;;  %3655 = vmatpush1.msra.mxu1 %v6295_v35  ;;  %v2301_v33 = vadd.f32 %v7211_v32, %v5935_v6 }
 0xe54   :  { %3585 = vmatprep.subr.mxu0 %v6298_v36  ;;  %3656 = vmatprep.subr.mxu1 %v6301_v49  ;;  %v7212_v36 = vld [vmem:[#allocation71_spill] sm:$0xff] }
 0xe55   :  { %3586 = vmatpush1.msra.mxu0 %v6304_v3  ;;  %3657 = vmatpush1.msra.mxu1 %v7186_v46  ;;  %v2303_v49 = vadd.f32 %v7212_v36, %v5940_v30  ;;  %v3746_v46 = vld [vmem:[#allocation13 + $0x58] sm:$0xff] }
 0xe56   :  { %3587 = vmatprep.subr.mxu0 %v7187_v23  ;;  %3658 = vmatprep.subr.mxu1 %v7188_v26  ;;  %v3745_v23 = vld [vmem:[#allocation13 + $0x50] sm:$0xff]  ;;  %v3744_v26 = vld [vmem:[#allocation13 + $0x48] sm:$0xff] }
 0xe57   :  { %3588 = vmatpush1.msra.mxu0 %v7189_v53  ;;  %3659 = vmatpush1.msra.mxu1 %v7190_v40  ;;  %v3743_v53 = vld [vmem:[#allocation13 + $0x40] sm:$0xff]  ;;  %v3742_v40 = vld [vmem:[#allocation13 + $0x38] sm:$0xff] }
 0xe58   :  { %3589 = vmatprep.subr.mxu0 %v7191_v5  ;;  %3660 = vmatprep.subr.mxu1 %v7192_v41  ;;  %v3741_v5 = vld [vmem:[#allocation13 + $0x30] sm:$0xff]  ;;  %v3740_v41 = vld [vmem:[#allocation13 + $0x28] sm:$0xff] }
 0xe59   :  { %3590 = vmatpush1.msra.mxu0 %v7193_v37  ;;  %3661 = vmatpush1.msra.mxu1 %v7194_v42  ;;  %v3739_v37 = vld [vmem:[#allocation13 + $0x20] sm:$0xff]  ;;  %v3738_v42 = vld [vmem:[#allocation13 + $0x18] sm:$0xff] }
 0xe5a   :  { %3591 = vmatprep.subr.mxu0 %v7195_v10  ;;  %3662 = vmatprep.subr.mxu1 %v7196_v13  ;;  %v3737_v10 = vld [vmem:[#allocation13 + $0x10] sm:$0xff]  ;;  %v3736_v13 = vld [vmem:[#allocation13 + $0x8] sm:$0xff] }
 0xe5b   :  { %3592 = vmatpush1.msra.mxu0 %v7197_v14  ;;  %3663 = vmatpush1.msra.mxu1 %v7198_v58  ;;  %v3735_v14 = vld [vmem:[#allocation13] sm:$0xff] }
 0xe5c   :  { %3593 = vmatprep.subr.mxu0 %v7199_v59  ;;  %3664 = vmatprep.subr.mxu1 %v7200_v0  ;;  %v7213_v58 = vld [vmem:[#allocation68_spill] sm:$0xff] }
 0xe5d   :  { %3594 = vmatpush1.msra.mxu0 %v7201_v47  ;;  %3665 = vmatpush1.msra.mxu1 %v7202_v4  ;;  %v2194_v59 = vadd.f32 %v7213_v58, %v7208_v27  ;;  %v7214_v47 = vld [vmem:[#allocation69_spill] sm:$0xff] }
 0xe5e   :  { %3595 = vmatprep.subr.mxu0 %v7203_v61  ;;  %3666 = vmatprep.subr.mxu1 %v7204_v2  ;;  %v2196_v4 = vadd.f32 %v7214_v47, %v7080_v54 }
 0xe5f   :  { %3596 = vmatpush1.msra.mxu0 %v7205_v57  ;;  %3629 = vmatprep.mubr.f32.mxu0 %v7206_v52 }
 0xe60   :  { %3667 = vmatpush1.msra.mxu1 %v7207_v1  ;;  %3700 = vmatprep.mubr.f32.mxu1 %v7206_v52 }
 0xe61   :  { %3913 = vmatprep.subr.mxu0 %v7206_v52 }
 0xf00   :  { %v3457_v15 = vpop.f32.mrf.mxu0  ;;  %v3528_v11 = vpop.f32.mrf.mxu1 }
 0xf01   :  { %v3533_v18 = vadd.f32 %v3457_v15, %v2188_v51  ;;  %v3535_v34 = vadd.f32 %v3528_v11, %v2301_v33  ;;  %v7215_v15 = vld [vmem:[#allocation44_spill] sm:$0xff] }
 0xf02   :  { %v3459_v19 = vpop.f32.mrf.mxu0  ;;  %v3530_v35 = vpop.f32.mrf.mxu1  ;;  %v2307_v16 = vadd.f32 %v7215_v15, %v5935_v6 }
 0xf03   :  { %v3889_v21 = vmul.f32 -1.442695, %v3533_v18  ;;  %v3534_v22 = vadd.f32 %v3459_v19, %v2190_v17  ;;  %v3891_v3 = vmul.f32 -1.442695, %v3535_v34  ;;  %v3536_v62 = vadd.f32 %v3530_v35, %v2303_v49  ;;  %v7216_v18 = vld [vmem:[#allocation73_spill] sm:$0xff] }
 0xf04   :  { %v2309_v27 = vadd.f32 %v7216_v18, %v5940_v30 }
 0xf05   :  { %4187 = vpow2.f32 %v3889_v21  ;;  %v3890_v24 = vmul.f32 -1.442695, %v3534_v22 }
 0xf07   :  { %4189 = vpow2.f32 %v3890_v24 }
 0xf08   :  { %4191 = vpow2.f32 %v3891_v3 }
 0xf12   :  { %v4188_v39 = vpop.eup %4187 }
 0xf13   :  { %v3546_v28 = vadd.f32 1.0, %v4188_v39 }
 0xf14   :  { %v4190_v8 = vpop.eup %4189 }
 0xf15   :  { %4193 = vrcp.f32 %v3546_v28  ;;  %v3547_v38 = vadd.f32 1.0, %v4190_v8  ;;  %v4192_v44 = vpop.eup %4191  ;;  %v3895_v28 = vld [vmem:[%s6578_s6] ss:$0 sm:$0xff] }
 0xf16   :  { %4195 = vtanh.f32 %v3536_v62  ;;  %v3548_v12 = vadd.f32 1.0, %v4192_v44 }
 0xf17   :  { %4197 = vrcp.f32 %v3547_v38 }
 0xf18   :  { %4199 = vrcp.f32 %v3548_v12 }
 0xf22   :  { %v4194_v56 = vpop.eup %4193 }
 0xf23   :  { %v4196_v29 = vpop.eup %4195 }
 0xf24   :  { %v4198_v45 = vpop.eup %4197  ;;  %v3557_v43 = vmul.f32 %v4196_v29, %v4194_v56 }
 0xf25   :  { %v3556_v7 = vmul.f32 %v4198_v45, %v6461_v25  ;;  %v4200_v20 = vpop.eup %4199  ;;  %v3748_v25 = vld [vmem:[#allocation13 + $0x68] sm:$0xff] }
 0xf27   :  { %v6538_v55 = vadd.f32 %v3557_v43, %v3556_v7 }
 0xf29   :  { %4201 = vtanh.f32 %v6538_v55 }
 0xf36   :  { %v4202_v60 = vpop.eup %4201 }
 0xf37   :  { %v3560_v31 = vmul.f32 %v4202_v60, %v4200_v20 }
 0xf39   :  { %3630 = vmatmul.mubr.f32.vlgmr.msra.gmra.mxu0 %v3560_v31  ;;  %3701 = vmatmul.mubr.f32.vlgmr.msra.gmra.mxu1 %v3560_v31 }
 0xf3a   :  { %3914 = vmatpush3.msra.mxu0 %v3750_v9  ;;  %3945 = vmatprep.mubr.msk.f32.mxu0 %vm4510_vm0, %v7206_v52 }
 0xf3b   :  { %3915 = vmatprep.subr.mxu0 %v7206_v52 }
 0xf3c   :  { %3916 = vmatpush3.msra.mxu0 %v3749_v50 }
 0xf3d   :  { %3917 = vmatprep.subr.mxu0 %v7206_v52 }
 0xf3e   :  { %3918 = vmatpush3.msra.mxu0 %v3748_v25 }
 0xf3f   :  { %3919 = vmatprep.subr.mxu0 %v7206_v52 }
 0xf40   :  { %3920 = vmatpush3.msra.mxu0 %v3747_v48 }
 0xf41   :  { %3921 = vmatprep.subr.mxu0 %v7206_v52 }
 0xf42   :  { %3922 = vmatpush3.msra.mxu0 %v3746_v46 }
 0xf43   :  { %3923 = vmatprep.subr.mxu0 %v7206_v52 }
 0xf44   :  { %3924 = vmatpush3.msra.mxu0 %v3745_v23 }
 0xf45   :  { %3925 = vmatprep.subr.mxu0 %v7206_v52 }
 0xf46   :  { %3926 = vmatpush3.msra.mxu0 %v3744_v26 }
 0xf47   :  { %3927 = vmatprep.subr.mxu0 %v7206_v52 }
 0xf48   :  { %3928 = vmatpush3.msra.mxu0 %v3743_v53 }
 0xf49   :  { %3929 = vmatprep.subr.mxu0 %v7206_v52 }
 0xf4a   :  { %3930 = vmatpush3.msra.mxu0 %v3742_v40 }
 0xf4b   :  { %3931 = vmatprep.subr.mxu0 %v7206_v52 }
 0xf4c   :  { %3932 = vmatpush3.msra.mxu0 %v3741_v5 }
 0xf4d   :  { %3933 = vmatprep.subr.mxu0 %v7206_v52 }
 0xf4e   :  { %3934 = vmatpush3.msra.mxu0 %v3740_v41 }
 0xf4f   :  { %3935 = vmatprep.subr.mxu0 %v7206_v52 }
 0xf50   :  { %3936 = vmatpush3.msra.mxu0 %v3739_v37 }
 0xf51   :  { %3937 = vmatprep.subr.mxu0 %v7206_v52 }
 0xf52   :  { %3938 = vmatpush3.msra.mxu0 %v3738_v42 }
 0xf53   :  { %3939 = vmatprep.subr.mxu0 %v7206_v52 }
 0xf54   :  { %3940 = vmatpush3.msra.mxu0 %v3737_v10 }
 0xf55   :  { %3941 = vmatprep.subr.mxu0 %v7206_v52 }
 0xf56   :  { %3942 = vmatpush3.msra.mxu0 %v3736_v13 }
 0xf57   :  { %3943 = vmatprep.subr.mxu0 %v7206_v52 }
 0xf58   :  { %3944 = vmatpush3.msra.mxu0 %v3735_v14 }
 0xff9   :  { %v3631_v0 = vpop.f32.mrf.mxu0  ;;  %v3702_v51 = vpop.f32.mrf.mxu1 }
 0xffa   :  { %v3707_v61 = vadd.f32 %v3631_v0, %v2194_v59  ;;  %v3709_v52 = vadd.f32 %v3702_v51, %v2307_v16 }
 0xffb   :  { %v3633_v2 = vpop.f32.mrf.mxu0  ;;  %v3704_v17 = vpop.f32.mrf.mxu1 }
 0xffc   :  { %v3892_v57 = vmul.f32 -1.442695, %v3707_v61  ;;  %v3708_v1 = vadd.f32 %v3633_v2, %v2196_v4  ;;  %v3894_v19 = vmul.f32 -1.442695, %v3709_v52  ;;  %v3710_v21 = vadd.f32 %v3704_v17, %v2309_v27 }
 0xffe   :  { %4203 = vpow2.f32 %v3892_v57  ;;  %v3893_v63 = vmul.f32 -1.442695, %v3708_v1 }
0x1000   :  { %4205 = vpow2.f32 %v3893_v63 }
0x1001   :  { %4207 = vpow2.f32 %v3894_v19 }
0x1002   :  { %4209 = vtanh.f32 %v3710_v21 }
0x100b   :  { %v4204_v22 = vpop.eup %4203 }
0x100c   :  { %v3720_v54 = vadd.f32 1.0, %v4204_v22 }
0x100d   :  { %v4206_v24 = vpop.eup %4205 }
0x100e   :  { %4211 = vrcp.f32 %v3720_v54  ;;  %v3721_v11 = vadd.f32 1.0, %v4206_v24  ;;  %v4208_v32 = vpop.eup %4207 }
0x100f   :  { %v4210_v33 = vpop.eup %4209  ;;  %v3722_v36 = vadd.f32 1.0, %v4208_v32 }
0x1010   :  { %4213 = vrcp.f32 %v3721_v11 }
0x1011   :  { %4215 = vrcp.f32 %v3722_v36 }
0x101b   :  { %v4212_v34 = vpop.eup %4211 }
0x101c   :  { %v3731_v35 = vmul.f32 %v4212_v34, %v4210_v33 }
0x101d   :  { %v4214_v6 = vpop.eup %4213 }
0x101e   :  { %v3730_v49 = vmul.f32 %v4214_v6, %v6538_v55  ;;  %v4216_v30 = vpop.eup %4215 }
0x1020   :  { %v3732_v3 = vadd.f32 %v3731_v35, %v3730_v49 }
0x1022   :  { %4217 = vtanh.f32 %v3732_v3 }
0x102f   :  { %v4218_v39 = vpop.eup %4217 }
0x1030   :  { %v3734_v62 = vmul.f32 %v4218_v39, %v4216_v30 }
0x1032   :  { %3946 = vmatmul.mubr.f32.vlgmr.msra.gmra.mxu0 %v3734_v62 }
0x10f2   :  { %v3824_v8 = vpop.f32.mrf.mxu0 }
0x10f3   :  { %v3825_v38 = vadd.f32 %v3895_v28, %v3824_v8 }
0x10f4   :  { %v3947_v44 = vpop.f32.mrf.mxu0 }
0x10f5   :  { %3828 = vst [vmem:[#allocation15] sm:$0xff] %v3825_v38 }
0x10f6   :  { %4478 = shalt.err (!%p4475_p6)
}
0x10f7   :  { %3838 = dma.vmem_to_hbm [thread:$0]  %s3836_s11, 128, %s6579_s7, [#allocation6]  }
0x10f8   :  { %4495 = dma.done.wait [#allocation6], 128  }
0x10f9   :  { %4496 = vsyncadd [#allocation6], 4294967168 }
0x10fa   :  { %3842 = vsyncpa [#allocation5], 1 }
0x10fb   :  { %3843 = vsyncpa [#allocation8], 1 }
0x10fc   :  { %3844 = vsyncpa [#allocation11], 1 }
0x10fd   :  { %3845 = vsyncpa [#allocation14], 1 }
0x10fe   :  { %3846 = vsyncpa [#allocation6], 1 }

</bundles_post_ra>
